<compile_context>
chip_gen: v5e
topology: v5e:2x2
jax: 0.10.0
libtpu: 0.0.40
codegen_flags: <defaults>
</compile_context>

<pallas_src>
import math

import jax
import jax.numpy as jnp
from jax.experimental import pallas as pl
from jax.experimental.pallas import tpu as pltpu


_LANE = 128
_SUBLANE = 8
_VMEM_LIMIT_BYTES = 48 * 1024 * 1024  # fits every generation incl. v7x (64 MiB)


def _round_up(x: int, m: int) -> int:
    return ((x + m - 1) // m) * m


# --------------------------------------------------------------------------
# Kernel
# --------------------------------------------------------------------------
def _make_mlp_kernel(num_layers: int, activation, compute_dtype):
    """Fused MLP kernel for `num_layers` linear layers.

    Ref order: x_ref, (w_ref, b_ref) * num_layers, o_ref.
    Activation after every layer except the last (Identity).
    x/weights arrive in `compute_dtype` (bf16); every matmul accumulates in
    f32 on the MXU; bias-add and activation stay in f32.
    """

    def kernel(*refs):
        x_ref = refs[0]
        o_ref = refs[-1]
        h = x_ref[...]                               # [block_b, d_in_p] bf16
        for l in range(num_layers):
            w = refs[1 + 2 * l][...]                 # [d_in_p, d_out_p] bf16
            b = refs[2 + 2 * l][...]                 # [1, d_out_p] f32
            h = jnp.dot(h.astype(compute_dtype), w,
                        preferred_element_type=jnp.float32) + b
            if l < num_layers - 1:
                h = activation(h)                    # EUP path, f32
        o_ref[...] = h.astype(o_ref.dtype)

    return kernel


# --------------------------------------------------------------------------
# Wrapper
# --------------------------------------------------------------------------
def mlp_forward(x, params, activation_name: str, *, block_b: int = 512,
                compute_dtype=jnp.bfloat16,
                vmem_limit_bytes: int = _VMEM_LIMIT_BYTES):
    """Run the MLP forward pass in a single fused Pallas call.

    x:      [B, in_features] float32
    params: list of (W [d_in, d_out], b [d_out]) for each layer (hidden..final)
    Returns [B, out_features] float32.
    """
    act_map = {
        "relu": lambda v: jnp.maximum(v, 0.0),
        "erf": jax.lax.erf,
    }
    activation = act_map[activation_name]

    B, d_in = x.shape
    num_layers = len(params)
    d_out = params[-1][0].shape[1]

    # ---- lane-dense zero padding of all feature dims to multiples of 128 ----
    d_in_p = _round_up(d_in, _LANE)
    padded_params = []
    layer_dims = []
    prev_p = d_in_p
    for (w, b) in params:
        din, dout = w.shape
        dout_p = _round_up(dout, _LANE)
        w_p = jnp.zeros((prev_p, dout_p), compute_dtype).at[:din, :dout].set(
            w.astype(compute_dtype))
        b_p = jnp.zeros((1, dout_p), jnp.float32).at[0, :dout].set(
            b.astype(jnp.float32))
        padded_params.append((w_p, b_p))
        layer_dims.append((prev_p, dout_p))
        prev_p = dout_p
    d_out_p = prev_p

    # ---- ship activations in bf16: halves x DMA; numerics identical to the
    #      in-kernel cast (cast happens before the first matmul either way) ----
    x = x.astype(compute_dtype)

    # ---- batch tiling: pick a tile that fits the VMEM budget ----
    block_b = max(_SUBLANE, min(block_b, _round_up(B, _SUBLANE)))
    block_b = _round_up(block_b, _SUBLANE)

    cbytes = jnp.dtype(compute_dtype).itemsize

    def vmem_estimate(bb: int) -> int:
        max_w = max(dop for (_, dop) in layer_dims)
        total = 2 * bb * d_in_p * cbytes             # x tile (double-buffered)
        total += 2 * bb * d_out_p * 4                # out tile (double-buffered)
        total += 3 * bb * max_w * 4                  # live f32 intermediates
        for (dip, dop) in layer_dims:                # worst case: 2 bufs each
            total += 2 * (dip * dop * cbytes + dop * 4)
        return total

    while block_b > _SUBLANE and vmem_estimate(block_b) > vmem_limit_bytes:
        block_b = max(_SUBLANE, _round_up(block_b // 2, _SUBLANE))

    # pad batch so the grid covers it exactly (no silently dropped rows)
    B_p = _round_up(B, block_b)
    pad_rows = B_p - B
    pad_cols = d_in_p - d_in
    if pad_rows or pad_cols:
        x = jnp.pad(x, ((0, pad_rows), (0, pad_cols)))
    grid = (pl.cdiv(B_p, block_b),)

    kernel = _make_mlp_kernel(num_layers, activation, compute_dtype)

    args = [x]
    for (w_p, b_p) in padded_params:
        args.append(w_p)
        args.append(b_p)

    def build(single_buffer_weights: bool):
        wkw = {}
        if single_buffer_weights:
            wkw = {"pipeline_mode": pl.Buffered(1)}
        in_specs = [pl.BlockSpec((block_b, d_in_p), lambda i: (i, 0))]
        for (w_p, b_p) in padded_params:
            # Grid-invariant (constant index_map) -> DMA'd once across steps;
            # single-buffer them so they don't pay double VMEM residency.
            in_specs.append(pl.BlockSpec(w_p.shape, lambda i: (0, 0), **wkw))
            in_specs.append(pl.BlockSpec(b_p.shape, lambda i: (0, 0), **wkw))
        return pl.pallas_call(
            kernel,
            out_shape=jax.ShapeDtypeStruct((B_p, d_out_p), jnp.float32),
            grid=grid,
            in_specs=in_specs,
            out_specs=pl.BlockSpec((block_b, d_out_p), lambda i: (i, 0)),
            compiler_params=pltpu.CompilerParams(
                dimension_semantics=("parallel",),
                vmem_limit_bytes=vmem_limit_bytes,
            ),
        )

    try:
        out_p = jax.block_until_ready(build(True)(*args))
    except Exception:
        # Installed Pallas rejected pipeline_mode / Buffered(1) on input specs;
        # fall back to default (double-buffered) specs — correctness unchanged.
        out_p = jax.block_until_ready(build(False)(*args))

    return out_p[:B, :d_out]


# --------------------------------------------------------------------------
# Deterministic parameter initialization (mirrors MLPModel._initialize_layers)
# --------------------------------------------------------------------------
def init_params(key, context):
    L = context["L"]
    d_in = context["in_features"]
    d_h = context["hidden_features"]
    d_out = context["out_features"]
    hw_std = context["hidden_weight_std"]
    fw_std = context["final_weight_std"]
    b_std = context["bias_std"]

    params = []
    key, kw, kb = jax.random.split(key, 3)
    w = jax.random.normal(kw, (d_in, d_h), jnp.float32) * (hw_std / math.sqrt(d_in))
    b = jax.random.normal(kb, (d_h,), jnp.float32) * b_std
    params.append((w, b))
    for _ in range(1, L - 1):
        key, kw, kb = jax.random.split(key, 3)
        w = jax.random.normal(kw, (d_h, d_h), jnp.float32) * (hw_std / math.sqrt(d_h))
        b = jax.random.normal(kb, (d_h,), jnp.float32) * b_std
        params.append((w, b))
    key, kw, kb = jax.random.split(key, 3)
    w = jax.random.normal(kw, (d_h, d_out), jnp.float32) * (fw_std / math.sqrt(d_h))
    b = jax.random.normal(kb, (d_out,), jnp.float32) * b_std
    params.append((w, b))
    return params


def reference_forward(x, params, activation_name, compute_dtype=jnp.float32):
    act = {"relu": lambda v: jnp.maximum(v, 0.0), "erf": jax.lax.erf}[activation_name]
    h = x.astype(jnp.float32)
    for l, (w, b) in enumerate(params):
        h = jnp.dot(h.astype(compute_dtype), w.astype(compute_dtype),
                    preferred_element_type=jnp.float32) + b.astype(jnp.float32)
        if l < len(params) - 1:
            h = act(h)
    return h


# --------------------------------------------------------------------------
# Main
# --------------------------------------------------------------------------
if __name__ == "__main__":
    context = {
        "L": 3,                     # 2 hidden (erf) layers + final linear
        "in_features": 16,
        "hidden_features": 32,
        "out_features": 8,
        "hidden_weight_std": 1.0,
        "final_weight_std": 1.0,
        "bias_std": 0.1,
        "use_batch_norm": False,
        "activation": "erf",
    }

    key = jax.random.PRNGKey(0)
    key, kx = jax.random.split(key)
    batch = 200   # deliberately NOT a multiple of the tile -> exercises padding
    x = jax.random.normal(kx, (batch, context["in_features"]), jnp.float32)

    params = init_params(key, context)

    # block_b=128 with batch padded to 256 -> grid (2,), both v7x TCs get work.
    out = mlp_forward(x, params, context["activation"], block_b=128)
    out = jax.block_until_ready(out)

    # bf16-matched reference (same matmul dtype as the kernel) -> tight check
    ref_bf16 = reference_forward(x, params, context["activation"],
                                 compute_dtype=jnp.bfloat16)
    # full-f32 reference -> loose sanity check on overall numerics
    ref_f32 = reference_forward(x, params, context["activation"],
                                compute_dtype=jnp.float32)

    assert out.shape == (batch, context["out_features"])
    assert jnp.allclose(out, ref_bf16, atol=1e-3, rtol=1e-3), \
        "mismatch vs bf16-matched reference"
    assert jnp.allclose(out, ref_f32, atol=1.5e-1, rtol=1.5e-1), \
        "mismatch vs f32 reference"

    print("KERNEL_OK")
</pallas_src>

<mosaic_0001>
module attributes {stable_mosaic.version = 11 : i64} {
  func.func @kernel(%arg0: i32, %arg1: memref<128x128xbf16, #tpu.memory_space<vmem>>, %arg2: memref<128x128xbf16, #tpu.memory_space<vmem>>, %arg3: memref<1x128xf32, #tpu.memory_space<vmem>>, %arg4: memref<128x128xbf16, #tpu.memory_space<vmem>>, %arg5: memref<1x128xf32, #tpu.memory_space<vmem>>, %arg6: memref<128x128xbf16, #tpu.memory_space<vmem>>, %arg7: memref<1x128xf32, #tpu.memory_space<vmem>>, %arg8: memref<128x128xf32, #tpu.memory_space<vmem>>) attributes {dimension_semantics = [#tpu.dimension_semantics<parallel>], iteration_bounds = array<i64: 2>, scalar_prefetch = 0 : i64, scratch_operands = 0 : i64, tpu.core_type = #tpu.core_type<tc>, window_params = [{transform_indices = @transform_0, window_bounds = array<i64: 128, 128>}, {pipeline_mode = #tpu.pipeline_mode<synchronous>, transform_indices = @transform_1, window_bounds = array<i64: 128, 128>}, {pipeline_mode = #tpu.pipeline_mode<synchronous>, transform_indices = @transform_2, window_bounds = array<i64: 1, 128>}, {pipeline_mode = #tpu.pipeline_mode<synchronous>, transform_indices = @transform_3, window_bounds = array<i64: 128, 128>}, {pipeline_mode = #tpu.pipeline_mode<synchronous>, transform_indices = @transform_4, window_bounds = array<i64: 1, 128>}, {pipeline_mode = #tpu.pipeline_mode<synchronous>, transform_indices = @transform_5, window_bounds = array<i64: 128, 128>}, {pipeline_mode = #tpu.pipeline_mode<synchronous>, transform_indices = @transform_6, window_bounds = array<i64: 1, 128>}, {transform_indices = @transform_7, window_bounds = array<i64: 128, 128>}]} {
    %c0 = arith.constant 0 : index
    %c0_0 = arith.constant 0 : index
    %0 = vector.load %arg1[%c0, %c0_0] : memref<128x128xbf16, #tpu.memory_space<vmem>>, vector<128x128xbf16>
    %c0_1 = arith.constant 0 : index
    %c0_2 = arith.constant 0 : index
    %1 = vector.load %arg2[%c0_1, %c0_2] : memref<128x128xbf16, #tpu.memory_space<vmem>>, vector<128x128xbf16>
    %c0_3 = arith.constant 0 : index
    %c0_4 = arith.constant 0 : index
    %2 = vector.load %arg3[%c0_3, %c0_4] : memref<1x128xf32, #tpu.memory_space<vmem>>, vector<1x128xf32>
    %cst = arith.constant dense<0.000000e+00> : vector<128x128xf32>
    %3 = tpu.matmul %0, %1, %cst {dimension_numbers = #tpu.dot_dimension_numbers<[1], [0], [0], [1], [0, 0, 1, 1], [], []>} : vector<128x128xbf16>, vector<128x128xbf16>, vector<128x128xf32> -> vector<128x128xf32>
    %4 = vector.broadcast %2 : vector<1x128xf32> to vector<128x128xf32>
    %5 = arith.addf %3, %4 : vector<128x128xf32>
    %6 = math.erf %5 : vector<128x128xf32>
    %c0_5 = arith.constant 0 : index
    %c0_6 = arith.constant 0 : index
    %7 = vector.load %arg4[%c0_5, %c0_6] : memref<128x128xbf16, #tpu.memory_space<vmem>>, vector<128x128xbf16>
    %c0_7 = arith.constant 0 : index
    %c0_8 = arith.constant 0 : index
    %8 = vector.load %arg5[%c0_7, %c0_8] : memref<1x128xf32, #tpu.memory_space<vmem>>, vector<1x128xf32>
    %9 = arith.truncf %6 : vector<128x128xf32> to vector<128x128xbf16>
    %cst_9 = arith.constant dense<0.000000e+00> : vector<128x128xf32>
    %10 = tpu.matmul %9, %7, %cst_9 {dimension_numbers = #tpu.dot_dimension_numbers<[1], [0], [0], [1], [0, 0, 1, 1], [], []>} : vector<128x128xbf16>, vector<128x128xbf16>, vector<128x128xf32> -> vector<128x128xf32>
    %11 = vector.broadcast %8 : vector<1x128xf32> to vector<128x128xf32>
    %12 = arith.addf %10, %11 : vector<128x128xf32>
    %13 = math.erf %12 : vector<128x128xf32>
    %c0_10 = arith.constant 0 : index
    %c0_11 = arith.constant 0 : index
    %14 = vector.load %arg6[%c0_10, %c0_11] : memref<128x128xbf16, #tpu.memory_space<vmem>>, vector<128x128xbf16>
    %c0_12 = arith.constant 0 : index
    %c0_13 = arith.constant 0 : index
    %15 = vector.load %arg7[%c0_12, %c0_13] : memref<1x128xf32, #tpu.memory_space<vmem>>, vector<1x128xf32>
    %16 = arith.truncf %13 : vector<128x128xf32> to vector<128x128xbf16>
    %cst_14 = arith.constant dense<0.000000e+00> : vector<128x128xf32>
    %17 = tpu.matmul %16, %14, %cst_14 {dimension_numbers = #tpu.dot_dimension_numbers<[1], [0], [0], [1], [0, 0, 1, 1], [], []>} : vector<128x128xbf16>, vector<128x128xbf16>, vector<128x128xf32> -> vector<128x128xf32>
    %18 = vector.broadcast %15 : vector<1x128xf32> to vector<128x128xf32>
    %19 = arith.addf %17, %18 : vector<128x128xf32>
    %c0_15 = arith.constant 0 : index
    %c0_16 = arith.constant 0 : index
    %20 = vector.load %arg8[%c0_15, %c0_16] : memref<128x128xf32, #tpu.memory_space<vmem>>, vector<128x128xf32>
    tpu.vector_store %arg8[%c0_15, %c0_16], %19 {strides = array<i32>} : memref<128x128xf32, #tpu.memory_space<vmem>>, vector<128x128xf32>,
    return
  }
  func.func @transform_0(%arg0: i32) -> (i32, i32) {
    %c0_i32 = arith.constant 0 : i32
    %c0_i32_0 = arith.constant 0 : i32
    return %arg0, %c0_i32 : i32, i32
  }
  func.func @transform_1(%arg0: i32) -> (i32, i32) {
    %c0_i32 = arith.constant 0 : i32
    %c0_i32_0 = arith.constant 0 : i32
    %c0_i32_1 = arith.constant 0 : i32
    return %c0_i32, %c0_i32_0 : i32, i32
  }
  func.func @transform_2(%arg0: i32) -> (i32, i32) {
    %c0_i32 = arith.constant 0 : i32
    %c0_i32_0 = arith.constant 0 : i32
    %c0_i32_1 = arith.constant 0 : i32
    return %c0_i32, %c0_i32_0 : i32, i32
  }
  func.func @transform_3(%arg0: i32) -> (i32, i32) {
    %c0_i32 = arith.constant 0 : i32
    %c0_i32_0 = arith.constant 0 : i32
    %c0_i32_1 = arith.constant 0 : i32
    return %c0_i32, %c0_i32_0 : i32, i32
  }
  func.func @transform_4(%arg0: i32) -> (i32, i32) {
    %c0_i32 = arith.constant 0 : i32
    %c0_i32_0 = arith.constant 0 : i32
    %c0_i32_1 = arith.constant 0 : i32
    return %c0_i32, %c0_i32_0 : i32, i32
  }
  func.func @transform_5(%arg0: i32) -> (i32, i32) {
    %c0_i32 = arith.constant 0 : i32
    %c0_i32_0 = arith.constant 0 : i32
    %c0_i32_1 = arith.constant 0 : i32
    return %c0_i32, %c0_i32_0 : i32, i32
  }
  func.func @transform_6(%arg0: i32) -> (i32, i32) {
    %c0_i32 = arith.constant 0 : i32
    %c0_i32_0 = arith.constant 0 : i32
    %c0_i32_1 = arith.constant 0 : i32
    return %c0_i32, %c0_i32_0 : i32, i32
  }
  func.func @transform_7(%arg0: i32) -> (i32, i32) {
    %c0_i32 = arith.constant 0 : i32
    %c0_i32_0 = arith.constant 0 : i32
    return %arg0, %c0_i32 : i32, i32
  }
}

module attributes {stable_mosaic.version = 11 : i64} {
  func.func @kernel(%arg0: i32, %arg1: memref<128x128xbf16, #tpu.memory_space<vmem>>, %arg2: memref<128x128xbf16, #tpu.memory_space<vmem>>, %arg3: memref<1x128xf32, #tpu.memory_space<vmem>>, %arg4: memref<128x128xbf16, #tpu.memory_space<vmem>>, %arg5: memref<1x128xf32, #tpu.memory_space<vmem>>, %arg6: memref<128x128xbf16, #tpu.memory_space<vmem>>, %arg7: memref<1x128xf32, #tpu.memory_space<vmem>>, %arg8: memref<128x128xf32, #tpu.memory_space<vmem>>) attributes {dimension_semantics = [#tpu.dimension_semantics<parallel>], iteration_bounds = array<i64: 2>, scalar_prefetch = 0 : i64, scratch_operands = 0 : i64, tpu.core_type = #tpu.core_type<tc>, window_params = [{transform_indices = @transform_0, window_bounds = array<i64: 128, 128>}, {pipeline_mode = #tpu.pipeline_mode<synchronous>, transform_indices = @transform_1, window_bounds = array<i64: 128, 128>}, {pipeline_mode = #tpu.pipeline_mode<synchronous>, transform_indices = @transform_2, window_bounds = array<i64: 1, 128>}, {pipeline_mode = #tpu.pipeline_mode<synchronous>, transform_indices = @transform_3, window_bounds = array<i64: 128, 128>}, {pipeline_mode = #tpu.pipeline_mode<synchronous>, transform_indices = @transform_4, window_bounds = array<i64: 1, 128>}, {pipeline_mode = #tpu.pipeline_mode<synchronous>, transform_indices = @transform_5, window_bounds = array<i64: 128, 128>}, {pipeline_mode = #tpu.pipeline_mode<synchronous>, transform_indices = @transform_6, window_bounds = array<i64: 1, 128>}, {transform_indices = @transform_7, window_bounds = array<i64: 128, 128>}]} {
    %c0 = arith.constant 0 : index
    %c0_0 = arith.constant 0 : index
    %0 = vector.load %arg1[%c0, %c0_0] : memref<128x128xbf16, #tpu.memory_space<vmem>>, vector<128x128xbf16>
    %c0_1 = arith.constant 0 : index
    %c0_2 = arith.constant 0 : index
    %1 = vector.load %arg2[%c0_1, %c0_2] : memref<128x128xbf16, #tpu.memory_space<vmem>>, vector<128x128xbf16>
    %c0_3 = arith.constant 0 : index
    %c0_4 = arith.constant 0 : index
    %2 = vector.load %arg3[%c0_3, %c0_4] : memref<1x128xf32, #tpu.memory_space<vmem>>, vector<1x128xf32>
    %cst = arith.constant dense<0.000000e+00> : vector<128x128xf32>
    %3 = tpu.matmul %0, %1, %cst {dimension_numbers = #tpu.dot_dimension_numbers<[1], [0], [0], [1], [0, 0, 1, 1], [], []>} : vector<128x128xbf16>, vector<128x128xbf16>, vector<128x128xf32> -> vector<128x128xf32>
    %4 = vector.broadcast %2 : vector<1x128xf32> to vector<128x128xf32>
    %5 = arith.addf %3, %4 : vector<128x128xf32>
    %6 = math.erf %5 : vector<128x128xf32>
    %c0_5 = arith.constant 0 : index
    %c0_6 = arith.constant 0 : index
    %7 = vector.load %arg4[%c0_5, %c0_6] : memref<128x128xbf16, #tpu.memory_space<vmem>>, vector<128x128xbf16>
    %c0_7 = arith.constant 0 : index
    %c0_8 = arith.constant 0 : index
    %8 = vector.load %arg5[%c0_7, %c0_8] : memref<1x128xf32, #tpu.memory_space<vmem>>, vector<1x128xf32>
    %9 = arith.truncf %6 : vector<128x128xf32> to vector<128x128xbf16>
    %cst_9 = arith.constant dense<0.000000e+00> : vector<128x128xf32>
    %10 = tpu.matmul %9, %7, %cst_9 {dimension_numbers = #tpu.dot_dimension_numbers<[1], [0], [0], [1], [0, 0, 1, 1], [], []>} : vector<128x128xbf16>, vector<128x128xbf16>, vector<128x128xf32> -> vector<128x128xf32>
    %11 = vector.broadcast %8 : vector<1x128xf32> to vector<128x128xf32>
    %12 = arith.addf %10, %11 : vector<128x128xf32>
    %13 = math.erf %12 : vector<128x128xf32>
    %c0_10 = arith.constant 0 : index
    %c0_11 = arith.constant 0 : index
    %14 = vector.load %arg6[%c0_10, %c0_11] : memref<128x128xbf16, #tpu.memory_space<vmem>>, vector<128x128xbf16>
    %c0_12 = arith.constant 0 : index
    %c0_13 = arith.constant 0 : index
    %15 = vector.load %arg7[%c0_12, %c0_13] : memref<1x128xf32, #tpu.memory_space<vmem>>, vector<1x128xf32>
    %16 = arith.truncf %13 : vector<128x128xf32> to vector<128x128xbf16>
    %cst_14 = arith.constant dense<0.000000e+00> : vector<128x128xf32>
    %17 = tpu.matmul %16, %14, %cst_14 {dimension_numbers = #tpu.dot_dimension_numbers<[1], [0], [0], [1], [0, 0, 1, 1], [], []>} : vector<128x128xbf16>, vector<128x128xbf16>, vector<128x128xf32> -> vector<128x128xf32>
    %18 = vector.broadcast %15 : vector<1x128xf32> to vector<128x128xf32>
    %19 = arith.addf %17, %18 : vector<128x128xf32>
    %c0_15 = arith.constant 0 : index
    %c0_16 = arith.constant 0 : index
    %20 = vector.load %arg8[%c0_15, %c0_16] : memref<128x128xf32, #tpu.memory_space<vmem>>, vector<128x128xf32>
    tpu.vector_store %arg8[%c0_15, %c0_16], %19 {strides = array<i32>} : memref<128x128xf32, #tpu.memory_space<vmem>>, vector<128x128xf32>,
    return
  }
  func.func @transform_0(%arg0: i32) -> (i32, i32) {
    %c0_i32 = arith.constant 0 : i32
    %c0_i32_0 = arith.constant 0 : i32
    return %arg0, %c0_i32 : i32, i32
  }
  func.func @transform_1(%arg0: i32) -> (i32, i32) {
    %c0_i32 = arith.constant 0 : i32
    %c0_i32_0 = arith.constant 0 : i32
    %c0_i32_1 = arith.constant 0 : i32
    return %c0_i32, %c0_i32_0 : i32, i32
  }
  func.func @transform_2(%arg0: i32) -> (i32, i32) {
    %c0_i32 = arith.constant 0 : i32
    %c0_i32_0 = arith.constant 0 : i32
    %c0_i32_1 = arith.constant 0 : i32
    return %c0_i32, %c0_i32_0 : i32, i32
  }
  func.func @transform_3(%arg0: i32) -> (i32, i32) {
    %c0_i32 = arith.constant 0 : i32
    %c0_i32_0 = arith.constant 0 : i32
    %c0_i32_1 = arith.constant 0 : i32
    return %c0_i32, %c0_i32_0 : i32, i32
  }
  func.func @transform_4(%arg0: i32) -> (i32, i32) {
    %c0_i32 = arith.constant 0 : i32
    %c0_i32_0 = arith.constant 0 : i32
    %c0_i32_1 = arith.constant 0 : i32
    return %c0_i32, %c0_i32_0 : i32, i32
  }
  func.func @transform_5(%arg0: i32) -> (i32, i32) {
    %c0_i32 = arith.constant 0 : i32
    %c0_i32_0 = arith.constant 0 : i32
    %c0_i32_1 = arith.constant 0 : i32
    return %c0_i32, %c0_i32_0 : i32, i32
  }
  func.func @transform_6(%arg0: i32) -> (i32, i32) {
    %c0_i32 = arith.constant 0 : i32
    %c0_i32_0 = arith.constant 0 : i32
    %c0_i32_1 = arith.constant 0 : i32
    return %c0_i32, %c0_i32_0 : i32, i32
  }
  func.func @transform_7(%arg0: i32) -> (i32, i32) {
    %c0_i32 = arith.constant 0 : i32
    %c0_i32_0 = arith.constant 0 : i32
    return %arg0, %c0_i32 : i32, i32
  }
}

</mosaic_0001>

<bundles_post_ra>
// kernel: tpu_custom_call.1
= control target key start
LH: loop header
LB: loop body
LE: loop exit
PB: predicated region body
PF: predicated region fallthrough
CT: control target
= control target key end

     0   :  { %s4129_s0 = inlined_call_operand.hbm [shape: bf16[256,128], index: 0, kind: input, shape index: {}]   ;;  %s4130_s1 = inlined_call_operand.hbm [shape: bf16[128,128], index: 1, kind: input, shape index: {}]   ;;  %s4131_s2 = inlined_call_operand.vmem [shape: f32[1,128], index: 2, kind: input, shape index: {}]   ;;  %s4132_s3 = inlined_call_operand.hbm [shape: bf16[128,128], index: 3, kind: input, shape index: {}]   ;;  %s4133_s4 = inlined_call_operand.vmem [shape: f32[1,128], index: 4, kind: input, shape index: {}]   ;;  %s4134_s5 = inlined_call_operand.hbm [shape: bf16[128,128], index: 5, kind: input, shape index: {}]   ;;  %s4135_s6 = inlined_call_operand.vmem [shape: f32[1,128], index: 6, kind: input, shape index: {}]   ;;  %s4136_s7 = inlined_call_operand.hbm [shape: f32[256,128], index: 7, kind: output, shape index: {}]  }
   0x1   :  { %4139 = sst [smem:[#allocation15_spill]] %s4130_s1 }
   0x2   :  { %12 = vsyncpa [#allocation3], 0 }
   0x3   :  { %14 = vsyncpa [#allocation3 + $0x1], 0 }
   0x4   :  { %15 = vsyncpa [#allocation6], 0 }
   0x5   :  { %16 = vsyncpa [#allocation9], 0 }
   0x6   :  { %17 = vsyncpa [#allocation4], 0 }
   0x7   :  { %19 = vsyncpa [#allocation4 + $0x1], 0  ;;  %s2825_s24 = smov 0   ;;  %s2827_s25 = smov 0  }
   0x8   :  { %s2829_s26 = smov 0   ;;  %s2831_s27 = smov 0  }
   0x9 LB: > { %s2846_s28 = sadd.s32 4294967295, %s2776_s27   ;;  %s2196_s29 = sadd.s32 4294967294, %s2776_s27   ;;  %s2776_s27 = sphi %s2831_s27, %s4197_s27   ;;  %s2772_s26 = sphi %s2829_s26, %s4196_s26   ;;  %s2768_s25 = sphi %s2827_s25, %s4195_s25   ;;  %s2764_s24 = sphi %s2825_s24, %s4194_s24  }
   0xa   : > { %p45_p0 = scmp.ne.s32.totalorder %s2768_s25, %s2764_s24  ;;  %p46_p1 = scmp.eq.s32.totalorder %s2846_s28, 0 }
   0xb   : > { %p195_p2 = scmp.eq.s32.totalorder %s2846_s28, 1  ;;  %p201_p3 = scmp.eq.s32.totalorder %s2196_s29, 1 }
   0xc   : > { %p2855_p4 = por %p46_p1, %p45_p0  ;;  %p2197_p5 = scmp.ge.s32.totalorder %s2776_s27, 1 }
   0xd   : > { %p2860_p6 = por %p201_p3, %p45_p0  ;;  %p208_p7 = scmp.lt.s32.totalorder %s2776_s27, 3 }
   0xe   : > { %s4142_s1 = sld [smem:[#allocation15_spill]]  ;;  %s2778_s13 = smov [#allocation5]  }
   0xf   : > { %p2868_p8 = pnand %p2197_p5, %p208_p7  ;;  %s221_s14 = sshll.u32 %s2778_s13, 4  ;;  %s222_s14 = int_to_ptr.vmem [resolvable:$true] %s221_s14 }
  0x10   : > { %s236_s18 = sshll.u32 %s4132_s3, 4  ;;  %s4137_s19 = smov 64   ;;  %s237_s18 = int_to_ptr.hbm [resolvable:$true] %s236_s18 }
  0x11   : > { %p2450_p9 = pneg %p2868_p8  ;;  %s4138_s20 = smov 4  }
  0x12   : > { %s2781_s21 = smov [#allocation7]   ;;  %s253_s9 = sshll.u32 %s4134_s5, 4  ;;  %s254_s9 = int_to_ptr.hbm [resolvable:$true] %s253_s9 }
  0x13   : > { %p2876_p10 = pnand %p2450_p9, %p46_p1  ;;  %s238_s22 = sshll.u32 %s2781_s21, 4  ;;  %s239_s22 = int_to_ptr.vmem [resolvable:$true] %s238_s22 }
  0x14   : > { %s219_s11 = sshll.u32 %s4142_s1, 4  ;;  %s2782_s10 = smov [#allocation8]   ;;  %s220_s11 = int_to_ptr.hbm [resolvable:$true] %s219_s11 }
  0x15   : > { %2453 = dma.hbm_to_vmem [thread:$0]  (!%p2876_p10), %s220_s11, 1024, %s222_s14, [#allocation6], %s4137_s19, %s4137_s19, %s4138_s20  }
  0x16   : > { %2456 = dma.hbm_to_vmem [thread:$0]  (!%p2876_p10), %s237_s18, 1024, %s239_s22, [#allocation6], %s4137_s19, %s4137_s19, %s4138_s20  }
  0x17   : > { %s255_s11 = sshll.u32 %s2782_s10, 4  ;;  %s2898_s13 = sadd.s32 1, %s2776_s27   ;;  %s256_s11 = int_to_ptr.vmem [resolvable:$true] %s255_s11 }
  0x18   : > { %2459 = dma.hbm_to_vmem [thread:$0]  (!%p2876_p10), %s254_s9, 1024, %s256_s11, [#allocation9], %s4137_s19, %s4137_s19, %s4138_s20  }
  0x19   : > { %s29_s14 = ssub.s32 %s2776_s27, %s2898_s13  ;;  %s32_s16 = sadd.s32 1, %s2772_s26 }
  0x1a   : > { %p30_p12 = scmp.eq.s32.totalorder %s29_s14, 0  ;;  %p39_p13 = scmp.ne.s32.totalorder %s2772_s26, %s2768_s25 }
  0x1b   : > { %p40_p0 = scmp.eq.s32.totalorder %s2776_s27, 0  ;;  %p2471_p5 = scmp.lt.s32.totalorder %s2776_s27, 2 }
  0x1c   : > { %s2912_s17 = scalar_select %p30_p12, %s2772_s26, %s32_s16  }
  0x1d   : > { %p2916_p3 = por %p195_p2, %p39_p13  ;;  %s272_s21 = sand.u32 1, %s2772_s26  }
  0x1e   : > { %s2376_s15 = sshll.u32 %s2776_s27, 6  ;;  %p41_p7 = por %p40_p0, %p39_p13 }
  0x1f   : > { %s2202_s22 = sshll.u32 %s272_s21, 6  ;;  %s281_s9 = scalar_lea.hbm %s4129_s0, %s2376_s15 }
  0x20   : > { %s282_s10 = sshll.u32 %s281_s9, 4  ;;  %s276_s11 = scalar_lea.vmem [#allocation2], %s2202_s22  ;;  %s283_s10 = int_to_ptr.hbm [resolvable:$true] %s282_s10 }
  0x21   : > { %s284_s14 = sshll.u32 %s276_s11, 4  ;;  %p2926_p9 = pnand %p2471_p5, %p41_p7  ;;  %s285_s14 = int_to_ptr.vmem [resolvable:$true] %s284_s14 }
  0x22   : > { %s273_s19 = scalar_lea.sflag [#allocation3], %s272_s21  ;;  %s2672_s20 = sshra.s32 %s283_s10, 4  ;;  %s2673_s20 = int_to_ptr.hbm [resolvable:$true] %s2672_s20 }
  0x23   : > { %s2674_s1 = scalar_lea.hbm %s2673_s20, 64  ;;  %p2676_p10 = pneg %p2926_p9 }
  0x24   : > { %p2675_p2 = scmp.ne.s32.totalorder %s2673_s20, %s2674_s1  ;;  %s2679_s22 = scalar_lea.hbm %s4129_s0, 128 }
  0x25   : > { %p2680_p0 = scmp.lt.s32.totalorder %s2673_s20, %s4129_s0  ;;  %p2681_p5 = scmp.lt.s32.totalorder %s2679_s22, %s2674_s1 }
  0x26   : > { %p2677_p12 = pnand %p2676_p10, %p2675_p2 }
  0x27   : > { %p2682_p7 = por %p2681_p5, %p2680_p0 }
  0x28   : > { %p2678_p13 = pneg %p2677_p12 }
  0x2a   : > { %p2683_p11 = pnand %p2682_p7, %p2678_p13 }
  0x2c   : > { %2686 = shalt.err (!%p2683_p11)
}
  0x2d   : > { %s4147_s21 = smov 4   ;;  %s4148_s11 = smov 64  }
  0x2e   : > { %2463 = dma.hbm_to_vmem [thread:$0]  (!%p2926_p9), %s283_s10, 1024, %s285_s14, %s273_s19, %s4148_s11, %s4148_s11, %s4147_s21  }
  0x2f   : > { %296 = sbr.rel (%p2868_p8) target bundleno = 760 (0x2f8), region = 48  ;;  %s2946_s15 = sand.u32 (!%p2868_p8), 1, %s2768_s25  }
  0x30   : > { %s2206_s20 = sshll.u32 (!%p2868_p8), %s2946_s15, 6  ;;  %s299_s1 = scalar_lea.sflag (!%p2868_p8), [#allocation3], %s2946_s15 }
  0x31   : > { %s2950_s23 = scalar_lea.vmem (!%p2868_p8), [#allocation2], %s2206_s20 }
  0x34   : > { %2747 = dma.done.wait (%p2855_p4), %s299_s1, 1024  }
  0x35   : > { %2749 = vsyncadd (%p2855_p4), %s299_s1, 4294966272 }
  0x36   : > { %2751 = dma.done.wait (%p46_p1), [#allocation6], 2048  }
  0x37   : > { %2753 = vsyncadd (%p46_p1), [#allocation6], 4294965248 }
  0x38   : > { %2755 = dma.done.wait (%p46_p1), [#allocation9], 1024  }
  0x39   : > { %2757 = vsyncadd (%p46_p1), [#allocation9], 4294966272  ;;  %v2392_v0 = vld [vmem:[#allocation5 + $0x38] sm:$0xff]  ;;  %v2391_v1 = vld [vmem:[#allocation5 + $0x30] sm:$0xff]  ;;  %s2210_s14 = sshll.u32 %s2946_s15, 7  ;;  %s2409_s9 = sshll.u32 %s2846_s28, 7 }
  0x3a   : > { %483 = vmatpush.bf16.msra.mxu0 %v2392_v0  ;;  %2410 = vmatpush.bf16.msra.mxu3 %v2392_v0  ;;  %v2390_v2 = vld [vmem:[#allocation5 + $0x28] sm:$0xff]  ;;  %v2389_v3 = vld [vmem:[#allocation5 + $0x20] sm:$0xff]  ;;  %v2388_v4 = vld [vmem:[#allocation5 + $0x18] sm:$0xff]  ;;  %s4077_s29 = scalar_lea.vmem [#allocation10], %s2210_s14  ;;  %s2090_s20 = scalar_lea.hbm %s4136_s7, %s2409_s9 }
  0x3b   : > { %v2387_v5 = vld [vmem:[#allocation5 + $0x10] sm:$0xff]  ;;  %v2386_v6 = vld [vmem:[#allocation5 + $0x8] sm:$0xff]  ;;  %v2385_v7 = vld [vmem:[#allocation5] sm:$0xff]  ;;  %s2091_s1 = sshll.u32 %s4077_s29, 4  ;;  %s2079_s30 = scalar_lea.sflag [#allocation4], %s2946_s15  ;;  %s2092_s1 = int_to_ptr.vmem [resolvable:$true] %s2091_s1 }
  0x3c   : > { %v2377_v8 = vld [vmem:[%s2950_s23] sm:$0xff]  ;;  %v2383_v9 = vld [vmem:[%s2950_s23 + $0x30] sm:$0xff]  ;;  %v2378_v10 = vld [vmem:[%s2950_s23 + $0x8] sm:$0xff]  ;;  %s2722_s14 = scalar_lea.hbm %s4136_s7, 256 }
  0x3d   : > { %v2384_v11 = vld [vmem:[%s2950_s23 + $0x38] sm:$0xff]  ;;  %v2379_v12 = vld [vmem:[%s2950_s23 + $0x10] sm:$0xff]  ;;  %v2381_v14 = vld [vmem:[%s2950_s23 + $0x20] sm:$0xff] }
  0x3e   : > { %484 = vmatpush.bf16.msra.mxu0 %v2391_v1  ;;  %2411 = vmatpush.bf16.msra.mxu3 %v2391_v1  ;;  %v2380_v13 = vld [vmem:[%s2950_s23 + $0x18] sm:$0xff]  ;;  %v2382_v15 = vld [vmem:[%s2950_s23 + $0x28] sm:$0xff]  ;;  %v2975_v18 = vld [vmem:[%s4131_s2] ss:$0 sm:$0xff]  ;;  %s2093_s23 = sshll.u32 %s2090_s20, 4  ;;  %s2094_s23 = int_to_ptr.hbm [resolvable:$true] %s2093_s23 }
  0x3f   : > { %v2400_v17 = vld [vmem:[#allocation7 + $0x38] sm:$0xff]  ;;  %v2399_v19 = vld [vmem:[#allocation7 + $0x30] sm:$0xff]  ;;  %v2398_v27 = vld [vmem:[#allocation7 + $0x28] sm:$0xff]  ;;  %s2716_s12 = sshra.s32 %s2094_s23, 4  ;;  %s2717_s12 = int_to_ptr.hbm [resolvable:$true] %s2716_s12 }
  0x40   : > { %1248 = vmatpush.bf16.msra.mxu1 %v2400_v17  ;;  %v2397_v35 = vld [vmem:[#allocation7 + $0x20] sm:$0xff]  ;;  %v2396_v46 = vld [vmem:[#allocation7 + $0x18] sm:$0xff]  ;;  %v2395_v57 = vld [vmem:[#allocation7 + $0x10] sm:$0xff]  ;;  %s2718_s19 = scalar_lea.hbm %s2717_s12, 128  ;;  %p2723_p11 = scmp.lt.s32.totalorder %s2717_s12, %s4136_s7 }
  0x41   : > { %p2719_p1 = scmp.ne.s32.totalorder %s2717_s12, %s2718_s19  ;;  %p2724_p9 = scmp.lt.s32.totalorder %s2722_s14, %s2718_s19 }
  0x42   : > { %485 = vmatpush.bf16.msra.mxu0 %v2390_v2  ;;  %2412 = vmatpush.bf16.msra.mxu3 %v2390_v2 }
  0x43   : > { %p2720_p4 = pnand %p2719_p1, %p2916_p3  ;;  %p2725_p2 = por %p2724_p9, %p2723_p11 }
  0x44   : > { %1249 = vmatpush.bf16.msra.mxu1 %v2399_v19 }
  0x45   : > { %p2721_p8 = pneg %p2720_p4 }
  0x46   : > { %486 = vmatpush.bf16.msra.mxu0 %v2389_v3  ;;  %2413 = vmatpush.bf16.msra.mxu3 %v2389_v3 }
  0x47   : > { %p2726_p10 = pnand %p2725_p2, %p2721_p8 }
  0x48   : > { %1250 = vmatpush.bf16.msra.mxu1 %v2398_v27 }
  0x4a   : > { %487 = vmatpush.bf16.msra.mxu0 %v2388_v4  ;;  %2414 = vmatpush.bf16.msra.mxu3 %v2388_v4 }
  0x4c   : > { %1251 = vmatpush.bf16.msra.mxu1 %v2397_v35 }
  0x4e   : > { %488 = vmatpush.bf16.msra.mxu0 %v2387_v5  ;;  %2415 = vmatpush.bf16.msra.mxu3 %v2387_v5 }
  0x50   : > { %1252 = vmatpush.bf16.msra.mxu1 %v2396_v46 }
  0x52   : > { %489 = vmatpush.bf16.msra.mxu0 %v2386_v6  ;;  %2416 = vmatpush.bf16.msra.mxu3 %v2386_v6 }
  0x54   : > { %1253 = vmatpush.bf16.msra.mxu1 %v2395_v57 }
  0x56   : > { %490 = vmatpush.bf16.msra.mxu0 %v2385_v7  ;;  %2417 = vmatpush.bf16.msra.mxu3 %v2385_v7 }
  0x59   : > { %491 = vmatmul.bf16.vlgmr.msra.gmra.mxu0 %v2377_v8  ;;  %521 = vmatmul.bf16.vlgmr.msra.gmra.mxu3 %v2383_v9  ;;  %v2394_v8 = vld [vmem:[#allocation7 + $0x8] sm:$0xff] }
  0x5a   : > { %2418 = vmatpush.bf16.msrb.mxu3 %v2400_v17  ;;  %1254 = vmatpush.bf16.msra.mxu1 %v2394_v8 }
  0x5e   : > { %2419 = vmatpush.bf16.msrb.mxu3 %v2399_v19 }
  0x62   : > { %2420 = vmatpush.bf16.msrb.mxu3 %v2398_v27 }
  0x66   : > { %2421 = vmatpush.bf16.msrb.mxu3 %v2397_v35 }
  0x69   : > { %496 = vmatmul.bf16.gmra.mxu0 %v2378_v10  ;;  %526 = vmatmul.bf16.gmra.mxu3 %v2384_v11 }
  0x6a   : > { %2422 = vmatpush.bf16.msrb.mxu3 %v2396_v46 }
  0x6e   : > { %2423 = vmatpush.bf16.msrb.mxu3 %v2395_v57 }
  0x72   : > { %2424 = vmatpush.bf16.msrb.mxu3 %v2394_v8 }
  0x79   : > { %501 = vmatmul.bf16.gmra.mxu0 %v2379_v12 }
  0x89   : > { %506 = vmatmul.bf16.gmra.mxu0 %v2380_v13 }
  0x99   : > { %511 = vmatmul.bf16.gmra.mxu0 %v2381_v14 }
  0xa9   : > { %516 = vmatmul.bf16.gmra.mxu0 %v2382_v15 }
  0xd6   : > { %v492_v16 = vpop.f32.mrf.mxu0 }
  0xd7   : > { %v2978_v20 = vadd.f32 %v2975_v18, %v492_v16 }
  0xd9   : > { %v532_v24 = vmul.f32 %v2978_v20, %v2978_v20 }
  0xdb   : > { %v2994_v30 = vmin.f32 %v532_v24, 16.0 }
  0xdc   : > { %v522_v21 = vpop.f32.mrf.mxu3 }
  0xdd   : > { %v2981_v22 = vadd.f32 %v2975_v18, %v522_v21  ;;  %v534_v40 = vmul.f32 2.1237322e-06, %v2994_v30  ;;  %v545_v50 = vmul.f32 3.8918573e-05, %v2994_v30 }
  0xde   : > { %v494_v23 = vpop.f32.mrf.mxu0 }
  0xdf   : > { %v1012_v25 = vmul.f32 %v2981_v22, %v2981_v22  ;;  %v2988_v26 = vadd.f32 %v2975_v18, %v494_v23  ;;  %v535_v51 = vadd.f32 0.00028619796, %v534_v40  ;;  %v546_v4 = vadd.f32 0.001143296, %v545_v50 }
  0xe1   : > { %v2990_v28 = vmin.f32 %v1012_v25, 16.0  ;;  %v572_v29 = vmul.f32 %v2988_v26, %v2988_v26  ;;  %v536_v1 = vmul.f32 %v535_v51, %v2994_v30  ;;  %v547_v17 = vmul.f32 %v546_v4, %v2994_v30 }
  0xe3   : > { %v1014_v31 = vmul.f32 2.1237322e-06, %v2990_v28  ;;  %v1025_v32 = vmul.f32 3.8918573e-05, %v2990_v28  ;;  %v2998_v33 = vmin.f32 %v572_v29, 16.0 }
  0xe4   : > { %v524_v34 = vpop.f32.mrf.mxu3  ;;  %v537_v14 = vadd.f32 0.0036580483, %v536_v1 }
  0xe5   : > { %v1015_v36 = vadd.f32 0.00028619796, %v1014_v31  ;;  %v1026_v37 = vadd.f32 0.001143296, %v1025_v32  ;;  %v3001_v38 = vadd.f32 %v2975_v18, %v524_v34  ;;  %v574_v42 = vmul.f32 2.1237322e-06, %v2998_v33 }
  0xe6   : > { %v497_v39 = vpop.f32.mrf.mxu0  ;;  %v2393_v31 = vld [vmem:[#allocation7] sm:$0xff] }
  0xe7   : > { %v1027_v41 = vmul.f32 %v1026_v37, %v2990_v28  ;;  %v1052_v43 = vmul.f32 %v3001_v38, %v3001_v38  ;;  %v1016_v44 = vmul.f32 %v1015_v36, %v2990_v28  ;;  %v3010_v45 = vadd.f32 %v2975_v18, %v497_v39  ;;  %1255 = vmatpush.bf16.msra.mxu1 %v2393_v31 }
  0xe8   : > { %v575_v53 = vadd.f32 0.00028619796, %v574_v42  ;;  %v538_v36 = vmul.f32 %v537_v14, %v2994_v30  ;;  %v548_v39 = vadd.f32 0.014752088, %v547_v17  ;;  %2425 = vmatpush.bf16.msrb.mxu3 %v2393_v31 }
  0xe9   : > { %v1028_v47 = vadd.f32 0.014752088, %v1027_v41  ;;  %v3012_v48 = vmin.f32 %v1052_v43, 16.0  ;;  %v612_v49 = vmul.f32 %v3010_v45, %v3010_v45  ;;  %v1017_v55 = vadd.f32 0.0036580483, %v1016_v44 }
  0xea   : > { %v576_v6 = vmul.f32 %v575_v53, %v2998_v33  ;;  %v539_v50 = vadd.f32 0.05243302, %v538_v36  ;;  %v549_v53 = vmul.f32 %v548_v39, %v2994_v30 }
  0xeb   : > { %v1029_v52 = vmul.f32 %v1028_v47, %v2990_v28  ;;  %v1054_v54 = vmul.f32 2.1237322e-06, %v3012_v48  ;;  %v1065_v56 = vmul.f32 3.8918573e-05, %v3012_v48  ;;  %v3020_v60 = vmin.f32 %v612_v49, 16.0 }
  0xec   : > { %v527_v61 = vpop.f32.mrf.mxu3  ;;  %v1018_v5 = vmul.f32 %v1017_v55, %v2990_v28  ;;  %v577_v21 = vadd.f32 0.0036580483, %v576_v6  ;;  %v540_v4 = vmul.f32 %v539_v50, %v2994_v30  ;;  %v550_v6 = vadd.f32 0.112945676, %v549_v53 }
  0xed   : > { %v1030_v58 = vadd.f32 0.112945676, %v1029_v52  ;;  %v1055_v59 = vadd.f32 0.00028619796, %v1054_v54  ;;  %v1066_v62 = vadd.f32 0.001143296, %v1065_v56  ;;  %v3023_v63 = vadd.f32 %v2975_v18, %v527_v61 }
  0xee   : > { %v499_v0 = vpop.f32.mrf.mxu0  ;;  %v614_v11 = vmul.f32 2.1237322e-06, %v3020_v60  ;;  %v1019_v19 = vadd.f32 0.05243302, %v1018_v5  ;;  %v578_v41 = vmul.f32 %v577_v21, %v2998_v33  ;;  %v541_v17 = vadd.f32 0.18741608, %v540_v4 }
  0xef   : > { %v1031_v2 = vmul.f32 %v1030_v58, %v2990_v28  ;;  %v1056_v3 = vmul.f32 %v1055_v59, %v3012_v48  ;;  %v1067_v7 = vmul.f32 %v1066_v62, %v3012_v48  ;;  %v1092_v12 = vmul.f32 %v3023_v63, %v3023_v63 }
  0xf0   : > { %v3036_v16 = vadd.f32 %v2975_v18, %v499_v0  ;;  %v615_v27 = vadd.f32 0.00028619796, %v614_v11  ;;  %v1020_v40 = vmul.f32 %v1019_v19, %v2990_v28  ;;  %v579_v55 = vadd.f32 0.05243302, %v578_v41 }
  0xf1   : > { %v1032_v9 = vadd.f32 0.4994258, %v1031_v2  ;;  %v1057_v10 = vadd.f32 0.0036580483, %v1056_v3  ;;  %v1068_v13 = vadd.f32 0.014752088, %v1067_v7  ;;  %v551_v21 = vmul.f32 %v550_v6, %v2994_v30 }
  0xf2   : > { %v3043_v29 = vmin.f32 %v1092_v12, 16.0  ;;  %v652_v34 = vmul.f32 %v3036_v16, %v3036_v16  ;;  %v616_v46 = vmul.f32 %v615_v27, %v3020_v60  ;;  %v1021_v54 = vadd.f32 0.18741608, %v1020_v40 }
  0xf3   : > { %v1033_v15 = vmul.f32 %v1032_v9, %v2990_v28  ;;  %v1069_v23 = vmul.f32 %v1068_v13, %v3012_v48  ;;  %v1058_v25 = vmul.f32 %v1057_v10, %v3012_v48  ;;  %v580_v8 = vmul.f32 %v579_v55, %v2998_v33 }
  0xf4   : > { %v1094_v37 = vmul.f32 2.1237322e-06, %v3043_v29  ;;  %v529_v43 = vpop.f32.mrf.mxu3  ;;  %v3054_v49 = vmin.f32 %v652_v34, 16.0  ;;  %v617_v59 = vadd.f32 0.0036580483, %v616_v46  ;;  %v1022_v7 = vmul.f32 %v1021_v54, %v2990_v28 }
  0xf5   : > { %v3040_v24 = vadd.f32 1.0, %v1033_v15  ;;  %v1070_v32 = vadd.f32 0.112945676, %v1069_v23  ;;  %v1059_v44 = vadd.f32 0.05243302, %v1058_v25  ;;  %v3057_v52 = vadd.f32 %v2975_v18, %v529_v43 }
  0xf6   : > { %v502_v35 = vpop.f32.mrf.mxu0  ;;  %v1095_v51 = vadd.f32 0.00028619796, %v1094_v37  ;;  %v654_v1 = vmul.f32 2.1237322e-06, %v3054_v49  ;;  %v618_v9 = vmul.f32 %v617_v59, %v3020_v60  ;;  %v585_v11 = vmul.f32 3.8918573e-05, %v2998_v33 }
  0xf7   : > { %2518 = vrcp.f32 %v3040_v24  ;;  %v1071_v42 = vmul.f32 %v1070_v32, %v3012_v48  ;;  %v1060_v58 = vmul.f32 %v1059_v44, %v3012_v48  ;;  %v1132_v61 = vmul.f32 %v3057_v52, %v3057_v52 }
  0xf8   : > { %v3072_v2 = vadd.f32 %v2975_v18, %v502_v35  ;;  %v1096_v5 = vmul.f32 %v1095_v51, %v3043_v29  ;;  %v655_v14 = vadd.f32 0.00028619796, %v654_v1  ;;  %v1023_v23 = vadd.f32 1.1283791, %v1022_v7 }
  0xf9   : > { %v1072_v47 = vadd.f32 0.4994258, %v1071_v42  ;;  %v3080_v10 = vmin.f32 %v1132_v61, 16.0  ;;  %v1061_v13 = vadd.f32 0.18741608, %v1060_v58  ;;  %vm1040_vm0 = vweird.f32 %v3040_v24 }
  0xfa   : > { %v692_v15 = vmul.f32 %v3072_v2, %v3072_v2  ;;  %v1097_v19 = vadd.f32 0.0036580483, %v1096_v5  ;;  %v581_v25 = vadd.f32 0.18741608, %v580_v8  ;;  %v1044_v31 = vand.u32 2147483647, %v3040_v24 }
  0xfb   : > { %v1073_v56 = vmul.f32 %v1072_v47, %v3012_v48  ;;  %v1134_v28 = vmul.f32 2.1237322e-06, %v3080_v10  ;;  %v1046_v32 = vand.u32 2147483648, %v3040_v24  ;;  %v1062_v37 = vmul.f32 %v1061_v13, %v3012_v48 }
  0xfc   : > { %v3087_v27 = vmin.f32 %v692_v15, 16.0  ;;  %v619_v39 = vadd.f32 0.05243302, %v618_v9  ;;  %v656_v40 = vmul.f32 %v655_v14, %v3054_v49  ;;  %v1098_v43 = vmul.f32 %v1097_v19, %v3043_v29 }
  0xfd   : > { %v3061_v57 = vpop.eup %2518  ;;  %v3068_v0 = vadd.f32 1.0, %v1073_v56  ;;  %v1135_v44 = vadd.f32 0.00028619796, %v1134_v28  ;;  %v552_v46 = vadd.f32 0.4994258, %v551_v21  ;;  %vm3110_vm4 = vcmp.eq.f32.partialorder %v1044_v31, 8.507059e+37 }
  0xfe   : > { %v1036_v62 = vmul.f32 %v3061_v57, %v3040_v24  ;;  %v504_v3 = vpop.f32.mrf.mxu0  ;;  %vm1041_vm1 = vweird.f32 %v3061_v57  ;;  %v694_v50 = vmul.f32 2.1237322e-06, %v3087_v27  ;;  %v657_v58 = vadd.f32 0.0036580483, %v656_v40 }
  0xff   : > { %2520 = vrcp.f32 %v3068_v0  ;;  %v3093_v34 = vadd.f32 %v2975_v18, %v504_v3  ;;  %vm1080_vm2 = vweird.f32 %v3068_v0  ;;  %v1084_v47 = vand.u32 2147483647, %v3068_v0  ;;  %vm3117_vm5 = vmor %vm1040_vm0, %vm1041_vm1 }
 0x100   : > { %v1037_v12 = vsub.f32 1.0, %v1036_v62  ;;  %v1086_v56 = vand.u32 2147483648, %v3068_v0  ;;  %v1136_v62 = vmul.f32 %v1135_v44, %v3080_v10  ;;  %v553_v3 = vmul.f32 %v552_v46, %v2994_v30 }
 0x101   : > { %v732_v48 = vmul.f32 %v3093_v34, %v3093_v34  ;;  %v1047_v4 = vor.u32 1.1754944e-38, %v1046_v32  ;;  %v1063_v5 = vadd.f32 1.1283791, %v1062_v37  ;;  %v620_v24 = vmul.f32 %v619_v39, %v3020_v60 }
 0x102   : > { %v1038_v36 = vmul.f32 %v3061_v57, %v1037_v12  ;;  %v695_v7 = vadd.f32 0.00028619796, %v694_v50  ;;  %vm3132_vm7 = vcmp.eq.f32.partialorder %v1084_v47, 8.507059e+37  ;;  %v1099_v12 = vadd.f32 0.05243302, %v1098_v43 }
 0x103   : > { %v3122_v1 = vmin.f32 %v732_v48, 16.0  ;;  %v1087_v14 = vor.u32 1.1754944e-38, %v1086_v56  ;;  %v658_v15 = vmul.f32 %v657_v58, %v3054_v49  ;;  %v1137_v21 = vadd.f32 0.0036580483, %v1136_v62 }
 0x104   : > { %v1039_v54 = vadd.f32 %v3061_v57, %v1038_v36  ;;  %v3145_v31 = vadd.f32 1.0, %v553_v3  ;;  %v586_v32 = vadd.f32 0.001143296, %v585_v11  ;;  %v542_v36 = vmul.f32 %v541_v17, %v2994_v30 }
 0x105   : > { %v2521_v35 = vpop.eup %2520  ;;  %v734_v19 = vmul.f32 2.1237322e-06, %v3122_v1  ;;  %v1024_v37 = vmul.f32 %v1023_v23, %v2981_v22  ;;  %v696_v39 = vmul.f32 %v695_v7, %v3087_v27  ;;  %v582_v40 = vmul.f32 %v581_v25, %v2998_v33 }
 0x106   : > { %v507_v41 = vpop.f32.mrf.mxu0  ;;  %v1076_v42 = vmul.f32 %v2521_v35, %v3068_v0  ;;  %vm1081_vm3 = vweird.f32 %v2521_v35  ;;  %v1043_v0 = vsel %vm3117_vm5, %v3061_v57, %v1039_v54  ;;  %v621_v43 = vadd.f32 0.18741608, %v620_v24 }
 0x107   : > { %v3107_v53 = vadd.f32 %v2975_v18, %v507_v41  ;;  %vm3127_vm6 = vmor %vm1080_vm2, %vm1081_vm3  ;;  %v1048_v57 = vsel %vm3110_vm4, %v1047_v4, %v1043_v0  ;;  %v1064_v41 = vmul.f32 %v1063_v5, %v3001_v38  ;;  %v1100_v11 = vmul.f32 %v1099_v12, %v3043_v29 }
 0x108   : > { %v1077_v51 = vsub.f32 1.0, %v1076_v42  ;;  %v735_v30 = vadd.f32 0.00028619796, %v734_v19  ;;  %v659_v22 = vadd.f32 0.05243302, %v658_v15  ;;  %v1138_v23 = vmul.f32 %v1137_v21, %v3080_v10 }
 0x109   : > { %v772_v13 = vmul.f32 %v3107_v53, %v3107_v53  ;;  %2522 = vrcp.f32 %v3145_v31  ;;  %v587_v44 = vmul.f32 %v586_v32, %v2998_v33  ;;  %v1049_v25 = vmul.f32 %v1048_v57, %v1024_v37 }
 0x10a   : > { %v1078_v61 = vmul.f32 %v2521_v35, %v1077_v51  ;;  %v697_v46 = vadd.f32 0.0036580483, %v696_v39  ;;  %v543_v51 = vadd.f32 1.1283791, %v542_v36  ;;  %v583_v48 = vadd.f32 1.1283791, %v582_v40 }
 0x10b   : > { %v3154_v42 = vmin.f32 %v772_v13, 16.0  ;;  %v622_v54 = vmul.f32 %v621_v43, %v3020_v60  ;;  %v736_v55 = vmul.f32 %v735_v30, %v3122_v1  ;;  %v1101_v56 = vadd.f32 0.18741608, %v1100_v11 }
 0x10c   : > { %v1079_v8 = vadd.f32 %v2521_v35, %v1078_v61  ;;  %v660_v58 = vmul.f32 %v659_v22, %v3054_v49  ;;  %v1139_v59 = vadd.f32 0.05243302, %v1138_v23  ;;  %v588_v61 = vadd.f32 0.014752088, %v587_v44 }
 0x10d   : > { %v774_v47 = vmul.f32 2.1237322e-06, %v3154_v42  ;;  %v2287_v62 = vclamps-f32 %v1049_v25, 1.0  ;;  %v698_v3 = vmul.f32 %v697_v46, %v3087_v27  ;;  %v625_v4 = vmul.f32 3.8918573e-05, %v3020_v60 }
 0x10e   : > { %v1083_v28 = vsel %vm3127_vm6, %v2521_v35, %v1079_v8  ;;  %v509_v17 = vpop.f32.mrf.mxu0  ;;  %v665_v5 = vmul.f32 3.8918573e-05, %v3054_v49  ;;  %v589_v9 = vmul.f32 %v588_v61, %v2998_v33  ;;  %v3178_v12 = vmul.f32 %v543_v51, %v2978_v20 }
 0x10f   : > { %v1088_v35 = vsel %vm3132_vm7, %v1087_v14, %v1083_v28  ;;  %v3164_v50 = vadd.f32 %v2975_v18, %v509_v17  ;;  %v3172_v6 = vpop.eup %2522  ;;  %v775_v7 = vadd.f32 0.00028619796, %v774_v47  ;;  %v737_v13 = vadd.f32 0.0036580483, %v736_v55 }
 0x110   : > { %v1089_v38 = vmul.f32 %v1088_v35, %v1064_v41  ;;  %v626_v0 = vadd.f32 0.001143296, %v625_v4  ;;  %v666_v14 = vadd.f32 0.001143296, %v665_v5  ;;  %v1102_v15 = vmul.f32 %v1101_v56, %v3043_v29 }
 0x111   : > { %v812_v8 = vmul.f32 %v3164_v50, %v3164_v50  ;;  %v661_v19 = vadd.f32 0.18741608, %v660_v58  ;;  %v1140_v28 = vmul.f32 %v1139_v59, %v3080_v10  ;;  %v590_v21 = vadd.f32 0.112945676, %v589_v9 }
 0x112   : > { %v2288_v24 = vclamps-f32 %v1089_v38, 1.0  ;;  %v623_v32 = vadd.f32 1.1283791, %v622_v54  ;;  %v556_v36 = vmul.f32 %v3172_v6, %v3145_v31  ;;  %v627_v37 = vmul.f32 %v626_v0, %v3020_v60 }
 0x113   : > { %v667_v39 = vmul.f32 %v666_v14, %v3054_v49  ;;  %v3187_v20 = vmul.f32 %v583_v48, %v2988_v26  ;;  %v699_v57 = vadd.f32 0.05243302, %v698_v3  ;;  %v776_v40 = vmul.f32 %v775_v7, %v3154_v42 }
 0x114   : > { %v3190_v41 = vmin.f32 %v812_v8, 16.0  ;;  %v738_v35 = vmul.f32 %v737_v13, %v3122_v1  ;;  %v591_v43 = vmul.f32 %v590_v21, %v2998_v33  ;;  %v1195_v11 = vpack.c.bf16 %v2288_v24, %v2287_v62 }
 0x115   : > { %v1105_v30 = vmul.f32 3.8918573e-05, %v3043_v29  ;;  %v1103_v17 = vadd.f32 1.1283791, %v1102_v15  ;;  %v662_v22 = vmul.f32 %v661_v19, %v3054_v49  ;;  %v1141_v23 = vadd.f32 0.18741608, %v1140_v28 }
 0x116   : > { %v628_v44 = vadd.f32 0.014752088, %v627_v37  ;;  %v3197_v26 = vmul.f32 %v623_v32, %v3010_v45  ;;  %v557_v25 = vsub.f32 1.0, %v556_v36  ;;  %v592_v46 = vadd.f32 0.4994258, %v591_v43  ;;  %1286 = vmatmul.bf16.vlgmr.msrb.gmra.mxu3 %v1195_v11  ;;  %v512_v58 = vpop.f32.mrf.mxu0 }
 0x117   : > { %v668_v38 = vadd.f32 0.014752088, %v667_v39  ;;  %v700_v47 = vmul.f32 %v699_v57, %v3087_v27  ;;  %v777_v51 = vadd.f32 0.0036580483, %v776_v40  ;;  %v814_v48 = vmul.f32 2.1237322e-06, %v3190_v41 }
 0x118   : > { %v629_v54 = vmul.f32 %v628_v44, %v3020_v60  ;;  %v739_v55 = vadd.f32 0.05243302, %v738_v35  ;;  %v593_v56 = vmul.f32 %v592_v46, %v2998_v33  ;;  %v1106_v61 = vadd.f32 0.001143296, %v1105_v30 }
 0x119   : > { %v669_v59 = vmul.f32 %v668_v38, %v3054_v49  ;;  %v3205_v45 = vmul.f32 %v1103_v17, %v3023_v63  ;;  %v663_v62 = vadd.f32 1.1283791, %v662_v22  ;;  %vm560_vm8 = vweird.f32 %v3145_v31 }
 0x11a   : > { %v630_v3 = vadd.f32 0.112945676, %v629_v54  ;;  %v558_v4 = vmul.f32 %v3172_v6, %v557_v25  ;;  %v3209_v5 = vadd.f32 1.0, %v593_v56  ;;  %v1107_v7 = vmul.f32 %v1106_v61, %v3043_v29 }
 0x11b   : > { %v670_v24 = vadd.f32 0.112945676, %v669_v59  ;;  %v701_v8 = vadd.f32 0.18741608, %v700_v47  ;;  %v778_v33 = vmul.f32 %v777_v51, %v3154_v42  ;;  %v815_v9 = vadd.f32 0.00028619796, %v814_v48 }
 0x11c   : > { %v631_v13 = vmul.f32 %v630_v3, %v3020_v60  ;;  %v1142_v63 = vmul.f32 %v1141_v23, %v3080_v10  ;;  %v740_v0 = vmul.f32 %v739_v55, %v3122_v1  ;;  %2524 = vrcp.f32 %v3209_v5 }
 0x11d   : > { %v3218_v14 = vadd.f32 %v2975_v18, %v512_v58  ;;  %vm561_vm9 = vweird.f32 %v3172_v6  ;;  %v564_v15 = vand.u32 2147483647, %v3145_v31  ;;  %v566_v19 = vand.u32 2147483648, %v3145_v31 }
 0x11e   : > { %v632_v28 = vadd.f32 0.4994258, %v631_v13  ;;  %v559_v21 = vadd.f32 %v3172_v6, %v558_v4  ;;  %v671_v32 = vmul.f32 %v670_v24, %v3054_v49  ;;  %v1108_v36 = vadd.f32 0.014752088, %v1107_v7  ;;  %vm3239_vm10 = vmor %vm560_vm8, %vm561_vm9  ;;  %v514_v38 = vpop.f32.mrf.mxu0 }
 0x11f   : > { %v1145_v37 = vmul.f32 3.8918573e-05, %v3080_v10  ;;  %v702_v39 = vmul.f32 %v701_v8, %v3087_v27  ;;  %v779_v57 = vadd.f32 0.05243302, %v778_v33  ;;  %v816_v40 = vmul.f32 %v815_v9, %v3190_v41 }
 0x120   : > { %v633_v35 = vmul.f32 %v632_v28, %v3020_v60  ;;  %v741_v43 = vadd.f32 0.18741608, %v740_v0  ;;  %v852_v11 = vmul.f32 %v3218_v14, %v3218_v14  ;;  %v672_v30 = vadd.f32 0.4994258, %v671_v32 }
 0x121   : > { %v1109_v17 = vmul.f32 %v1108_v36, %v3043_v29  ;;  %v3233_v22 = vmul.f32 %v663_v62, %v3036_v16  ;;  %v1143_v23 = vadd.f32 1.1283791, %v1142_v63  ;;  %vm3243_vm11 = vcmp.eq.f32.partialorder %v564_v15, 8.507059e+37 }
 0x122   : > { %v3247_v25 = vadd.f32 1.0, %v633_v35  ;;  %v2525_v46 = vpop.eup %2524  ;;  %v563_v16 = vsel %vm3239_vm10, %v3172_v6, %v559_v21  ;;  %v673_v47 = vmul.f32 %v672_v30, %v3054_v49  ;;  %v1146_v31 = vadd.f32 0.001143296, %v1145_v37 }
 0x123   : > { %v1110_v51 = vadd.f32 0.112945676, %v1109_v17  ;;  %v3253_v48 = vadd.f32 1.1283791, %v702_v39  ;;  %v780_v54 = vmul.f32 %v779_v57, %v3154_v42  ;;  %v567_v55 = vor.u32 1.1754944e-38, %v566_v19 }
 0x124   : > { %v596_v56 = vmul.f32 %v2525_v46, %v3209_v5  ;;  %v742_v58 = vmul.f32 %v741_v43, %v3122_v1  ;;  %v817_v59 = vadd.f32 0.0036580483, %v816_v40  ;;  %v3258_v61 = vmin.f32 %v852_v11, 16.0 }
 0x125   : > { %2526 = vrcp.f32 %v3247_v25  ;;  %v568_v6 = vsel %vm3243_vm11, %v567_v55, %v563_v16  ;;  %v3264_v62 = vadd.f32 %v2975_v18, %v514_v38  ;;  %v3266_v3 = vadd.f32 1.0, %v673_v47 }
 0x126   : > { %v597_v49 = vsub.f32 1.0, %v596_v56  ;;  %v606_v4 = vand.u32 2147483648, %v3209_v5  ;;  %v1111_v24 = vmul.f32 %v1110_v51, %v3043_v29  ;;  %v1147_v7 = vmul.f32 %v1146_v31, %v3080_v10 }
 0x127   : > { %v705_v8 = vmul.f32 3.8918573e-05, %v3087_v27  ;;  %vm601_vm12 = vweird.f32 %v2525_v46  ;;  %v604_v9 = vand.u32 2147483647, %v3209_v5  ;;  %2528 = vrcp.f32 %v3266_v3 }
 0x128   : > { %v598_v33 = vmul.f32 %v2525_v46, %v597_v49  ;;  %v3274_v13 = vadd.f32 0.18741608, %v780_v54  ;;  %v818_v63 = vmul.f32 %v817_v59, %v3190_v41  ;;  %v569_v0 = vmul.f32 %v568_v6, %v3178_v12 }
 0x129   : > { %v854_v15 = vmul.f32 2.1237322e-06, %v3258_v61  ;;  %vm600_vm13 = vweird.f32 %v3209_v5  ;;  %v892_v28 = vmul.f32 %v3264_v62, %v3264_v62  ;;  %v1112_v21 = vadd.f32 0.4994258, %v1111_v24 }
 0x12a   : > { %v599_v19 = vadd.f32 %v2525_v46, %v598_v33  ;;  %v3283_v36 = vmul.f32 %v1143_v23, %v3057_v52  ;;  %v3285_v37 = vadd.f32 1.1283791, %v742_v58  ;;  %vm602_vm14 = vmor %vm600_vm13, %vm601_vm12  ;;  %v607_v39 = vor.u32 1.1754944e-38, %v606_v4 }
 0x12b   : > { %v2527_v32 = vpop.eup %2526  ;;  %v1148_v57 = vadd.f32 0.014752088, %v1147_v7  ;;  %vm605_vm15 = vcmp.eq.f32.partialorder %v604_v9, 8.507059e+37  ;;  %v706_v35 = vadd.f32 0.001143296, %v705_v8  ;;  %v2275_v5 = vclamps-f32 %v569_v0, 1.0 }
 0x12c   : > { %v603_v40 = vsel %vm602_vm14, %v2525_v46, %v599_v19  ;;  %v636_v12 = vmul.f32 %v2527_v32, %v3247_v25  ;;  %v819_v43 = vadd.f32 0.05243302, %v818_v63  ;;  %v1113_v30 = vmul.f32 %v1112_v21, %v3043_v29 }
 0x12d   : > { %v608_v11 = vsel %vm605_vm15, %v607_v39, %v603_v40  ;;  %v2529_v17 = vpop.eup %2528  ;;  %v855_v52 = vadd.f32 0.00028619796, %v854_v15  ;;  %v3290_v23 = vmin.f32 %v892_v28, 16.0  ;;  %v1149_v46 = vmul.f32 %v1148_v57, %v3080_v10 }
 0x12e   : > { %v609_v44 = vmul.f32 %v608_v11, %v3187_v20  ;;  %v637_v60 = vsub.f32 1.0, %v636_v12  ;;  %v676_v16 = vmul.f32 %v2529_v17, %v3266_v3  ;;  %v3293_v38 = vadd.f32 1.0, %v1113_v30 }
 0x12f   : > { %v745_v47 = vmul.f32 3.8918573e-05, %v3122_v1  ;;  %vm641_vm0 = vweird.f32 %v2527_v32  ;;  %v707_v29 = vmul.f32 %v706_v35, %v3087_v27  ;;  %vm640_vm1 = vweird.f32 %v3247_v25 }
 0x130   : > { %v2276_v51 = vclamps-f32 %v609_v44, 1.0  ;;  %v638_v31 = vmul.f32 %v2527_v32, %v637_v60  ;;  %v646_v20 = vand.u32 2147483648, %v3247_v25  ;;  %v677_v54 = vsub.f32 1.0, %v676_v16  ;;  %vm3303_vm2 = vmor %vm640_vm1, %vm641_vm0 }
 0x131   : > { %2530 = vrcp.f32 %v3293_v38  ;;  %v644_v58 = vand.u32 2147483647, %v3247_v25  ;;  %v686_v59 = vand.u32 2147483648, %v3266_v3  ;;  %vm681_vm3 = vweird.f32 %v2529_v17  ;;  %v517_v25 = vpop.f32.mrf.mxu0 }
 0x132   : > { %v1189_v55 = vpack.c.bf16 %v2276_v51, %v2275_v5  ;;  %v639_v56 = vadd.f32 %v2527_v32, %v638_v31  ;;  %v678_v49 = vmul.f32 %v2529_v17, %v677_v54  ;;  %v684_v4 = vand.u32 2147483647, %v3266_v3 }
 0x133   : > { %v1150_v24 = vadd.f32 0.112945676, %v1149_v46  ;;  %v820_v7 = vmul.f32 %v819_v43, %v3190_v41  ;;  %v856_v8 = vmul.f32 %v855_v52, %v3258_v61  ;;  %v708_v9 = vadd.f32 0.014752088, %v707_v29 }
 0x134   : > { %1256 = vmatmul.bf16.vlgmr.msra.gmra.mxu1 %v1189_v55  ;;  %v643_v33 = vsel %vm3303_vm2, %v2527_v32, %v639_v56  ;;  %v894_v63 = vmul.f32 2.1237322e-06, %v3290_v23  ;;  %v647_v0 = vor.u32 1.1754944e-38, %v646_v20  ;;  %v679_v15 = vadd.f32 %v2529_v17, %v678_v49 }
 0x135   : > { %vm680_vm4 = vweird.f32 %v3266_v3  ;;  %vm645_vm5 = vcmp.eq.f32.partialorder %v644_v58, 8.507059e+37  ;;  %v687_v19 = vor.u32 1.1754944e-38, %v686_v59  ;;  %v1151_v28 = vmul.f32 %v1150_v24, %v3080_v10 }
 0x136   : > { %vm682_vm6 = vmor %vm680_vm4, %vm681_vm3  ;;  %v709_v21 = vmul.f32 %v708_v9, %v3087_v27  ;;  %v648_v57 = vsel %vm645_vm5, %v647_v0, %v643_v33  ;;  %vm685_vm7 = vcmp.eq.f32.partialorder %v684_v4, 8.507059e+37  ;;  %v746_v32 = vadd.f32 0.001143296, %v745_v47 }
 0x137   : > { %v2531_v39 = vpop.eup %2530  ;;  %v683_v40 = vsel %vm682_vm6, %v2529_v17, %v679_v15  ;;  %v821_v12 = vadd.f32 0.18741608, %v820_v7  ;;  %v857_v35 = vadd.f32 0.0036580483, %v856_v8  ;;  %v895_v11 = vadd.f32 0.00028619796, %v894_v63 }
 0x138   : > { %v688_v43 = vsel %vm685_vm7, %v687_v19, %v683_v40  ;;  %v1116_v5 = vmul.f32 %v2531_v39, %v3293_v38  ;;  %vm1120_vm8 = vweird.f32 %v3293_v38  ;;  %v1152_v30 = vadd.f32 0.4994258, %v1151_v28 }
 0x139   : > { %v689_v3 = vmul.f32 %v688_v43, %v3233_v22  ;;  %v649_v44 = vmul.f32 %v648_v57, %v3197_v26  ;;  %v710_v60 = vadd.f32 0.112945676, %v709_v21  ;;  %v747_v16 = vmul.f32 %v746_v32, %v3122_v1  ;;  %v519_v59 = vpop.f32.mrf.mxu0 }
 0x13a   : > { %v1117_v52 = vsub.f32 1.0, %v1116_v5  ;;  %vm1121_vm9 = vweird.f32 %v2531_v39  ;;  %v1126_v17 = vand.u32 2147483648, %v3293_v38  ;;  %v1153_v46 = vmul.f32 %v1152_v30, %v3080_v10 }
 0x13b   : > { %v785_v47 = vmul.f32 3.8918573e-05, %v3154_v42  ;;  %v2278_v51 = vclamps-f32 %v689_v3, 1.0  ;;  %v711_v22 = vmul.f32 %v710_v60, %v3087_v27  ;;  %v748_v29 = vadd.f32 0.014752088, %v747_v16  ;;  %vm3333_vm10 = vmor %vm1120_vm8, %vm1121_vm9 }
 0x13c   : > { %v1118_v31 = vmul.f32 %v2531_v39, %v1117_v52  ;;  %v782_v20 = vmul.f32 %v3274_v13, %v3154_v42  ;;  %v822_v26 = vmul.f32 %v821_v12, %v3190_v41  ;;  %v1124_v54 = vand.u32 2147483647, %v3293_v38 }
 0x13d   : > { %v3329_v55 = vadd.f32 1.0, %v1153_v46  ;;  %v2277_v56 = vclamps-f32 %v649_v44, 1.0  ;;  %v712_v6 = vadd.f32 0.4994258, %v711_v22  ;;  %v749_v49 = vmul.f32 %v748_v29, %v3122_v1 }
 0x13e   : > { %v1119_v58 = vadd.f32 %v2531_v39, %v1118_v31  ;;  %v858_v13 = vmul.f32 %v857_v35, %v3258_v61  ;;  %v3340_v4 = vadd.f32 %v2975_v18, %v517_v25  ;;  %v786_v24 = vadd.f32 0.001143296, %v785_v47 }
 0x13f   : > { %2532 = vrcp.f32 %v3329_v55  ;;  %v896_v7 = vmul.f32 %v895_v11, %v3290_v23  ;;  %v1190_v8 = vpack.c.bf16 %v2278_v51, %v2277_v56  ;;  %v1127_v38 = vor.u32 1.1754944e-38, %v1126_v17 }
 0x140   : > { %v713_v33 = vmul.f32 %v712_v6, %v3087_v27  ;;  %v1123_v9 = vsel %vm3333_vm10, %v2531_v39, %v1119_v58  ;;  %vm1125_vm11 = vcmp.eq.f32.partialorder %v1124_v54, 8.507059e+37  ;;  %v3348_v63 = vadd.f32 %v2975_v18, %v519_v59 }
 0x141   : > { %v750_v0 = vadd.f32 0.112945676, %v749_v49  ;;  %v3352_v25 = vmul.f32 %v3253_v48, %v3072_v2  ;;  %v3356_v15 = vmul.f32 %v3285_v37, %v3093_v34  ;;  %v3358_v19 = vadd.f32 1.1283791, %v782_v20 }
 0x142   : > { %v3360_v28 = vadd.f32 1.0, %v713_v33  ;;  %v3362_v27 = vadd.f32 1.1283791, %v822_v26  ;;  %v787_v18 = vmul.f32 %v786_v24, %v3154_v42  ;;  %v825_v39 = vmul.f32 3.8918573e-05, %v3190_v41 }
 0x143   : > { %v751_v21 = vmul.f32 %v750_v0, %v3122_v1  ;;  %v859_v57 = vadd.f32 0.05243302, %v858_v13  ;;  %v1128_v2 = vsel %vm1125_vm11, %v1127_v38, %v1123_v9  ;;  %v865_v34 = vmul.f32 3.8918573e-05, %v3258_v61 }
 0x144   : > { %1261 = vmatmul.bf16.gmra.mxu1 %v1190_v8  ;;  %2534 = vrcp.f32 %v3360_v28  ;;  %v897_v37 = vadd.f32 0.0036580483, %v896_v7  ;;  %v932_v40 = vmul.f32 %v3340_v4, %v3340_v4  ;;  %v972_v32 = vmul.f32 %v3348_v63, %v3348_v63 }
 0x145   : > { %v2533_v48 = vpop.eup %2532  ;;  %v752_v12 = vadd.f32 0.4994258, %v751_v21  ;;  %vm1160_vm12 = vweird.f32 %v3329_v55  ;;  %v1164_v43 = vand.u32 2147483647, %v3329_v55  ;;  %v788_v5 = vadd.f32 0.014752088, %v787_v18 }
 0x146   : > { %v1156_v35 = vmul.f32 %v2533_v48, %v3329_v55  ;;  %v1129_v11 = vmul.f32 %v1128_v2, %v3205_v45  ;;  %v1166_v3 = vand.u32 2147483648, %v3329_v55  ;;  %v826_v44 = vadd.f32 0.001143296, %v825_v39 }
 0x147   : > { %v753_v30 = vmul.f32 %v752_v12, %v3122_v1  ;;  %vm1161_vm13 = vweird.f32 %v2533_v48  ;;  %v789_v60 = vmul.f32 %v788_v5, %v3154_v42  ;;  %v866_v16 = vadd.f32 0.001143296, %v865_v34 }
 0x148   : > { %v1157_v52 = vsub.f32 1.0, %v1156_v35  ;;  %v3381_v17 = vmul.f32 %v859_v57, %v3258_v61  ;;  %v3383_v46 = vmin.f32 %v932_v40, 16.0  ;;  %v827_v51 = vmul.f32 %v826_v44, %v3190_v41  ;;  %vm3394_vm14 = vmor %vm1160_vm12, %vm1161_vm13 }
 0x149   : > { %v3385_v47 = vadd.f32 1.0, %v753_v30  ;;  %v3389_v31 = vmul.f32 %v897_v37, %v3290_v23  ;;  %v790_v22 = vadd.f32 0.112945676, %v789_v60  ;;  %v867_v29 = vmul.f32 %v866_v16, %v3258_v61 }
 0x14a   : > { %v2535_v45 = vpop.eup %2534  ;;  %v1158_v1 = vmul.f32 %v2533_v48, %v1157_v52  ;;  %v1167_v26 = vor.u32 1.1754944e-38, %v1166_v3  ;;  %v3398_v54 = vmin.f32 %v972_v32, 16.0  ;;  %v2289_v58 = vclamps-f32 %v1129_v11, 1.0 }
 0x14b   : > { %v716_v56 = vmul.f32 %v2535_v45, %v3360_v28  ;;  %2536 = vrcp.f32 %v3385_v47  ;;  %vm1165_vm15 = vcmp.eq.f32.partialorder %v1164_v43, 8.507059e+37  ;;  %v905_v59 = vmul.f32 3.8918573e-05, %v3290_v23 }
 0x14c   : > { %v1159_v10 = vadd.f32 %v2533_v48, %v1158_v1  ;;  %v791_v49 = vmul.f32 %v790_v22, %v3154_v42  ;;  %v828_v55 = vadd.f32 0.014752088, %v827_v51  ;;  %v868_v13 = vadd.f32 0.014752088, %v867_v29 }
 0x14d   : > { %v717_v6 = vsub.f32 1.0, %v716_v56  ;;  %vm721_vm0 = vweird.f32 %v2535_v45  ;;  %v726_v7 = vand.u32 2147483648, %v3360_v28  ;;  %v945_v8 = vmul.f32 3.8918573e-05, %v3383_v46 }
 0x14e   : > { %v1163_v24 = vsel %vm3394_vm14, %v2533_v48, %v1159_v10  ;;  %v792_v9 = vadd.f32 0.4994258, %v791_v49  ;;  %v829_v0 = vmul.f32 %v828_v55, %v3190_v41  ;;  %vm720_vm1 = vweird.f32 %v3360_v28 }
 0x14f   : > { %v1168_v38 = vsel %vm1165_vm15, %v1167_v26, %v1163_v24  ;;  %v718_v33 = vmul.f32 %v2535_v45, %v717_v6  ;;  %v869_v18 = vmul.f32 %v868_v13, %v3258_v61  ;;  %v906_v39 = vadd.f32 0.001143296, %v905_v59  ;;  %vm3415_vm2 = vmor %vm720_vm1, %vm721_vm0 }
 0x150   : > { %v1169_v21 = vmul.f32 %v1168_v38, %v3283_v36  ;;  %v724_v34 = vand.u32 2147483647, %v3360_v28  ;;  %v793_v48 = vmul.f32 %v792_v9, %v3154_v42  ;;  %v830_v37 = vadd.f32 0.112945676, %v829_v0 }
 0x151   : > { %v2537_v57 = vpop.eup %2536  ;;  %v719_v2 = vadd.f32 %v2535_v45, %v718_v33  ;;  %v727_v12 = vor.u32 1.1754944e-38, %v726_v7  ;;  %v946_v35 = vadd.f32 0.001143296, %v945_v8  ;;  %v870_v11 = vadd.f32 0.112945676, %v869_v18 }
 0x152   : > { %v2290_v40 = vclamps-f32 %v1169_v21, 1.0  ;;  %v756_v36 = vmul.f32 %v2537_v57, %v3385_v47  ;;  %v3422_v5 = vadd.f32 1.0, %v793_v48  ;;  %v831_v28 = vmul.f32 %v830_v37, %v3190_v41 }
 0x153   : > { %v723_v43 = vsel %vm3415_vm2, %v2535_v45, %v719_v2  ;;  %v766_v30 = vand.u32 2147483648, %v3385_v47  ;;  %v907_v44 = vmul.f32 %v906_v39, %v3290_v23  ;;  %vm725_vm3 = vcmp.eq.f32.partialorder %v724_v34, 8.507059e+37 }
 0x154   : > { %v1196_v42 = vpack.c.bf16 %v2290_v40, %v2289_v58  ;;  %v757_v3 = vsub.f32 1.0, %v756_v36  ;;  %vm761_vm4 = vweird.f32 %v2537_v57  ;;  %v764_v52 = vand.u32 2147483647, %v3385_v47 }
 0x155   : > { %2538 = vrcp.f32 %v3422_v5  ;;  %v728_v60 = vsel %vm725_vm3, %v727_v12, %v723_v43  ;;  %v832_v51 = vadd.f32 0.4994258, %v831_v28  ;;  %v871_v45 = vmul.f32 %v870_v11, %v3258_v61 }
 0x156   : > { %1291 = vmatmul.bf16.gmra.mxu3 %v1196_v42  ;;  %v758_v16 = vmul.f32 %v2537_v57, %v757_v3  ;;  %v934_v1 = vmul.f32 2.1237322e-06, %v3383_v46  ;;  %vm760_vm5 = vweird.f32 %v3385_v47  ;;  %v908_v22 = vadd.f32 0.014752088, %v907_v44 }
 0x157   : > { %v947_v29 = vmul.f32 %v946_v35, %v3383_v46  ;;  %v767_v26 = vor.u32 1.1754944e-38, %v766_v30  ;;  %v833_v56 = vmul.f32 %v832_v51, %v3190_v41  ;;  %v872_v58 = vadd.f32 0.4994258, %v871_v45  ;;  %vm762_vm6 = vmor %vm760_vm5, %vm761_vm4 }
 0x158   : > { %v759_v20 = vadd.f32 %v2537_v57, %v758_v16  ;;  %v729_v10 = vmul.f32 %v728_v60, %v3352_v25  ;;  %v909_v59 = vmul.f32 %v908_v22, %v3290_v23  ;;  %v985_v49 = vmul.f32 3.8918573e-05, %v3398_v54 }
 0x159   : > { %v948_v6 = vadd.f32 0.014752088, %v947_v29  ;;  %vm765_vm7 = vcmp.eq.f32.partialorder %v764_v52, 8.507059e+37  ;;  %v3438_v47 = vadd.f32 1.0, %v833_v56  ;;  %v873_v13 = vmul.f32 %v872_v58, %v3258_v61 }
 0x15a   : > { %v763_v55 = vsel %vm762_vm6, %v2537_v57, %v759_v20  ;;  %v899_v7 = vadd.f32 0.05243302, %v3389_v31  ;;  %v910_v8 = vadd.f32 0.112945676, %v909_v59  ;;  %v974_v38 = vmul.f32 2.1237322e-06, %v3398_v54 }
 0x15b   : > { %v2539_v24 = vpop.eup %2538  ;;  %v768_v41 = vsel %vm765_vm7, %v767_v26, %v763_v55  ;;  %v949_v25 = vmul.f32 %v948_v6, %v3383_v46  ;;  %2540 = vrcp.f32 %v3438_v47  ;;  %v935_v0 = vadd.f32 0.00028619796, %v934_v1 }
 0x15c   : > { %v769_v33 = vmul.f32 %v768_v41, %v3356_v15  ;;  %v796_v9 = vmul.f32 %v2539_v24, %v3422_v5  ;;  %v2279_v21 = vclamps-f32 %v729_v10, 1.0  ;;  %v3447_v18 = vadd.f32 1.0, %v873_v13 }
 0x15d   : > { %v986_v39 = vadd.f32 0.001143296, %v985_v49  ;;  %v911_v31 = vmul.f32 %v910_v8, %v3290_v23  ;;  %v950_v34 = vadd.f32 0.112945676, %v949_v25  ;;  %v784_v48 = vmul.f32 %v3358_v19, %v3107_v53 }
 0x15e   : > { %v2280_v57 = vclamps-f32 %v769_v33, 1.0  ;;  %v797_v2 = vsub.f32 1.0, %v796_v9  ;;  %v824_v15 = vmul.f32 %v3362_v27, %v3164_v50  ;;  %v900_v37 = vmul.f32 %v899_v7, %v3290_v23 }
 0x15f   : > { %2542 = vrcp.f32 %v3447_v18  ;;  %v975_v40 = vadd.f32 0.00028619796, %v974_v38  ;;  %v806_v36 = vand.u32 2147483648, %v3422_v5  ;;  %vm801_vm8 = vweird.f32 %v2539_v24 }
 0x160   : > { %v1191_v32 = vpack.c.bf16 %v2280_v57, %v2279_v21  ;;  %v798_v12 = vmul.f32 %v2539_v24, %v797_v2  ;;  %v912_v35 = vadd.f32 0.4994258, %v911_v31  ;;  %v951_v43 = vmul.f32 %v950_v34, %v3383_v46 }
 0x161   : > { %v987_v28 = vmul.f32 %v986_v39, %v3398_v54  ;;  %v2541_v11 = vpop.eup %2540  ;;  %v861_v53 = vadd.f32 0.18741608, %v3381_v17  ;;  %v936_v50 = vmul.f32 %v935_v0, %v3383_v46  ;;  %vm800_vm9 = vweird.f32 %v3422_v5 }
 0x162   : > { %1266 = vmatmul.bf16.gmra.mxu1 %v1191_v32  ;;  %v799_v19 = vadd.f32 %v2539_v24, %v798_v12  ;;  %v804_v27 = vand.u32 2147483647, %v3422_v5  ;;  %v836_v42 = vmul.f32 %v2541_v11, %v3438_v47  ;;  %v913_v3 = vmul.f32 %v912_v35, %v3290_v23  ;;  %vm3467_vm10 = vmor %vm800_vm9, %vm801_vm8 }
 0x163   : > { %v952_v30 = vadd.f32 0.4994258, %v951_v43  ;;  %v901_v44 = vadd.f32 0.18741608, %v900_v37  ;;  %v976_v52 = vmul.f32 %v975_v40, %v3398_v54  ;;  %v807_v17 = vor.u32 1.1754944e-38, %v806_v36 }
 0x164   : > { %v988_v16 = vadd.f32 0.014752088, %v987_v28  ;;  %v803_v5 = vsel %vm3467_vm10, %v2539_v24, %v799_v19  ;;  %v837_v45 = vsub.f32 1.0, %v836_v42  ;;  %v3475_v1 = vadd.f32 1.0, %v913_v3 }
 0x165   : > { %v3471_v51 = vpop.eup %2542  ;;  %v953_v22 = vmul.f32 %v952_v30, %v3383_v46  ;;  %v844_v29 = vand.u32 2147483647, %v3438_v47  ;;  %v846_v20 = vand.u32 2147483648, %v3438_v47  ;;  %vm805_vm11 = vcmp.eq.f32.partialorder %v804_v27, 8.507059e+37 }
 0x166   : > { %v876_v26 = vmul.f32 %v3471_v51, %v3447_v18  ;;  %v989_v56 = vmul.f32 %v988_v16, %v3398_v54  ;;  %v838_v58 = vmul.f32 %v2541_v11, %v837_v45  ;;  %vm841_vm12 = vweird.f32 %v2541_v11 }
 0x167   : > { %2544 = vrcp.f32 %v3475_v1  ;;  %v977_v10 = vadd.f32 0.0036580483, %v976_v52  ;;  %v808_v59 = vsel %vm805_vm11, %v807_v17, %v803_v5  ;;  %v3484_v49 = vadd.f32 1.0, %v953_v22 }
 0x168   : > { %v877_v6 = vsub.f32 1.0, %v876_v26  ;;  %v937_v55 = vadd.f32 0.0036580483, %v936_v50  ;;  %v839_v13 = vadd.f32 %v2541_v11, %v838_v58  ;;  %vm840_vm13 = vweird.f32 %v3438_v47 }
 0x169   : > { %v990_v24 = vadd.f32 0.112945676, %v989_v56  ;;  %v902_v7 = vmul.f32 %v901_v44, %v3290_v23  ;;  %vm842_vm14 = vmor %vm840_vm13, %vm841_vm12  ;;  %vm845_vm15 = vcmp.eq.f32.partialorder %v844_v29, 8.507059e+37  ;;  %v847_v41 = vor.u32 1.1754944e-38, %v846_v20 }
 0x16a   : > { %2546 = vrcp.f32 %v3484_v49  ;;  %v809_v8 = vmul.f32 %v808_v59, %v784_v48  ;;  %v843_v25 = vsel %vm842_vm14, %v2541_v11, %v839_v13  ;;  %v878_v38 = vmul.f32 %v3471_v51, %v877_v6 }
 0x16b   : > { %v991_v33 = vmul.f32 %v990_v24, %v3398_v54  ;;  %v978_v9 = vmul.f32 %v977_v10, %v3398_v54  ;;  %v848_v0 = vsel %vm845_vm15, %v847_v41, %v843_v25  ;;  %v862_v47 = vmul.f32 %v861_v53, %v3258_v61 }
 0x16c   : > { %v849_v39 = vmul.f32 %v848_v0, %v824_v15  ;;  %v903_v23 = vadd.f32 1.1283791, %v902_v7  ;;  %v938_v2 = vmul.f32 %v937_v55, %v3383_v46  ;;  %vm881_vm0 = vweird.f32 %v3471_v51 }
 0x16d   : > { %v2545_v21 = vpop.eup %2544  ;;  %v992_v57 = vadd.f32 0.4994258, %v991_v33  ;;  %v2281_v34 = vclamps-f32 %v809_v8, 1.0  ;;  %v879_v37 = vadd.f32 %v3471_v51, %v878_v38  ;;  %v979_v12 = vadd.f32 0.05243302, %v978_v9 }
 0x16e   : > { %v916_v31 = vmul.f32 %v2545_v21, %v3475_v1  ;;  %v2282_v48 = vclamps-f32 %v849_v39, 1.0  ;;  %vm880_vm1 = vweird.f32 %v3447_v18  ;;  %v886_v61 = vand.u32 2147483648, %v3447_v18 }
 0x16f   : > { %v993_v40 = vmul.f32 %v992_v57, %v3398_v54  ;;  %v884_v35 = vand.u32 2147483647, %v3447_v18  ;;  %v926_v43 = vand.u32 2147483648, %v3475_v1  ;;  %v939_v11 = vadd.f32 0.05243302, %v938_v2  ;;  %vm3506_vm2 = vmor %vm880_vm1, %vm881_vm0 }
 0x170   : > { %v3498_v32 = vpop.eup %2546  ;;  %v917_v15 = vsub.f32 1.0, %v916_v31  ;;  %v1192_v36 = vpack.c.bf16 %v2282_v48, %v2281_v34  ;;  %vm921_vm3 = vweird.f32 %v2545_v21  ;;  %v924_v19 = vand.u32 2147483647, %v3475_v1 }
 0x171   : > { %v994_v28 = vadd.f32 1.0, %v993_v40  ;;  %v863_v27 = vadd.f32 1.1283791, %v862_v47  ;;  %v883_v18 = vsel %vm3506_vm2, %v3471_v51, %v879_v37  ;;  %v956_v42 = vmul.f32 %v3498_v32, %v3484_v49  ;;  %v3535_v40 = vld [vmem:[%s4133_s4] ss:$0 sm:$0xff] }
 0x172   : > { %v918_v50 = vmul.f32 %v2545_v21, %v917_v15  ;;  %1271 = vmatmul.bf16.gmra.mxu1 %v1192_v36  ;;  %v887_v3 = vor.u32 1.1754944e-38, %v886_v61  ;;  %vm920_vm4 = vweird.f32 %v3475_v1  ;;  %v904_v44 = vmul.f32 %v903_v23, %v3264_v62 }
 0x173   : > { %2548 = vrcp.f32 %v994_v28  ;;  %v980_v52 = vmul.f32 %v979_v12, %v3398_v54  ;;  %vm885_vm5 = vcmp.eq.f32.partialorder %v884_v35, 8.507059e+37  ;;  %vm922_vm6 = vmor %vm920_vm4, %vm921_vm3  ;;  %v927_v60 = vor.u32 1.1754944e-38, %v926_v43 }
 0x174   : > { %v919_v30 = vadd.f32 %v2545_v21, %v918_v50  ;;  %v940_v17 = vmul.f32 %v939_v11, %v3383_v46  ;;  %v888_v16 = vsel %vm885_vm5, %v887_v3, %v883_v18  ;;  %vm925_vm7 = vcmp.eq.f32.partialorder %v924_v19, 8.507059e+37 }
 0x175   : > { %v864_v51 = vmul.f32 %v863_v27, %v3218_v14  ;;  %v957_v22 = vsub.f32 1.0, %v956_v42  ;;  %v981_v26 = vadd.f32 0.18741608, %v980_v52  ;;  %v1006_v14 = vand.u32 2147483648, %v994_v28 }
 0x176   : > { %v923_v5 = vsel %vm922_vm6, %v2545_v21, %v919_v30  ;;  %v941_v56 = vadd.f32 0.18741608, %v940_v17  ;;  %vm961_vm9 = vweird.f32 %v3498_v32  ;;  %v1004_v8 = vand.u32 2147483647, %v994_v28 }
 0x177   : > { %v928_v45 = vsel %vm925_vm7, %v927_v60, %v923_v5  ;;  %v889_v1 = vmul.f32 %v888_v16, %v864_v51  ;;  %v958_v10 = vmul.f32 %v3498_v32, %v957_v22  ;;  %v982_v6 = vmul.f32 %v981_v26, %v3398_v54  ;;  %v2408_v51 = vld [vmem:[#allocation8 + $0x38] sm:$0xff] }
 0x178   : > { %v929_v29 = vmul.f32 %v928_v45, %v904_v44  ;;  %v942_v13 = vmul.f32 %v941_v56, %v3383_v46  ;;  %v966_v25 = vand.u32 2147483648, %v3484_v49  ;;  %vm1000_vm10 = vweird.f32 %v994_v28  ;;  %2013 = vmatpush.bf16.msra.mxu2 %v2408_v51  ;;  %2426 = vmatpush.bf16.msra.mxu3 %v2408_v51 }
 0x179   : > { %v2549_v20 = vpop.eup %2548  ;;  %v2283_v55 = vclamps-f32 %v889_v1, 1.0  ;;  %v959_v41 = vadd.f32 %v3498_v32, %v958_v10  ;;  %v983_v33 = vadd.f32 1.1283791, %v982_v6  ;;  %vm960_vm11 = vweird.f32 %v3484_v49 }
 0x17a   : > { %v996_v62 = vmul.f32 %v2549_v20, %v994_v28  ;;  %v2284_v58 = vclamps-f32 %v929_v29, 1.0  ;;  %vm1001_vm8 = vweird.f32 %v2549_v20  ;;  %v964_v54 = vand.u32 2147483647, %v3484_v49  ;;  %vm962_vm13 = vmor %vm960_vm11, %vm961_vm9 }
 0x17b   : > { %vm1002_vm12 = vmor %vm1000_vm10, %vm1001_vm8  ;;  %v1007_v9 = vor.u32 1.1754944e-38, %v1006_v14  ;;  %v943_v0 = vadd.f32 1.1283791, %v942_v13  ;;  %v963_v21 = vsel %vm962_vm13, %v3498_v32, %v959_v41  ;;  %vm1005_vm14 = vcmp.eq.f32.partialorder %v1004_v8, 8.507059e+37  ;;  %v2407_v13 = vld [vmem:[#allocation8 + $0x30] sm:$0xff] }
 0x17c   : > { %v997_v59 = vsub.f32 1.0, %v996_v62  ;;  %v1193_v7 = vpack.c.bf16 %v2284_v58, %v2283_v55  ;;  %v967_v47 = vor.u32 1.1754944e-38, %v966_v25  ;;  %v984_v57 = vmul.f32 %v983_v33, %v3348_v63  ;;  %2014 = vmatpush.bf16.msra.mxu2 %v2407_v13  ;;  %2427 = vmatpush.bf16.msra.mxu3 %v2407_v13 }
 0x17d   : > { %vm965_vm15 = vcmp.eq.f32.partialorder %v964_v54, 8.507059e+37  ;;  %v944_v2 = vmul.f32 %v943_v0, %v3340_v4 }
 0x17e   : > { %v998_v24 = vmul.f32 %v2549_v20, %v997_v59  ;;  %v968_v23 = vsel %vm965_vm15, %v967_v47, %v963_v21  ;;  %v2406_v21 = vld [vmem:[#allocation8 + $0x28] sm:$0xff] }
 0x17f   : > { %v969_v34 = vmul.f32 %v968_v23, %v944_v2 }
 0x180   : > { %v999_v38 = vadd.f32 %v2549_v20, %v998_v24  ;;  %2015 = vmatpush.bf16.msra.mxu2 %v2406_v21  ;;  %2428 = vmatpush.bf16.msra.mxu3 %v2406_v21  ;;  %v2401_v21 = vld [vmem:[#allocation8] sm:$0xff] }
 0x181   : > { %v2285_v48 = vclamps-f32 %v969_v34, 1.0 }
 0x182   : > { %v1003_v46 = vsel %vm1002_vm12, %v2549_v20, %v999_v38  ;;  %1276 = vmatmul.bf16.gmra.mxu1 %v1193_v7 }
 0x183   : > { %v1008_v39 = vsel %vm1005_vm14, %v1007_v9, %v1003_v46 }
 0x184   : > { %v1009_v31 = vmul.f32 %v1008_v39, %v984_v57 }
 0x186   : > { %v2286_v49 = vclamps-f32 %v1009_v31, 1.0 }
 0x188   : > { %v1194_v37 = vpack.c.bf16 %v2286_v49, %v2285_v48  ;;  %v2405_v49 = vld [vmem:[#allocation8 + $0x20] sm:$0xff] }
 0x189   : > { %2016 = vmatpush.bf16.msra.mxu2 %v2405_v49  ;;  %2429 = vmatpush.bf16.msra.mxu3 %v2405_v49 }
 0x192   : > { %1281 = vmatmul.bf16.gmra.mxu1 %v1194_v37 }
 0x199   : > { %v1287_v32 = vpop.f32.mrf.mxu3 }
 0x19a   : > { %v3538_v12 = vadd.f32 %v3535_v40, %v1287_v32 }
 0x19c   : > { %v1777_v61 = vmul.f32 %v3538_v12, %v3538_v12 }
 0x19e   : > { %v3545_v15 = vmin.f32 %v1777_v61, 16.0 }
 0x1a0   : > { %v1779_v35 = vmul.f32 2.1237322e-06, %v3545_v15  ;;  %v1790_v43 = vmul.f32 3.8918573e-05, %v3545_v15 }
 0x1a1   : > { %v1289_v11 = vpop.f32.mrf.mxu3 }
 0x1a2   : > { %v1780_v53 = vadd.f32 0.00028619796, %v1779_v35  ;;  %v1791_v50 = vadd.f32 0.001143296, %v1790_v43  ;;  %v3554_v19 = vadd.f32 %v3535_v40, %v1289_v11  ;;  %v2404_v11 = vld [vmem:[#allocation8 + $0x18] sm:$0xff] }
 0x1a3   : > { %2017 = vmatpush.bf16.msra.mxu2 %v2404_v11  ;;  %2430 = vmatpush.bf16.msra.mxu3 %v2404_v11 }
 0x1a4   : > { %v1781_v3 = vmul.f32 %v1780_v53, %v3545_v15  ;;  %v1792_v30 = vmul.f32 %v1791_v50, %v3545_v15  ;;  %v1817_v44 = vmul.f32 %v3554_v19, %v3554_v19 }
 0x1a6   : > { %v1793_v16 = vadd.f32 0.014752088, %v1792_v30  ;;  %v3565_v5 = vmin.f32 %v1817_v44, 16.0  ;;  %v1782_v29 = vadd.f32 0.0036580483, %v1781_v3 }
 0x1a8   : > { %v1794_v20 = vmul.f32 %v1793_v16, %v3545_v15  ;;  %v1819_v26 = vmul.f32 2.1237322e-06, %v3565_v5  ;;  %v1830_v1 = vmul.f32 3.8918573e-05, %v3565_v5  ;;  %v1783_v24 = vmul.f32 %v1782_v29, %v3545_v15 }
 0x1aa   : > { %v1795_v10 = vadd.f32 0.112945676, %v1794_v20  ;;  %v1820_v59 = vadd.f32 0.00028619796, %v1819_v26  ;;  %v1831_v55 = vadd.f32 0.001143296, %v1830_v1 }
 0x1ab   : > { %v1784_v47 = vadd.f32 0.05243302, %v1783_v24  ;;  %v2402_v24 = vld [vmem:[#allocation8 + $0x8] sm:$0xff] }
 0x1ac   : > { %v1796_v14 = vmul.f32 %v1795_v10, %v3545_v15  ;;  %v1821_v41 = vmul.f32 %v1820_v59, %v3565_v5  ;;  %v1832_v33 = vmul.f32 %v1831_v55, %v3565_v5 }
 0x1ae   : > { %v1797_v46 = vadd.f32 0.4994258, %v1796_v14  ;;  %v1822_v9 = vadd.f32 0.0036580483, %v1821_v41  ;;  %v1833_v0 = vadd.f32 0.014752088, %v1832_v33 }
 0x1b0   : > { %v1798_v39 = vmul.f32 %v1797_v46, %v3545_v15  ;;  %v1834_v31 = vmul.f32 %v1833_v0, %v3565_v5  ;;  %v1823_v37 = vmul.f32 %v1822_v9, %v3565_v5 }
 0x1b1   : > { %v1257_v63 = vpop.f32.mrf.mxu1 }
 0x1b2   : > { %v3543_v4 = vadd.f32 %v3535_v40, %v1257_v63  ;;  %v3590_v34 = vadd.f32 1.0, %v1798_v39  ;;  %v1835_v32 = vadd.f32 0.112945676, %v1834_v31  ;;  %v1785_v63 = vmul.f32 %v1784_v47, %v3545_v15 }
 0x1b4   : > { %v1297_v36 = vmul.f32 %v3543_v4, %v3543_v4  ;;  %2550 = vrcp.f32 %v3590_v34  ;;  %v1836_v43 = vmul.f32 %v1835_v32, %v3565_v5  ;;  %v1809_v33 = vand.u32 2147483647, %v3590_v34 }
 0x1b5   : > { %v1811_v39 = vand.u32 2147483648, %v3590_v34  ;;  %vm1805_vm1 = vweird.f32 %v3590_v34 }
 0x1b6   : > { %v3551_v28 = vmin.f32 %v1297_v36, 16.0  ;;  %v1837_v3 = vadd.f32 0.4994258, %v1836_v43  ;;  %vm3643_vm3 = vcmp.eq.f32.partialorder %v1809_v33, 8.507059e+37 }
 0x1b7   : > { %v1812_v11 = vor.u32 1.1754944e-38, %v1811_v39 }
 0x1b8   : > { %v1299_v27 = vmul.f32 2.1237322e-06, %v3551_v28  ;;  %v1310_v18 = vmul.f32 3.8918573e-05, %v3551_v28  ;;  %v1838_v16 = vmul.f32 %v1837_v3, %v3565_v5 }
 0x1b9   : > { %v1259_v42 = vpop.f32.mrf.mxu1 }
 0x1ba   : > { %v3563_v52 = vadd.f32 %v3535_v40, %v1259_v42  ;;  %v1311_v60 = vadd.f32 0.001143296, %v1310_v18  ;;  %v1300_v17 = vadd.f32 0.00028619796, %v1299_v27  ;;  %v1824_v27 = vadd.f32 0.05243302, %v1823_v37 }
 0x1bb   : > { %v1786_v42 = vadd.f32 0.18741608, %v1785_v63 }
 0x1bc   : > { %v1337_v45 = vmul.f32 %v3563_v52, %v3563_v52  ;;  %v1312_v22 = vmul.f32 %v1311_v60, %v3551_v28  ;;  %v1301_v58 = vmul.f32 %v1300_v17, %v3551_v28  ;;  %v3603_v17 = vpop.eup %2550  ;;  %v1825_v26 = vmul.f32 %v1824_v27, %v3565_v5 }
 0x1bd   : > { %v1801_v20 = vmul.f32 %v3603_v17, %v3590_v34  ;;  %vm1806_vm0 = vweird.f32 %v3603_v17 }
 0x1be   : > { %v3573_v56 = vmin.f32 %v1337_v45, 16.0  ;;  %v1313_v62 = vadd.f32 0.014752088, %v1312_v22  ;;  %v1302_v54 = vadd.f32 0.0036580483, %v1301_v58  ;;  %v2403_v45 = vld [vmem:[#allocation8 + $0x10] sm:$0xff]  ;;  %vm3639_vm2 = vmor %vm1805_vm1, %vm1806_vm0 }
 0x1bf   : > { %v3615_v58 = vadd.f32 1.0, %v1838_v16  ;;  %2018 = vmatpush.bf16.msra.mxu2 %v2403_v45  ;;  %2431 = vmatpush.bf16.msra.mxu3 %v2403_v45 }
 0x1c0   : > { %v1339_v6 = vmul.f32 2.1237322e-06, %v3573_v56  ;;  %v1314_v8 = vmul.f32 %v1313_v62, %v3551_v28  ;;  %v1303_v48 = vmul.f32 %v1302_v54, %v3551_v28  ;;  %v1350_v53 = vmul.f32 3.8918573e-05, %v3573_v56 }
 0x1c1   : > { %v1262_v7 = vpop.f32.mrf.mxu1  ;;  %v1787_v62 = vmul.f32 %v1786_v42, %v3545_v15  ;;  %2552 = vrcp.f32 %v3615_v58  ;;  %v1826_v15 = vadd.f32 0.18741608, %v1825_v26  ;;  %v1851_v27 = vand.u32 2147483648, %v3615_v58 }
 0x1c2   : > { %v1340_v25 = vadd.f32 0.00028619796, %v1339_v6  ;;  %v3582_v38 = vadd.f32 %v3535_v40, %v1262_v7  ;;  %v1315_v57 = vadd.f32 0.112945676, %v1314_v8  ;;  %v1304_v50 = vadd.f32 0.05243302, %v1303_v48 }
 0x1c3   : > { %v1351_v29 = vadd.f32 0.001143296, %v1350_v53  ;;  %v1802_v6 = vsub.f32 1.0, %v1801_v20  ;;  %v1788_v8 = vadd.f32 1.1283791, %v1787_v62  ;;  %2019 = vmatpush.bf16.msra.mxu2 %v2402_v24  ;;  %2432 = vmatpush.bf16.msra.mxu3 %v2402_v24  ;;  %vm1845_vm5 = vweird.f32 %v3615_v58 }
 0x1c4   : > { %v1341_v23 = vmul.f32 %v1340_v25, %v3573_v56  ;;  %v1377_v2 = vmul.f32 %v3582_v38, %v3582_v38  ;;  %v1316_v61 = vmul.f32 %v1315_v57, %v3551_v28  ;;  %v1305_v1 = vmul.f32 %v1304_v50, %v3551_v28 }
 0x1c5   : > { %v1352_v14 = vmul.f32 %v1351_v29, %v3573_v56  ;;  %v1803_v7 = vmul.f32 %v3603_v17, %v1802_v6  ;;  %v1827_v57 = vmul.f32 %v1826_v15, %v3565_v5  ;;  %v1789_v31 = vmul.f32 %v1788_v8, %v3538_v12 }
 0x1c6   : > { %v1342_v36 = vadd.f32 0.0036580483, %v1341_v23  ;;  %v3597_v35 = vmin.f32 %v1377_v2, 16.0  ;;  %v1317_v30 = vadd.f32 0.4994258, %v1316_v61  ;;  %v1852_v62 = vor.u32 1.1754944e-38, %v1851_v27 }
 0x1c7   : > { %v1306_v41 = vadd.f32 0.18741608, %v1305_v1  ;;  %v1804_v9 = vadd.f32 %v3603_v17, %v1803_v7  ;;  %v1353_v47 = vadd.f32 0.014752088, %v1352_v14  ;;  %v2553_v23 = vpop.eup %2552  ;;  %2020 = vmatpush.bf16.msra.mxu2 %v2401_v21  ;;  %2433 = vmatpush.bf16.msra.mxu3 %v2401_v21  ;;  %v1828_v53 = vadd.f32 1.1283791, %v1827_v57 }
 0x1c8   : > { %v1343_v44 = vmul.f32 %v1342_v36, %v3573_v56  ;;  %v1379_v60 = vmul.f32 2.1237322e-06, %v3597_v35  ;;  %v1318_v22 = vmul.f32 %v1317_v30, %v3551_v28  ;;  %v1390_v46 = vmul.f32 3.8918573e-05, %v3597_v35 }
 0x1c9   : > { %v1264_v18 = vpop.f32.mrf.mxu1  ;;  %v1307_v2 = vmul.f32 %v1306_v41, %v3551_v28  ;;  %v1354_v48 = vmul.f32 %v1353_v47, %v3573_v56  ;;  %v1841_v5 = vmul.f32 %v2553_v23, %v3615_v58  ;;  %v1808_v34 = vsel %vm3639_vm2, %v3603_v17, %v1804_v9 }
 0x1ca   : > { %v3607_v51 = vadd.f32 %v3535_v40, %v1264_v18  ;;  %v3617_v10 = vadd.f32 1.0, %v1318_v22  ;;  %v1344_v59 = vadd.f32 0.05243302, %v1343_v44  ;;  %v1380_v55 = vadd.f32 0.00028619796, %v1379_v60 }
 0x1cb   : > { %v1391_v28 = vadd.f32 0.001143296, %v1390_v46  ;;  %v1355_v43 = vadd.f32 0.112945676, %v1354_v48  ;;  %v1842_v50 = vsub.f32 1.0, %v1841_v5  ;;  %v1813_v44 = vsel %vm3643_vm3, %v1812_v11, %v1808_v34 }
 0x1cc   : > { %v1417_v13 = vmul.f32 %v3607_v51, %v3607_v51  ;;  %2554 = vrcp.f32 %v3617_v10  ;;  %v1345_v25 = vmul.f32 %v1344_v59, %v3573_v56  ;;  %v1381_v54 = vmul.f32 %v1380_v55, %v3597_v35 }
 0x1cd   : > { %v1849_v18 = vand.u32 2147483647, %v3615_v58  ;;  %v1356_v30 = vmul.f32 %v1355_v43, %v3573_v56  ;;  %v1843_v60 = vmul.f32 %v2553_v23, %v1842_v50  ;;  %vm1846_vm4 = vweird.f32 %v2553_v23 }
 0x1ce   : > { %v3631_v0 = vmin.f32 %v1417_v13, 16.0  ;;  %v1346_v37 = vadd.f32 0.18741608, %v1345_v25  ;;  %v1382_v61 = vadd.f32 0.0036580483, %v1381_v54  ;;  %v1392_v17 = vmul.f32 %v1391_v28, %v3597_v35  ;;  %vm1847_vm6 = vmor %vm1845_vm5, %vm1846_vm4 }
 0x1cf   : > { %v1357_v20 = vadd.f32 0.4994258, %v1356_v30  ;;  %v1829_v26 = vmul.f32 %v1828_v53, %v3554_v19  ;;  %v1844_v1 = vadd.f32 %v2553_v23, %v1843_v60  ;;  %v1814_v59 = vmul.f32 %v1813_v44, %v1789_v31 }
 0x1d0   : > { %v1419_v36 = vmul.f32 2.1237322e-06, %v3631_v0  ;;  %v1347_v16 = vmul.f32 %v1346_v37, %v3573_v56  ;;  %v1383_v45 = vmul.f32 %v1382_v61, %v3597_v35  ;;  %vm1850_vm7 = vcmp.eq.f32.partialorder %v1849_v18, 8.507059e+37 }
 0x1d1   : > { %v1358_v13 = vmul.f32 %v1357_v20, %v3573_v56  ;;  %v1848_v24 = vsel %vm1847_vm6, %v2553_v23, %v1844_v1  ;;  %v1393_v7 = vadd.f32 0.014752088, %v1392_v17  ;;  %v1430_v8 = vmul.f32 3.8918573e-05, %v3631_v0 }
 0x1d2   : > { %v3648_v12 = vpop.eup %2554  ;;  %v1420_v22 = vadd.f32 0.00028619796, %v1419_v36  ;;  %v1853_v15 = vsel %vm1850_vm7, %v1852_v62, %v1848_v24  ;;  %v1308_v25 = vadd.f32 1.1283791, %v1307_v2  ;;  %v1348_v33 = vadd.f32 1.1283791, %v1347_v16 }
 0x1d3   : > { %v1321_v3 = vmul.f32 %v3648_v12, %v3617_v10  ;;  %v3676_v58 = vadd.f32 1.0, %v1358_v13  ;;  %v1384_v54 = vadd.f32 0.05243302, %v1383_v45  ;;  %v1854_v46 = vmul.f32 %v1853_v15, %v1829_v26 }
 0x1d4   : > { %v1421_v19 = vmul.f32 %v1420_v22, %v3631_v0  ;;  %v2335_v9 = vclamps-f32 %v1814_v59, 1.0  ;;  %v1394_v23 = vmul.f32 %v1393_v7, %v3597_v35  ;;  %v1329_v63 = vand.u32 2147483647, %v3617_v10 }
 0x1d5   : > { %v1322_v55 = vsub.f32 1.0, %v1321_v3  ;;  %2556 = vrcp.f32 %v3676_v58  ;;  %v2336_v47 = vclamps-f32 %v1854_v46, 1.0  ;;  %v1385_v48 = vmul.f32 %v1384_v54, %v3597_v35 }
 0x1d6   : > { %v1422_v2 = vadd.f32 0.0036580483, %v1421_v19  ;;  %v1309_v5 = vmul.f32 %v1308_v25, %v3543_v4  ;;  %vm1326_vm8 = vweird.f32 %v3648_v12  ;;  %v1349_v61 = vmul.f32 %v1348_v33, %v3563_v52 }
 0x1d7   : > { %v1323_v21 = vmul.f32 %v3648_v12, %v1322_v55  ;;  %v1960_v37 = vpack.c.bf16 %v2336_v47, %v2335_v9  ;;  %v1395_v11 = vadd.f32 0.112945676, %v1394_v23  ;;  %vm1325_vm9 = vweird.f32 %v3617_v10 }
 0x1d8   : > { %v1423_v50 = vmul.f32 %v1422_v2, %v3631_v0  ;;  %v1331_v4 = vand.u32 2147483648, %v3617_v10  ;;  %v1386_v18 = vadd.f32 0.18741608, %v1385_v48  ;;  %vm3709_vm10 = vmor %vm1325_vm9, %vm1326_vm8  ;;  %vm3713_vm11 = vcmp.eq.f32.partialorder %v1329_v63, 8.507059e+37 }
 0x1d9   : > { %v1292_v49 = vpop.f32.mrf.mxu3  ;;  %v1324_v34 = vadd.f32 %v3648_v12, %v1323_v21  ;;  %2051 = vmatmul.bf16.vlgmr.msra.gmra.mxu3 %v1960_v37  ;;  %v1396_v17 = vmul.f32 %v1395_v11, %v3597_v35  ;;  %v1371_v20 = vand.u32 2147483648, %v3676_v58  ;;  %vm1365_vm13 = vweird.f32 %v3676_v58 }
 0x1da   : > { %v3657_v42 = vadd.f32 %v3535_v40, %v1292_v49  ;;  %v1431_v49 = vadd.f32 0.001143296, %v1430_v8  ;;  %v1424_v26 = vadd.f32 0.05243302, %v1423_v50  ;;  %v1332_v1 = vor.u32 1.1754944e-38, %v1331_v4 }
 0x1db   : > { %v2557_v53 = vpop.eup %2556  ;;  %v1328_v10 = vsel %vm3709_vm10, %v3648_v12, %v1324_v34  ;;  %v1397_v62 = vadd.f32 0.4994258, %v1396_v17  ;;  %v1369_v12 = vand.u32 2147483647, %v3676_v58  ;;  %v1372_v25 = vor.u32 1.1754944e-38, %v1371_v20 }
 0x1dc   : > { %v1857_v6 = vmul.f32 %v3657_v42, %v3657_v42  ;;  %v1432_v27 = vmul.f32 %v1431_v49, %v3631_v0  ;;  %v1361_v44 = vmul.f32 %v2557_v53, %v3676_v58  ;;  %vm1366_vm12 = vweird.f32 %v2557_v53 }
 0x1dd   : > { %v1333_v7 = vsel %vm3713_vm11, %v1332_v1, %v1328_v10  ;;  %v1398_v15 = vmul.f32 %v1397_v62, %v3597_v35  ;;  %vm1367_vm14 = vmor %vm1365_vm13, %vm1366_vm12  ;;  %vm1370_vm15 = vcmp.eq.f32.partialorder %v1369_v12, 8.507059e+37  ;;  %v1425_v2 = vmul.f32 %v1424_v26, %v3631_v0 }
 0x1de   : > { %v3679_v56 = vmin.f32 %v1857_v6, 16.0  ;;  %v1433_v16 = vadd.f32 0.014752088, %v1432_v27  ;;  %v1334_v47 = vmul.f32 %v1333_v7, %v1309_v5  ;;  %v1387_v5 = vmul.f32 %v1386_v18, %v3597_v35 }
 0x1df   : > { %v1267_v29 = vpop.f32.mrf.mxu1  ;;  %v3739_v54 = vadd.f32 1.0, %v1398_v15 }
 0x1e0   : > { %v3673_v14 = vadd.f32 %v3535_v40, %v1267_v29  ;;  %v1859_v28 = vmul.f32 2.1237322e-06, %v3679_v56  ;;  %v1362_v29 = vsub.f32 1.0, %v1361_v44  ;;  %v1434_v59 = vmul.f32 %v1433_v16, %v3631_v0 }
 0x1e1   : > { %v1294_v41 = vpop.f32.mrf.mxu3  ;;  %v1870_v9 = vmul.f32 3.8918573e-05, %v3679_v56  ;;  %2558 = vrcp.f32 %v3739_v54  ;;  %v2323_v11 = vclamps-f32 %v1334_v47, 1.0  ;;  %v1388_v18 = vadd.f32 1.1283791, %v1387_v5 }
 0x1e2   : > { %v1457_v39 = vmul.f32 %v3673_v14, %v3673_v14  ;;  %v3686_v57 = vadd.f32 %v3535_v40, %v1294_v41  ;;  %v1860_v60 = vadd.f32 0.00028619796, %v1859_v28  ;;  %v1363_v13 = vmul.f32 %v2557_v53, %v1362_v29 }
 0x1e3   : > { %v1435_v46 = vadd.f32 0.112945676, %v1434_v59  ;;  %v1871_v28 = vadd.f32 0.001143296, %v1870_v9  ;;  %vm1405_vm1 = vweird.f32 %v3739_v54 }
 0x1e4   : > { %v3699_v36 = vmin.f32 %v1457_v39, 16.0  ;;  %v1897_v43 = vmul.f32 %v3686_v57, %v3686_v57  ;;  %v1861_v24 = vmul.f32 %v1860_v60, %v3679_v56  ;;  %v1364_v8 = vadd.f32 %v2557_v53, %v1363_v13 }
 0x1e5   : > { %v1436_v63 = vmul.f32 %v1435_v46, %v3631_v0  ;;  %v1872_v35 = vmul.f32 %v1871_v28, %v3679_v56 }
 0x1e6   : > { %v1459_v45 = vmul.f32 2.1237322e-06, %v3699_v36  ;;  %v3723_v22 = vmin.f32 %v1897_v43, 16.0  ;;  %v1368_v58 = vsel %vm1367_vm14, %v2557_v53, %v1364_v8  ;;  %v1862_v39 = vadd.f32 0.0036580483, %v1861_v24 }
 0x1e7   : > { %v1269_v31 = vpop.f32.mrf.mxu1  ;;  %v1373_v23 = vsel %vm1370_vm15, %v1372_v25, %v1368_v58  ;;  %v3755_v3 = vpop.eup %2558  ;;  %v1437_v60 = vadd.f32 0.4994258, %v1436_v63  ;;  %v1873_v20 = vadd.f32 0.014752088, %v1872_v35  ;;  %v1470_v24 = vmul.f32 3.8918573e-05, %v3699_v36 }
 0x1e8   : > { %v3691_v32 = vadd.f32 %v3535_v40, %v1269_v31  ;;  %v1460_v19 = vadd.f32 0.00028619796, %v1459_v45  ;;  %v1899_v41 = vmul.f32 2.1237322e-06, %v3723_v22  ;;  %v1374_v49 = vmul.f32 %v1373_v23, %v1349_v61 }
 0x1e9   : > { %v1863_v50 = vmul.f32 %v1862_v39, %v3679_v56  ;;  %v1426_v61 = vadd.f32 0.18741608, %v1425_v2  ;;  %v1401_v17 = vmul.f32 %v3755_v3, %v3739_v54  ;;  %v1438_v29 = vmul.f32 %v1437_v60, %v3631_v0 }
 0x1ea   : > { %v1497_v52 = vmul.f32 %v3691_v32, %v3691_v32  ;;  %v1900_v31 = vadd.f32 0.00028619796, %v1899_v41  ;;  %v1461_v48 = vmul.f32 %v1460_v19, %v3699_v36  ;;  %v2324_v53 = vclamps-f32 %v1374_v49, 1.0 }
 0x1eb   : > { %v1864_v16 = vadd.f32 0.05243302, %v1863_v50  ;;  %v1427_v26 = vmul.f32 %v1426_v61, %v3631_v0  ;;  %v1402_v62 = vsub.f32 1.0, %v1401_v17  ;;  %v1910_v59 = vmul.f32 3.8918573e-05, %v3723_v22 }
 0x1ec   : > { %v3727_v6 = vmin.f32 %v1497_v52, 16.0  ;;  %v1901_v27 = vmul.f32 %v1900_v31, %v3723_v22  ;;  %v1954_v52 = vpack.c.bf16 %v2324_v53, %v2323_v11  ;;  %v1462_v30 = vadd.f32 0.0036580483, %v1461_v48 }
 0x1ed   : > { %v3770_v12 = vadd.f32 1.0, %v1438_v29  ;;  %v1874_v15 = vmul.f32 %v1873_v20, %v3679_v56  ;;  %v1911_v19 = vadd.f32 0.001143296, %v1910_v59  ;;  %v1403_v0 = vmul.f32 %v3755_v3, %v1402_v62 }
 0x1ee   : > { %v1499_v21 = vmul.f32 2.1237322e-06, %v3727_v6  ;;  %2021 = vmatmul.bf16.vlgmr.msra.gmra.mxu2 %v1954_v52  ;;  %v1902_v1 = vadd.f32 0.0036580483, %v1901_v27  ;;  %v1389_v8 = vmul.f32 %v1388_v18, %v3582_v38  ;;  %v1428_v25 = vadd.f32 1.1283791, %v1427_v26 }
 0x1ef   : > { %v1272_v55 = vpop.f32.mrf.mxu1  ;;  %2560 = vrcp.f32 %v3770_v12  ;;  %v1865_v46 = vmul.f32 %v1864_v16, %v3679_v56  ;;  %v1471_v58 = vadd.f32 0.001143296, %v1470_v24  ;;  %v1409_v23 = vand.u32 2147483647, %v3739_v54 }
 0x1f0   : > { %v3737_v33 = vadd.f32 %v3535_v40, %v1272_v55  ;;  %v1500_v34 = vadd.f32 0.00028619796, %v1499_v21  ;;  %v1463_v55 = vmul.f32 %v1462_v30, %v3699_v36  ;;  %v1903_v21 = vmul.f32 %v1902_v1, %v3723_v22 }
 0x1f1   : > { %v1875_v2 = vadd.f32 0.112945676, %v1874_v15  ;;  %v1912_v31 = vmul.f32 %v1911_v19, %v3723_v22  ;;  %v1404_v48 = vadd.f32 %v3755_v3, %v1403_v0  ;;  %vm1406_vm0 = vweird.f32 %v3755_v3 }
 0x1f2   : > { %v1537_v37 = vmul.f32 %v3737_v33, %v3737_v33  ;;  %v1501_v10 = vmul.f32 %v1500_v34, %v3727_v6  ;;  %v1464_v9 = vadd.f32 0.05243302, %v1463_v55  ;;  %v1411_v38 = vand.u32 2147483648, %v3739_v54  ;;  %vm3794_vm2 = vmor %vm1405_vm1, %vm1406_vm0 }
 0x1f3   : > { %v1866_v63 = vadd.f32 0.18741608, %v1865_v46  ;;  %v1876_v28 = vmul.f32 %v1875_v2, %v3679_v56  ;;  %v1913_v5 = vadd.f32 0.014752088, %v1912_v31  ;;  %v1472_v50 = vmul.f32 %v1471_v58, %v3699_v36 }
 0x1f4   : > { %v3757_v44 = vmin.f32 %v1537_v37, 16.0  ;;  %v1502_v7 = vadd.f32 0.0036580483, %v1501_v10  ;;  %v1429_v37 = vmul.f32 %v1428_v25, %v3607_v51  ;;  %v1904_v61 = vadd.f32 0.05243302, %v1903_v21 }
 0x1f5   : > { %v2561_v34 = vpop.eup %2560  ;;  %v1877_v30 = vadd.f32 0.4994258, %v1876_v28  ;;  %v1408_v35 = vsel %vm3794_vm2, %v3755_v3, %v1404_v48  ;;  %vm3802_vm3 = vcmp.eq.f32.partialorder %v1409_v23, 8.507059e+37  ;;  %v1412_v54 = vor.u32 1.1754944e-38, %v1411_v38 }
 0x1f6   : > { %v1539_v13 = vmul.f32 2.1237322e-06, %v3757_v44  ;;  %v1503_v39 = vmul.f32 %v1502_v7, %v3727_v6  ;;  %v1441_v51 = vmul.f32 %v2561_v34, %v3770_v12  ;;  %v1914_v16 = vmul.f32 %v1913_v5, %v3723_v22 }
 0x1f7   : > { %v1274_v43 = vpop.f32.mrf.mxu1  ;;  %v1878_v17 = vmul.f32 %v1877_v30, %v3679_v56  ;;  %vm1446_vm4 = vweird.f32 %v2561_v34  ;;  %v1449_v20 = vand.u32 2147483647, %v3770_v12  ;;  %v1451_v26 = vand.u32 2147483648, %v3770_v12 }
 0x1f8   : > { %v3752_v4 = vadd.f32 %v3535_v40, %v1274_v43  ;;  %v1540_v47 = vadd.f32 0.00028619796, %v1539_v13  ;;  %v1465_v43 = vmul.f32 %v1464_v9, %v3699_v36  ;;  %v1504_v27 = vadd.f32 0.05243302, %v1503_v39 }
 0x1f9   : > { %v1442_v10 = vsub.f32 1.0, %v1441_v51  ;;  %v3810_v62 = vadd.f32 1.0, %v1878_v17  ;;  %v1915_v3 = vadd.f32 0.112945676, %v1914_v16  ;;  %v1905_v55 = vmul.f32 %v1904_v61, %v3723_v22 }
 0x1fa   : > { %v1577_v45 = vmul.f32 %v3752_v4, %v3752_v4  ;;  %v1541_v11 = vmul.f32 %v1540_v47, %v3757_v44  ;;  %v1413_v7 = vsel %vm3802_vm3, %v1412_v54, %v1408_v35  ;;  %v1466_v15 = vadd.f32 0.18741608, %v1465_v43 }
 0x1fb   : > { %v1443_v1 = vmul.f32 %v2561_v34, %v1442_v10  ;;  %vm1445_vm5 = vweird.f32 %v3770_v12  ;;  %2562 = vrcp.f32 %v3810_v62  ;;  %v1505_v0 = vmul.f32 %v1504_v27, %v3727_v6 }
 0x1fc   : > { %v3774_v41 = vmin.f32 %v1577_v45, 16.0  ;;  %v1473_v45 = vadd.f32 0.014752088, %v1472_v50  ;;  %v1542_v29 = vadd.f32 0.0036580483, %v1541_v11  ;;  %vm1447_vm6 = vmor %vm1445_vm5, %vm1446_vm4  ;;  %vm1450_vm7 = vcmp.eq.f32.partialorder %v1449_v20, 8.507059e+37 }
 0x1fd   : > { %v1444_v19 = vadd.f32 %v2561_v34, %v1443_v1  ;;  %v1452_v46 = vor.u32 1.1754944e-38, %v1451_v26  ;;  %v1414_v9 = vmul.f32 %v1413_v7, %v1389_v8  ;;  %v1916_v47 = vmul.f32 %v1915_v3, %v3723_v22 }
 0x1fe   : > { %v1579_v49 = vmul.f32 2.1237322e-06, %v3774_v41  ;;  %v1474_v59 = vmul.f32 %v1473_v45, %v3699_v36  ;;  %v1543_v25 = vmul.f32 %v1542_v29, %v3757_v44  ;;  %v1906_v39 = vadd.f32 0.18741608, %v1905_v55 }
 0x1ff   : > { %v1277_v53 = vpop.f32.mrf.mxu1  ;;  %v1448_v21 = vsel %vm1447_vm6, %v2561_v34, %v1444_v19  ;;  %v1917_v48 = vadd.f32 0.4994258, %v1916_v47  ;;  %v1867_v38 = vmul.f32 %v1866_v63, %v3679_v56  ;;  %v1467_v28 = vmul.f32 %v1466_v15, %v3699_v36 }
 0x200   : > { %v1580_v60 = vadd.f32 0.00028619796, %v1579_v49  ;;  %v3816_v24 = vadd.f32 %v3535_v40, %v1277_v53  ;;  %v1475_v58 = vadd.f32 0.112945676, %v1474_v59  ;;  %v1453_v31 = vsel %vm1450_vm7, %v1452_v46, %v1448_v21 }
 0x201   : > { %v1454_v49 = vmul.f32 %v1453_v31, %v1429_v37  ;;  %v1506_v5 = vadd.f32 0.18741608, %v1505_v0  ;;  %v3831_v34 = vpop.eup %2562  ;;  %v1544_v43 = vadd.f32 0.05243302, %v1543_v25  ;;  %v2325_v11 = vclamps-f32 %v1414_v9, 1.0 }
 0x202   : > { %v1581_v13 = vmul.f32 %v1580_v60, %v3774_v41  ;;  %v1617_v12 = vmul.f32 %v3816_v24, %v3816_v24  ;;  %v1476_v8 = vmul.f32 %v1475_v58, %v3699_v36  ;;  %v1918_v50 = vmul.f32 %v1917_v48, %v3723_v22 }
 0x203   : > { %v2326_v53 = vclamps-f32 %v1454_v49, 1.0  ;;  %v1907_v61 = vmul.f32 %v1906_v39, %v3723_v22  ;;  %v1881_v56 = vmul.f32 %v3831_v34, %v3810_v62  ;;  %v1868_v60 = vadd.f32 1.1283791, %v1867_v38 }
 0x204   : > { %v1582_v23 = vadd.f32 0.0036580483, %v1581_v13  ;;  %v3836_v37 = vmin.f32 %v1617_v12, 16.0  ;;  %v3843_v51 = vadd.f32 1.0, %v1918_v50  ;;  %v1477_v30 = vadd.f32 0.4994258, %v1476_v8 }
 0x205   : > { %v1955_v52 = vpack.c.bf16 %v2326_v53, %v2325_v11  ;;  %v1882_v35 = vsub.f32 1.0, %v1881_v56  ;;  %v1510_v18 = vmul.f32 3.8918573e-05, %v3727_v6  ;;  %v1468_v54 = vadd.f32 1.1283791, %v1467_v28 }
 0x206   : > { %v1583_v27 = vmul.f32 %v1582_v23, %v3774_v41  ;;  %v1507_v22 = vmul.f32 %v1506_v5, %v3727_v6  ;;  %v1545_v10 = vmul.f32 %v1544_v43, %v3757_v44  ;;  %2564 = vrcp.f32 %v3843_v51 }
 0x207   : > { %v1279_v2 = vpop.f32.mrf.mxu1  ;;  %2026 = vmatmul.bf16.gmra.mxu2 %v1955_v52  ;;  %v1619_v16 = vmul.f32 2.1237322e-06, %v3836_v37  ;;  %v1883_v45 = vmul.f32 %v3831_v34, %v1882_v35  ;;  %v1908_v29 = vadd.f32 1.1283791, %v1907_v61  ;;  %v1478_v26 = vmul.f32 %v1477_v30, %v3699_v36 }
 0x208   : > { %v3841_v63 = vadd.f32 %v3535_v40, %v1279_v2  ;;  %v1584_v17 = vadd.f32 0.05243302, %v1583_v27  ;;  %v1869_v1 = vmul.f32 %v1868_v60, %v3657_v42  ;;  %v1511_v59 = vadd.f32 0.001143296, %v1510_v18 }
 0x209   : > { %v3856_v55 = vmul.f32 %v1468_v54, %v3673_v14  ;;  %v1508_v13 = vadd.f32 1.1283791, %v1507_v22  ;;  %v1546_v7 = vadd.f32 0.18741608, %v1545_v10  ;;  %v3858_v15 = vadd.f32 1.0, %v1478_v26 }
 0x20a   : > { %v1657_v20 = vmul.f32 %v3841_v63, %v3841_v63  ;;  %v1585_v19 = vmul.f32 %v1584_v17, %v3774_v41  ;;  %v1620_v0 = vadd.f32 0.00028619796, %v1619_v16  ;;  %v1884_v25 = vadd.f32 %v3831_v34, %v1883_v45 }
 0x20b   : > { %vm1886_vm8 = vweird.f32 %v3831_v34  ;;  %v1909_v36 = vmul.f32 %v1908_v29, %v3686_v57  ;;  %v1891_v9 = vand.u32 2147483648, %v3810_v62  ;;  %2566 = vrcp.f32 %v3858_v15 }
 0x20c   : > { %v2565_v46 = vpop.eup %2564  ;;  %v3864_v42 = vmin.f32 %v1657_v20, 16.0  ;;  %vm1885_vm9 = vweird.f32 %v3810_v62  ;;  %v1889_v14 = vand.u32 2147483647, %v3810_v62  ;;  %v1512_v47 = vmul.f32 %v1511_v59, %v3727_v6 }
 0x20d   : > { %v1921_v21 = vmul.f32 %v2565_v46, %v3843_v51  ;;  %v3873_v58 = vmul.f32 %v1508_v13, %v3691_v32  ;;  %v1547_v39 = vmul.f32 %v1546_v7, %v3757_v44  ;;  %vm3876_vm10 = vmor %vm1885_vm9, %vm1886_vm8  ;;  %v1550_v23 = vmul.f32 3.8918573e-05, %v3757_v44 }
 0x20e   : > { %v1590_v12 = vmul.f32 3.8918573e-05, %v3774_v41  ;;  %v1586_v2 = vadd.f32 0.18741608, %v1585_v19  ;;  %v1621_v62 = vmul.f32 %v1620_v0, %v3836_v37  ;;  %v1888_v31 = vsel %vm3876_vm10, %v3831_v34, %v1884_v25 }
 0x20f   : > { %v1282_v3 = vpop.f32.mrf.mxu1  ;;  %v1922_v49 = vsub.f32 1.0, %v1921_v21  ;;  %v1659_v32 = vmul.f32 2.1237322e-06, %v3864_v42  ;;  %v1892_v48 = vor.u32 1.1754944e-38, %v1891_v9  ;;  %v1929_v38 = vand.u32 2147483647, %v3843_v51 }
 0x210   : > { %v1931_v28 = vand.u32 2147483648, %v3843_v51  ;;  %vm1890_vm11 = vcmp.eq.f32.partialorder %v1889_v14, 8.507059e+37  ;;  %vm1926_vm12 = vweird.f32 %v2565_v46  ;;  %v1513_v8 = vadd.f32 0.014752088, %v1512_v47 }
 0x211   : > { %v1923_v5 = vmul.f32 %v2565_v46, %v1922_v49  ;;  %v3889_v43 = vpop.eup %2566  ;;  %v3892_v11 = vadd.f32 %v3535_v40, %v1282_v3  ;;  %v1893_v53 = vsel %vm1890_vm11, %v1892_v48, %v1888_v31  ;;  %v1551_v50 = vadd.f32 0.001143296, %v1550_v23 }
 0x212   : > { %v1591_v34 = vadd.f32 0.001143296, %v1590_v12  ;;  %vm1925_vm13 = vweird.f32 %v3843_v51  ;;  %v1481_v56 = vmul.f32 %v3889_v43, %v3858_v15  ;;  %v1514_v52 = vmul.f32 %v1513_v8, %v3727_v6 }
 0x213   : > { %v1924_v61 = vadd.f32 %v2565_v46, %v1923_v5  ;;  %vm1927_vm14 = vmor %vm1925_vm13, %vm1926_vm12  ;;  %vm1930_vm15 = vcmp.eq.f32.partialorder %v1929_v38, 8.507059e+37  ;;  %v1932_v30 = vor.u32 1.1754944e-38, %v1931_v28  ;;  %v1552_v60 = vmul.f32 %v1551_v50, %v3757_v44 }
 0x214   : > { %v1592_v35 = vmul.f32 %v1591_v34, %v3774_v41  ;;  %v1894_v18 = vmul.f32 %v1893_v53, %v1869_v1  ;;  %v1515_v22 = vadd.f32 0.112945676, %v1514_v52  ;;  %v1630_v10 = vmul.f32 3.8918573e-05, %v3836_v37 }
 0x215   : > { %v1928_v54 = vsel %vm1927_vm14, %v2565_v46, %v1924_v61  ;;  %v1697_v51 = vmul.f32 %v3892_v11, %v3892_v11  ;;  %v1553_v45 = vadd.f32 0.014752088, %v1552_v60  ;;  %v1482_v20 = vsub.f32 1.0, %v1481_v56 }
 0x216   : > { %v1933_v17 = vsel %vm1930_vm15, %v1932_v30, %v1928_v54  ;;  %v1516_v26 = vmul.f32 %v1515_v22, %v3727_v6  ;;  %v1593_v3 = vadd.f32 0.014752088, %v1592_v35  ;;  %v1622_v59 = vadd.f32 0.0036580483, %v1621_v62 }
 0x217   : > { %v1284_v27 = vpop.f32.mrf.mxu1  ;;  %v1934_v29 = vmul.f32 %v1933_v17, %v1909_v36  ;;  %v1660_v13 = vadd.f32 0.00028619796, %v1659_v32  ;;  %v1554_v1 = vmul.f32 %v1553_v45, %v3757_v44  ;;  %v1631_v7 = vadd.f32 0.001143296, %v1630_v10 }
 0x218   : > { %v3904_v16 = vadd.f32 %v3535_v40, %v1284_v27  ;;  %v2337_v19 = vclamps-f32 %v1894_v18, 1.0  ;;  %v1517_v25 = vadd.f32 0.4994258, %v1516_v26  ;;  %v1594_v46 = vmul.f32 %v1593_v3, %v3774_v41 }
 0x219   : > { %v2338_v0 = vclamps-f32 %v1934_v29, 1.0  ;;  %v3909_v9 = vmin.f32 %v1697_v51, 16.0  ;;  %v1555_v36 = vadd.f32 0.112945676, %v1554_v1  ;;  %v1632_v14 = vmul.f32 %v1631_v7, %v3836_v37 }
 0x21a   : > { %v1737_v40 = vmul.f32 %v3904_v16, %v3904_v16  ;;  %v1483_v47 = vmul.f32 %v3889_v43, %v1482_v20  ;;  %v1518_v57 = vmul.f32 %v1517_v25, %v3727_v6  ;;  %v1595_v23 = vadd.f32 0.112945676, %v1594_v46 }
 0x21b   : > { %v1961_v21 = vpack.c.bf16 %v2338_v0, %v2337_v19  ;;  %v3916_v12 = vadd.f32 1.1283791, %v1547_v39  ;;  %v1587_v62 = vmul.f32 %v1586_v2, %v3774_v41  ;;  %v1556_v31 = vmul.f32 %v1555_v36, %v3757_v44 }
 0x21c   : > { %v1633_v49 = vadd.f32 0.014752088, %v1632_v14  ;;  %v1623_v32 = vmul.f32 %v1622_v59, %v3836_v37  ;;  %v3921_v48 = vadd.f32 1.0, %v1518_v57  ;;  %v1596_v38 = vmul.f32 %v1595_v23, %v3774_v41 }
 0x21d   : > { %2056 = vmatmul.bf16.gmra.mxu3 %v1961_v21  ;;  %v1670_v28 = vmul.f32 3.8918573e-05, %v3864_v42  ;;  %v1661_v5 = vmul.f32 %v1660_v13, %v3864_v42  ;;  %v3926_v6 = vmin.f32 %v1737_v40, 16.0  ;;  %v1557_v39 = vadd.f32 0.4994258, %v1556_v31 }
 0x21e   : > { %v1634_v8 = vmul.f32 %v1633_v49, %v3836_v37  ;;  %v1484_v2 = vadd.f32 %v3889_v43, %v1483_v47  ;;  %vm1486_vm0 = vweird.f32 %v3889_v43  ;;  %2568 = vrcp.f32 %v3921_v48 }
 0x21f   : > { %v1710_v53 = vmul.f32 3.8918573e-05, %v3909_v9  ;;  %v1489_v50 = vand.u32 2147483647, %v3858_v15  ;;  %v1491_v34 = vand.u32 2147483648, %v3858_v15  ;;  %v1558_v61 = vmul.f32 %v1557_v39, %v3757_v44 }
 0x220   : > { %v1597_v27 = vadd.f32 0.4994258, %v1596_v38  ;;  %v3936_v56 = vadd.f32 1.1283791, %v1587_v62  ;;  %vm1485_vm1 = vweird.f32 %v3858_v15  ;;  %v1635_v52 = vadd.f32 0.112945676, %v1634_v8 }
 0x221   : > { %v1671_v30 = vadd.f32 0.001143296, %v1670_v28  ;;  %v1624_v60 = vadd.f32 0.05243302, %v1623_v32  ;;  %v1662_v35 = vadd.f32 0.0036580483, %v1661_v5  ;;  %vm3939_vm2 = vmor %vm1485_vm1, %vm1486_vm0  ;;  %vm1525_vm5 = vweird.f32 %v3921_v48 }
 0x222   : > { %v3943_v54 = vadd.f32 1.0, %v1558_v61  ;;  %v1598_v22 = vmul.f32 %v1597_v27, %v3774_v41  ;;  %v1488_v44 = vsel %vm3939_vm2, %v3889_v43, %v1484_v2  ;;  %v1636_v10 = vmul.f32 %v1635_v52, %v3836_v37 }
 0x223   : > { %v1672_v15 = vmul.f32 %v1671_v30, %v3864_v42  ;;  %v1711_v51 = vadd.f32 0.001143296, %v1710_v53  ;;  %vm1490_vm3 = vcmp.eq.f32.partialorder %v1489_v50, 8.507059e+37  ;;  %v1492_v17 = vor.u32 1.1754944e-38, %v1491_v34 }
 0x224   : > { %2570 = vrcp.f32 %v3943_v54  ;;  %v1750_v45 = vmul.f32 3.8918573e-05, %v3926_v6  ;;  %v2569_v29 = vpop.eup %2568  ;;  %v3953_v20 = vadd.f32 1.0, %v1598_v22  ;;  %v1637_v26 = vadd.f32 0.4994258, %v1636_v10 }
 0x225   : > { %v1673_v41 = vadd.f32 0.014752088, %v1672_v15  ;;  %v1712_v3 = vmul.f32 %v1711_v51, %v3909_v9  ;;  %v3957_v43 = vmul.f32 %v1624_v60, %v3836_v37  ;;  %v1663_v59 = vmul.f32 %v1662_v35, %v3864_v42 }
 0x226   : > { %v1493_v13 = vsel %vm1490_vm3, %v1492_v17, %v1488_v44  ;;  %v1521_v1 = vmul.f32 %v2569_v29, %v3921_v48  ;;  %v1699_v7 = vmul.f32 2.1237322e-06, %v3909_v9  ;;  %v1739_v19 = vmul.f32 2.1237322e-06, %v3926_v6 }
 0x227   : > { %v1531_v0 = vand.u32 2147483648, %v3921_v48  ;;  %2572 = vrcp.f32 %v3953_v20  ;;  %v1638_v46 = vmul.f32 %v1637_v26, %v3836_v37  ;;  %v1674_v40 = vmul.f32 %v1673_v41, %v3864_v42 }
 0x228   : > { %v1522_v25 = vsub.f32 1.0, %v1521_v1  ;;  %v1713_v36 = vadd.f32 0.014752088, %v1712_v3  ;;  %v1494_v14 = vmul.f32 %v1493_v13, %v3856_v55  ;;  %vm1526_vm4 = vweird.f32 %v2569_v29 }
 0x229   : > { %v1529_v21 = vand.u32 2147483647, %v3921_v48  ;;  %v1751_v47 = vadd.f32 0.001143296, %v1750_v45  ;;  %v3971_v62 = vadd.f32 1.0, %v1638_v46  ;;  %v1532_v55 = vor.u32 1.1754944e-38, %v1531_v0  ;;  %vm1527_vm6 = vmor %vm1525_vm5, %vm1526_vm4 }
 0x22a   : > { %v3969_v57 = vpop.eup %2570  ;;  %v1523_v23 = vmul.f32 %v2569_v29, %v1522_v25  ;;  %v1675_v31 = vadd.f32 0.112945676, %v1674_v40  ;;  %v1714_v49 = vmul.f32 %v1713_v36, %v3909_v9  ;;  %v1664_v32 = vadd.f32 0.05243302, %v1663_v59 }
 0x22b   : > { %v1700_v38 = vadd.f32 0.00028619796, %v1699_v7  ;;  %v1740_v28 = vadd.f32 0.00028619796, %v1739_v19  ;;  %v1561_v5 = vmul.f32 %v3969_v57, %v3943_v54  ;;  %v1752_v8 = vmul.f32 %v1751_v47, %v3926_v6 }
 0x22c   : > { %v1524_v39 = vadd.f32 %v2569_v29, %v1523_v23  ;;  %2574 = vrcp.f32 %v3971_v62  ;;  %v1676_v50 = vmul.f32 %v1675_v31, %v3864_v42  ;;  %v1715_v34 = vadd.f32 0.112945676, %v1714_v49 }
 0x22d   : > { %v2573_v2 = vpop.eup %2572  ;;  %v1562_v53 = vsub.f32 1.0, %v1561_v5  ;;  %v2327_v61 = vclamps-f32 %v1494_v14, 1.0  ;;  %vm1530_vm7 = vcmp.eq.f32.partialorder %v1529_v21, 8.507059e+37  ;;  %v1609_v60 = vand.u32 2147483647, %v3953_v20 }
 0x22e   : > { %v1528_v27 = vsel %vm1527_vm6, %v2569_v29, %v1524_v39  ;;  %v1601_v52 = vmul.f32 %v2573_v2, %v3953_v20  ;;  %v1677_v35 = vadd.f32 0.4994258, %v1676_v50  ;;  %v1716_v44 = vmul.f32 %v1715_v34, %v3909_v9 }
 0x22f   : > { %v1533_v30 = vsel %vm1530_vm7, %v1532_v55, %v1528_v27  ;;  %v1563_v48 = vmul.f32 %v3969_v57, %v1562_v53  ;;  %v1753_v10 = vadd.f32 0.014752088, %v1752_v8  ;;  %vm1566_vm8 = vweird.f32 %v3969_v57 }
 0x230   : > { %v1534_v18 = vmul.f32 %v1533_v30, %v3873_v58  ;;  %v1602_v22 = vsub.f32 1.0, %v1601_v52  ;;  %vm1606_vm9 = vweird.f32 %v2573_v2  ;;  %v1611_v15 = vand.u32 2147483648, %v3953_v20 }
 0x231   : > { %v1678_v51 = vmul.f32 %v1677_v35, %v3864_v42  ;;  %v1564_v45 = vadd.f32 %v3969_v57, %v1563_v48  ;;  %v1717_v26 = vadd.f32 0.4994258, %v1716_v44  ;;  %vm1565_vm10 = vweird.f32 %v3943_v54 }
 0x232   : > { %v2328_v17 = vclamps-f32 %v1534_v18, 1.0  ;;  %v1603_v29 = vmul.f32 %v2573_v2, %v1602_v22  ;;  %v3990_v41 = vpop.eup %2574  ;;  %v1571_v58 = vand.u32 2147483648, %v3943_v54  ;;  %v1754_v59 = vmul.f32 %v1753_v10, %v3926_v6  ;;  %vm3997_vm11 = vmor %vm1565_vm10, %vm1566_vm8 }
 0x233   : > { %v3994_v3 = vadd.f32 1.0, %v1678_v51  ;;  %v1569_v7 = vand.u32 2147483647, %v3943_v54  ;;  %vm1605_vm12 = vweird.f32 %v3953_v20  ;;  %v1665_v0 = vmul.f32 %v1664_v32, %v3864_v42 }
 0x234   : > { %v1956_v13 = vpack.c.bf16 %v2328_v17, %v2327_v61  ;;  %v1604_v19 = vadd.f32 %v2573_v2, %v1603_v29  ;;  %vm1607_vm13 = vmor %vm1605_vm12, %vm1606_vm9  ;;  %v1612_v25 = vor.u32 1.1754944e-38, %v1611_v15  ;;  %v1718_v46 = vmul.f32 %v1717_v26, %v3909_v9 }
 0x235   : > { %2576 = vrcp.f32 %v3994_v3  ;;  %v1568_v40 = vsel %vm3997_vm11, %v3969_v57, %v1564_v45  ;;  %vm1610_vm14 = vcmp.eq.f32.partialorder %v1609_v60, 8.507059e+37  ;;  %v1641_v54 = vmul.f32 %v3990_v41, %v3971_v62 }
 0x236   : > { %2031 = vmatmul.bf16.gmra.mxu2 %v1956_v13  ;;  %v1608_v36 = vsel %vm1607_vm13, %v2573_v2, %v1604_v19  ;;  %v1701_v20 = vmul.f32 %v1700_v38, %v3909_v9  ;;  %v1572_v14 = vor.u32 1.1754944e-38, %v1571_v58  ;;  %v1755_v47 = vadd.f32 0.112945676, %v1754_v59 }
 0x237   : > { %v1613_v21 = vsel %vm1610_vm14, %v1612_v25, %v1608_v36  ;;  %v1589_v23 = vmul.f32 %v3936_v56, %v3752_v4  ;;  %v1741_v31 = vmul.f32 %v1740_v28, %v3926_v6  ;;  %vm1570_vm15 = vcmp.eq.f32.partialorder %v1569_v7, 8.507059e+37 }
 0x238   : > { %v1573_v49 = vsel %vm1570_vm15, %v1572_v14, %v1568_v40  ;;  %v4016_v32 = vadd.f32 1.0, %v1718_v46  ;;  %v1549_v57 = vmul.f32 %v3916_v12, %v3737_v33  ;;  %v1642_v39 = vsub.f32 1.0, %v1641_v54 }
 0x239   : > { %v1614_v5 = vmul.f32 %v1613_v21, %v1589_v23  ;;  %v1756_v55 = vmul.f32 %v1755_v47, %v3926_v6  ;;  %v1626_v8 = vadd.f32 0.18741608, %v3957_v43  ;;  %v1666_v2 = vadd.f32 0.18741608, %v1665_v0 }
 0x23a   : > { %v1702_v53 = vadd.f32 0.0036580483, %v1701_v20  ;;  %v1742_v50 = vadd.f32 0.0036580483, %v1741_v31  ;;  %v1574_v4 = vmul.f32 %v1573_v49, %v1549_v57  ;;  %2578 = vrcp.f32 %v4016_v32 }
 0x23b   : > { %v2577_v38 = vpop.eup %2576  ;;  %v1757_v28 = vadd.f32 0.4994258, %v1756_v55  ;;  %v2330_v34 = vclamps-f32 %v1614_v5, 1.0  ;;  %v1643_v61 = vmul.f32 %v3990_v41, %v1642_v39  ;;  %v1627_v12 = vmul.f32 %v1626_v8, %v3836_v37 }
 0x23c   : > { %v1681_v56 = vmul.f32 %v2577_v38, %v3994_v3  ;;  %v1667_v27 = vmul.f32 %v1666_v2, %v3864_v42  ;;  %v1703_v52 = vmul.f32 %v1702_v53, %v3909_v9  ;;  %v1743_v30 = vmul.f32 %v1742_v50, %v3926_v6 }
 0x23d   : > { %v1758_v43 = vmul.f32 %v1757_v28, %v3926_v6  ;;  %v2329_v48 = vclamps-f32 %v1574_v4, 1.0  ;;  %vm1686_vm0 = vweird.f32 %v2577_v38  ;;  %vm1646_vm1 = vweird.f32 %v3990_v41 }
 0x23e   : > { %v1682_v33 = vsub.f32 1.0, %v1681_v56  ;;  %vm1685_vm2 = vweird.f32 %v3994_v3  ;;  %v1691_v35 = vand.u32 2147483648, %v3994_v3  ;;  %v1644_v42 = vadd.f32 %v3990_v41, %v1643_v61 }
 0x23f   : > { %v4033_v18 = vadd.f32 1.0, %v1758_v43  ;;  %v1957_v37 = vpack.c.bf16 %v2330_v34, %v2329_v48  ;;  %v1689_v44 = vand.u32 2147483647, %v3994_v3  ;;  %v1668_v15 = vadd.f32 1.1283791, %v1667_v27  ;;  %vm4040_vm3 = vmor %vm1685_vm2, %vm1686_vm0 }
 0x240   : > { %v1683_v60 = vmul.f32 %v2577_v38, %v1682_v33  ;;  %v4037_v10 = vpop.eup %2578  ;;  %v1651_v51 = vand.u32 2147483648, %v3971_v62  ;;  %v1744_v45 = vadd.f32 0.05243302, %v1743_v30  ;;  %vm1645_vm4 = vweird.f32 %v3971_v62 }
 0x241   : > { %2580 = vrcp.f32 %v4033_v18  ;;  %v1649_v29 = vand.u32 2147483647, %v3971_v62  ;;  %v1704_v58 = vadd.f32 0.05243302, %v1703_v52  ;;  %vm1647_vm5 = vmor %vm1645_vm4, %vm1646_vm1  ;;  %v1692_v3 = vor.u32 1.1754944e-38, %v1691_v35 }
 0x242   : > { %v1684_v22 = vadd.f32 %v2577_v38, %v1683_v60  ;;  %v1628_v59 = vadd.f32 1.1283791, %v1627_v12  ;;  %v1648_v13 = vsel %vm1647_vm5, %v3990_v41, %v1644_v42  ;;  %vm1690_vm6 = vcmp.eq.f32.partialorder %v1689_v44, 8.507059e+37 }
 0x243   : > { %v1721_v1 = vmul.f32 %v4037_v10, %v4016_v32  ;;  %v1652_v7 = vor.u32 1.1754944e-38, %v1651_v51  ;;  %v1669_v62 = vmul.f32 %v1668_v15, %v3841_v63  ;;  %v1745_v0 = vmul.f32 %v1744_v45, %v3926_v6 }
 0x244   : > { %v1688_v26 = vsel %vm4040_vm3, %v2577_v38, %v1684_v22  ;;  %vm1650_vm7 = vcmp.eq.f32.partialorder %v1649_v29, 8.507059e+37  ;;  %v1705_v46 = vmul.f32 %v1704_v58, %v3909_v9  ;;  %v1629_v36 = vmul.f32 %v1628_v59, %v3816_v24 }
 0x245   : > { %v1693_v19 = vsel %vm1690_vm6, %v1692_v3, %v1688_v26  ;;  %v1653_v40 = vsel %vm1650_vm7, %v1652_v7, %v1648_v13  ;;  %v1722_v20 = vsub.f32 1.0, %v1721_v1  ;;  %v1746_v14 = vadd.f32 0.18741608, %v1745_v0 }
 0x246   : > { %2036 = vmatmul.bf16.gmra.mxu2 %v1957_v37  ;;  %v1694_v54 = vmul.f32 %v1693_v19, %v1669_v62  ;;  %v1654_v21 = vmul.f32 %v1653_v40, %v1629_v36  ;;  %v1706_v23 = vadd.f32 0.18741608, %v1705_v46  ;;  %vm1726_vm9 = vweird.f32 %v4037_v10 }
 0x247   : > { %v2581_v25 = vpop.eup %2580  ;;  %v1723_v63 = vmul.f32 %v4037_v10, %v1722_v20  ;;  %v1747_v57 = vmul.f32 %v1746_v14, %v3926_v6  ;;  %v1771_v24 = vand.u32 2147483648, %v4033_v18  ;;  %vm1765_vm10 = vweird.f32 %v4033_v18 }
 0x248   : > { %v1761_v41 = vmul.f32 %v2581_v25, %v4033_v18  ;;  %v2332_v31 = vclamps-f32 %v1694_v54, 1.0  ;;  %v2331_v5 = vclamps-f32 %v1654_v21, 1.0  ;;  %vm1766_vm8 = vweird.f32 %v2581_v25 }
 0x249   : > { %v1707_v55 = vmul.f32 %v1706_v23, %v3909_v9  ;;  %v1724_v8 = vadd.f32 %v4037_v10, %v1723_v63  ;;  %v1769_v2 = vand.u32 2147483647, %v4033_v18  ;;  %v1731_v53 = vand.u32 2147483648, %v4016_v32  ;;  %vm1767_vm11 = vmor %vm1765_vm10, %vm1766_vm8 }
 0x24a   : > { %v1762_v47 = vsub.f32 1.0, %v1761_v41  ;;  %v1958_v38 = vpack.c.bf16 %v2332_v31, %v2331_v5  ;;  %v1748_v6 = vadd.f32 1.1283791, %v1747_v57  ;;  %vm1725_vm12 = vweird.f32 %v4016_v32 }
 0x24b   : > { %v1729_v9 = vand.u32 2147483647, %v4016_v32  ;;  %vm1727_vm13 = vmor %vm1725_vm12, %vm1726_vm9  ;;  %v1772_v4 = vor.u32 1.1754944e-38, %v1771_v24  ;;  %v1708_v56 = vadd.f32 1.1283791, %v1707_v55  ;;  %vm1770_vm14 = vcmp.eq.f32.partialorder %v1769_v2, 8.507059e+37 }
 0x24c   : > { %v1763_v49 = vmul.f32 %v2581_v25, %v1762_v47  ;;  %v1728_v28 = vsel %vm1727_vm13, %v4037_v10, %v1724_v8  ;;  %v1732_v34 = vor.u32 1.1754944e-38, %v1731_v53  ;;  %v1749_v33 = vmul.f32 %v1748_v6, %v3904_v16  ;;  %v2517_v32 = vld [vmem:[%s4135_s6] ss:$0 sm:$0xff] }
 0x24d   : > { %vm1730_vm15 = vcmp.eq.f32.partialorder %v1729_v9, 8.507059e+37  ;;  %v1709_v27 = vmul.f32 %v1708_v56, %v3892_v11 }
 0x24e   : > { %v1764_v39 = vadd.f32 %v2581_v25, %v1763_v49  ;;  %v1733_v12 = vsel %vm1730_vm15, %v1732_v34, %v1728_v28 }
 0x24f   : > { %v1734_v30 = vmul.f32 %v1733_v12, %v1709_v27 }
 0x250   : > { %v1768_v50 = vsel %vm1767_vm11, %v2581_v25, %v1764_v39 }
 0x251   : > { %v1773_v61 = vsel %vm1770_vm14, %v1772_v4, %v1768_v50  ;;  %v2333_v16 = vclamps-f32 %v1734_v30, 1.0 }
 0x252   : > { %v1774_v52 = vmul.f32 %v1773_v61, %v1749_v33 }
 0x254   : > { %v2334_v60 = vclamps-f32 %v1774_v52, 1.0 }
 0x256   : > { %2041 = vmatmul.bf16.gmra.mxu2 %v1958_v38  ;;  %v1959_v11 = vpack.c.bf16 %v2334_v60, %v2333_v16 }
 0x25c   : > { %v2052_v43 = vpop.f32.mrf.mxu3 }
 0x25d   : > { %v2053_v48 = vadd.f32 %v2517_v32, %v2052_v43 }
 0x25f   : > { %2074 = vst [vmem:[%s4077_s29 + $0x60] sm:$0xff] %v2053_v48 }
 0x264   : > { %v2054_v35 = vpop.f32.mrf.mxu3 }
 0x265   : > { %v2055_v37 = vadd.f32 %v2517_v32, %v2054_v35 }
 0x266   : > { %2046 = vmatmul.bf16.gmra.mxu2 %v1959_v11 }
 0x267   : > { %2075 = vst [vmem:[%s4077_s29 + $0x68] sm:$0xff] %v2055_v37 }
 0x271   : > { %v2022_v18 = vpop.f32.mrf.mxu2 }
 0x272   : > { %v2023_v42 = vadd.f32 %v2517_v32, %v2022_v18 }
 0x274   : > { %2062 = vst [vmem:[%s4077_s29] sm:$0xff] %v2023_v42 }
 0x279   : > { %v2024_v22 = vpop.f32.mrf.mxu2 }
 0x27a   : > { %v2025_v44 = vadd.f32 %v2517_v32, %v2024_v22 }
 0x27c   : > { %2063 = vst [vmem:[%s4077_s29 + $0x8] sm:$0xff] %v2025_v44 }
 0x28a   : > { %v2027_v10 = vpop.f32.mrf.mxu2 }
 0x28b   : > { %v2028_v15 = vadd.f32 %v2517_v32, %v2027_v10 }
 0x28d   : > { %2064 = vst [vmem:[%s4077_s29 + $0x10] sm:$0xff] %v2028_v15 }
 0x292   : > { %v2029_v51 = vpop.f32.mrf.mxu2 }
 0x293   : > { %v2030_v17 = vadd.f32 %v2517_v32, %v2029_v51 }
 0x295   : > { %2065 = vst [vmem:[%s4077_s29 + $0x18] sm:$0xff] %v2030_v17 }
 0x2a0   : > { %v2057_v45 = vpop.f32.mrf.mxu3 }
 0x2a1   : > { %v2058_v29 = vadd.f32 %v2517_v32, %v2057_v45 }
 0x2a3   : > { %2076 = vst [vmem:[%s4077_s29 + $0x70] sm:$0xff] %v2058_v29 }
 0x2a8   : > { %v2059_v26 = vpop.f32.mrf.mxu3 }
 0x2a9   : > { %v2060_v58 = vadd.f32 %v2517_v32, %v2059_v26 }
 0x2ab   : > { %2077 = vst [vmem:[%s4077_s29 + $0x78] sm:$0xff] %v2060_v58 }
 0x2b9   : > { %v2032_v3 = vpop.f32.mrf.mxu2 }
 0x2ba   : > { %v2033_v59 = vadd.f32 %v2517_v32, %v2032_v3 }
 0x2bc   : > { %2066 = vst [vmem:[%s4077_s29 + $0x20] sm:$0xff] %v2033_v59 }
 0x2c1   : > { %v2034_v13 = vpop.f32.mrf.mxu2 }
 0x2c2   : > { %v2035_v1 = vadd.f32 %v2517_v32, %v2034_v13 }
 0x2c4   : > { %2067 = vst [vmem:[%s4077_s29 + $0x28] sm:$0xff] %v2035_v1 }
 0x2c9   : > { %v2037_v7 = vpop.f32.mrf.mxu2 }
 0x2ca   : > { %v2038_v19 = vadd.f32 %v2517_v32, %v2037_v7 }
 0x2cc   : > { %2068 = vst [vmem:[%s4077_s29 + $0x30] sm:$0xff] %v2038_v19 }
 0x2d1   : > { %v2039_v62 = vpop.f32.mrf.mxu2 }
 0x2d2   : > { %v2040_v0 = vadd.f32 %v2517_v32, %v2039_v62 }
 0x2d4   : > { %2069 = vst [vmem:[%s4077_s29 + $0x38] sm:$0xff] %v2040_v0 }
 0x2d9   : > { %v2042_v25 = vpop.f32.mrf.mxu2 }
 0x2da   : > { %v2043_v46 = vadd.f32 %v2517_v32, %v2042_v25 }
 0x2dc   : > { %2070 = vst [vmem:[%s4077_s29 + $0x40] sm:$0xff] %v2043_v46 }
 0x2e1   : > { %v2044_v40 = vpop.f32.mrf.mxu2 }
 0x2e2   : > { %v2045_v36 = vadd.f32 %v2517_v32, %v2044_v40 }
 0x2e4   : > { %2071 = vst [vmem:[%s4077_s29 + $0x48] sm:$0xff] %v2045_v36 }
 0x2e9   : > { %v2047_v54 = vpop.f32.mrf.mxu2 }
 0x2ea   : > { %v2048_v20 = vadd.f32 %v2517_v32, %v2047_v54 }
 0x2ec   : > { %2072 = vst [vmem:[%s4077_s29 + $0x50] sm:$0xff] %v2048_v20 }
 0x2f1   : > { %v2049_v41 = vpop.f32.mrf.mxu2 }
 0x2f2   : > { %v2050_v14 = vadd.f32 %v2517_v32, %v2049_v41 }
 0x2f4   : > { %2073 = vst [vmem:[%s4077_s29 + $0x58] sm:$0xff] %v2050_v14 }
 0x2f5   : > { %2729 = shalt.err (!%p2726_p10)
}
 0x2f6   : > { %s2783_s15 = smov 128   ;;  %s2784_s29 = smov 8  }
 0x2f7   : > { %2448 = dma.vmem_to_hbm [thread:$0]  (%p2916_p3), %s2092_s1, 2048, %s2094_s23, %s2079_s30, %s2783_s15, %s2783_s15, %s2784_s29  }
 0x2f8 PF: > { %s2108_s9 = sand.u32 1, %s2764_s24   ;;  %p4193_p12 = scmp.ge.s32.totalorder %s2776_s27, 2 }
 0x2f9   : > { %s2109_s21 = scalar_lea.sflag [#allocation4], %s2108_s9 }
 0x2fa   : > { %p2465_p13 = pnand %p4193_p12, %p2860_p6 }
 0x2fc   : > { %p2466_p0 = pneg %p2465_p13 }
 0x2fe   : > { %2759 = dma.done.wait (%p2466_p0), %s2109_s21, 2048  }
 0x2ff   : > { %2761 = vsyncadd (%p2466_p0), %s2109_s21, 4294965248  ;;  %p22_p5 = scmp.ge.s32.totalorder %s2898_s13, 4   ;;  %s4194_s24 = smov %s2768_s25 }
 0x300   : > { %s4195_s25 = smov %s2772_s26  ;;  %s4196_s26 = smov %s2912_s17 }
 0x301   : > { %s4197_s27 = smov %s2898_s13  ;;  %24 = sbr.rel (!%p22_p5) target bundleno = 9 (0x9), region = 105 }
 0x306   :  { %2115 = vsyncpa [#allocation3], 1 }
 0x307   :  { %2117 = vsyncpa [#allocation3 + $0x1], 1 }
 0x308   :  { %2118 = vsyncpa [#allocation6], 1 }
 0x309   :  { %2119 = vsyncpa [#allocation9], 1 }
 0x30a   :  { %2120 = vsyncpa [#allocation4], 1 }
 0x30b   :  { %2122 = vsyncpa [#allocation4 + $0x1], 1 }

// kernel: tpu_custom_call.1
= control target key start
LH: loop header
LB: loop body
LE: loop exit
PB: predicated region body
PF: predicated region fallthrough
CT: control target
= control target key end

     0   :  { %s4129_s0 = inlined_call_operand.hbm [shape: bf16[256,128], index: 0, kind: input, shape index: {}]   ;;  %s4130_s1 = inlined_call_operand.hbm [shape: bf16[128,128], index: 1, kind: input, shape index: {}]   ;;  %s4131_s2 = inlined_call_operand.vmem [shape: f32[1,128], index: 2, kind: input, shape index: {}]   ;;  %s4132_s3 = inlined_call_operand.hbm [shape: bf16[128,128], index: 3, kind: input, shape index: {}]   ;;  %s4133_s4 = inlined_call_operand.vmem [shape: f32[1,128], index: 4, kind: input, shape index: {}]   ;;  %s4134_s5 = inlined_call_operand.hbm [shape: bf16[128,128], index: 5, kind: input, shape index: {}]   ;;  %s4135_s6 = inlined_call_operand.vmem [shape: f32[1,128], index: 6, kind: input, shape index: {}]   ;;  %s4136_s7 = inlined_call_operand.hbm [shape: f32[256,128], index: 7, kind: output, shape index: {}]  }
   0x1   :  { %4139 = sst [smem:[#allocation15_spill]] %s4130_s1 }
   0x2   :  { %12 = vsyncpa [#allocation3], 0 }
   0x3   :  { %14 = vsyncpa [#allocation3 + $0x1], 0 }
   0x4   :  { %15 = vsyncpa [#allocation6], 0 }
   0x5   :  { %16 = vsyncpa [#allocation9], 0 }
   0x6   :  { %17 = vsyncpa [#allocation4], 0 }
   0x7   :  { %19 = vsyncpa [#allocation4 + $0x1], 0  ;;  %s2825_s24 = smov 0   ;;  %s2827_s25 = smov 0  }
   0x8   :  { %s2829_s26 = smov 0   ;;  %s2831_s27 = smov 0  }
   0x9 LB: > { %s2846_s28 = sadd.s32 4294967295, %s2776_s27   ;;  %s2196_s29 = sadd.s32 4294967294, %s2776_s27   ;;  %s2776_s27 = sphi %s2831_s27, %s4197_s27   ;;  %s2772_s26 = sphi %s2829_s26, %s4196_s26   ;;  %s2768_s25 = sphi %s2827_s25, %s4195_s25   ;;  %s2764_s24 = sphi %s2825_s24, %s4194_s24  }
   0xa   : > { %p45_p0 = scmp.ne.s32.totalorder %s2768_s25, %s2764_s24  ;;  %p46_p1 = scmp.eq.s32.totalorder %s2846_s28, 0 }
   0xb   : > { %p195_p2 = scmp.eq.s32.totalorder %s2846_s28, 1  ;;  %p201_p3 = scmp.eq.s32.totalorder %s2196_s29, 1 }
   0xc   : > { %p2855_p4 = por %p46_p1, %p45_p0  ;;  %p2197_p5 = scmp.ge.s32.totalorder %s2776_s27, 1 }
   0xd   : > { %p2860_p6 = por %p201_p3, %p45_p0  ;;  %p208_p7 = scmp.lt.s32.totalorder %s2776_s27, 3 }
   0xe   : > { %s4142_s1 = sld [smem:[#allocation15_spill]]  ;;  %s2778_s13 = smov [#allocation5]  }
   0xf   : > { %p2868_p8 = pnand %p2197_p5, %p208_p7  ;;  %s221_s14 = sshll.u32 %s2778_s13, 4  ;;  %s222_s14 = int_to_ptr.vmem [resolvable:$true] %s221_s14 }
  0x10   : > { %s236_s18 = sshll.u32 %s4132_s3, 4  ;;  %s4137_s19 = smov 64   ;;  %s237_s18 = int_to_ptr.hbm [resolvable:$true] %s236_s18 }
  0x11   : > { %p2450_p9 = pneg %p2868_p8  ;;  %s4138_s20 = smov 4  }
  0x12   : > { %s2781_s21 = smov [#allocation7]   ;;  %s253_s9 = sshll.u32 %s4134_s5, 4  ;;  %s254_s9 = int_to_ptr.hbm [resolvable:$true] %s253_s9 }
  0x13   : > { %p2876_p10 = pnand %p2450_p9, %p46_p1  ;;  %s238_s22 = sshll.u32 %s2781_s21, 4  ;;  %s239_s22 = int_to_ptr.vmem [resolvable:$true] %s238_s22 }
  0x14   : > { %s219_s11 = sshll.u32 %s4142_s1, 4  ;;  %s2782_s10 = smov [#allocation8]   ;;  %s220_s11 = int_to_ptr.hbm [resolvable:$true] %s219_s11 }
  0x15   : > { %2453 = dma.hbm_to_vmem [thread:$0]  (!%p2876_p10), %s220_s11, 1024, %s222_s14, [#allocation6], %s4137_s19, %s4137_s19, %s4138_s20  }
  0x16   : > { %2456 = dma.hbm_to_vmem [thread:$0]  (!%p2876_p10), %s237_s18, 1024, %s239_s22, [#allocation6], %s4137_s19, %s4137_s19, %s4138_s20  }
  0x17   : > { %s255_s11 = sshll.u32 %s2782_s10, 4  ;;  %s2898_s13 = sadd.s32 1, %s2776_s27   ;;  %s256_s11 = int_to_ptr.vmem [resolvable:$true] %s255_s11 }
  0x18   : > { %2459 = dma.hbm_to_vmem [thread:$0]  (!%p2876_p10), %s254_s9, 1024, %s256_s11, [#allocation9], %s4137_s19, %s4137_s19, %s4138_s20  }
  0x19   : > { %s29_s14 = ssub.s32 %s2776_s27, %s2898_s13  ;;  %s32_s16 = sadd.s32 1, %s2772_s26 }
  0x1a   : > { %p30_p12 = scmp.eq.s32.totalorder %s29_s14, 0  ;;  %p39_p13 = scmp.ne.s32.totalorder %s2772_s26, %s2768_s25 }
  0x1b   : > { %p40_p0 = scmp.eq.s32.totalorder %s2776_s27, 0  ;;  %p2471_p5 = scmp.lt.s32.totalorder %s2776_s27, 2 }
  0x1c   : > { %s2912_s17 = scalar_select %p30_p12, %s2772_s26, %s32_s16  }
  0x1d   : > { %p2916_p3 = por %p195_p2, %p39_p13  ;;  %s272_s21 = sand.u32 1, %s2772_s26  }
  0x1e   : > { %s2376_s15 = sshll.u32 %s2776_s27, 6  ;;  %p41_p7 = por %p40_p0, %p39_p13 }
  0x1f   : > { %s2202_s22 = sshll.u32 %s272_s21, 6  ;;  %s281_s9 = scalar_lea.hbm %s4129_s0, %s2376_s15 }
  0x20   : > { %s282_s10 = sshll.u32 %s281_s9, 4  ;;  %s276_s11 = scalar_lea.vmem [#allocation2], %s2202_s22  ;;  %s283_s10 = int_to_ptr.hbm [resolvable:$true] %s282_s10 }
  0x21   : > { %s284_s14 = sshll.u32 %s276_s11, 4  ;;  %p2926_p9 = pnand %p2471_p5, %p41_p7  ;;  %s285_s14 = int_to_ptr.vmem [resolvable:$true] %s284_s14 }
  0x22   : > { %s273_s19 = scalar_lea.sflag [#allocation3], %s272_s21  ;;  %s2672_s20 = sshra.s32 %s283_s10, 4  ;;  %s2673_s20 = int_to_ptr.hbm [resolvable:$true] %s2672_s20 }
  0x23   : > { %s2674_s1 = scalar_lea.hbm %s2673_s20, 64  ;;  %p2676_p10 = pneg %p2926_p9 }
  0x24   : > { %p2675_p2 = scmp.ne.s32.totalorder %s2673_s20, %s2674_s1  ;;  %s2679_s22 = scalar_lea.hbm %s4129_s0, 128 }
  0x25   : > { %p2680_p0 = scmp.lt.s32.totalorder %s2673_s20, %s4129_s0  ;;  %p2681_p5 = scmp.lt.s32.totalorder %s2679_s22, %s2674_s1 }
  0x26   : > { %p2677_p12 = pnand %p2676_p10, %p2675_p2 }
  0x27   : > { %p2682_p7 = por %p2681_p5, %p2680_p0 }
  0x28   : > { %p2678_p13 = pneg %p2677_p12 }
  0x2a   : > { %p2683_p11 = pnand %p2682_p7, %p2678_p13 }
  0x2c   : > { %2686 = shalt.err (!%p2683_p11)
}
  0x2d   : > { %s4147_s21 = smov 4   ;;  %s4148_s11 = smov 64  }
  0x2e   : > { %2463 = dma.hbm_to_vmem [thread:$0]  (!%p2926_p9), %s283_s10, 1024, %s285_s14, %s273_s19, %s4148_s11, %s4148_s11, %s4147_s21  }
  0x2f   : > { %296 = sbr.rel (%p2868_p8) target bundleno = 760 (0x2f8), region = 48  ;;  %s2946_s15 = sand.u32 (!%p2868_p8), 1, %s2768_s25  }
  0x30   : > { %s2206_s20 = sshll.u32 (!%p2868_p8), %s2946_s15, 6  ;;  %s299_s1 = scalar_lea.sflag (!%p2868_p8), [#allocation3], %s2946_s15 }
  0x31   : > { %s2950_s23 = scalar_lea.vmem (!%p2868_p8), [#allocation2], %s2206_s20 }
  0x34   : > { %2747 = dma.done.wait (%p2855_p4), %s299_s1, 1024  }
  0x35   : > { %2749 = vsyncadd (%p2855_p4), %s299_s1, 4294966272 }
  0x36   : > { %2751 = dma.done.wait (%p46_p1), [#allocation6], 2048  }
  0x37   : > { %2753 = vsyncadd (%p46_p1), [#allocation6], 4294965248 }
  0x38   : > { %2755 = dma.done.wait (%p46_p1), [#allocation9], 1024  }
  0x39   : > { %2757 = vsyncadd (%p46_p1), [#allocation9], 4294966272  ;;  %v2392_v0 = vld [vmem:[#allocation5 + $0x38] sm:$0xff]  ;;  %v2391_v1 = vld [vmem:[#allocation5 + $0x30] sm:$0xff]  ;;  %s2210_s14 = sshll.u32 %s2946_s15, 7  ;;  %s2409_s9 = sshll.u32 %s2846_s28, 7 }
  0x3a   : > { %483 = vmatpush.bf16.msra.mxu0 %v2392_v0  ;;  %2410 = vmatpush.bf16.msra.mxu3 %v2392_v0  ;;  %v2390_v2 = vld [vmem:[#allocation5 + $0x28] sm:$0xff]  ;;  %v2389_v3 = vld [vmem:[#allocation5 + $0x20] sm:$0xff]  ;;  %v2388_v4 = vld [vmem:[#allocation5 + $0x18] sm:$0xff]  ;;  %s4077_s29 = scalar_lea.vmem [#allocation10], %s2210_s14  ;;  %s2090_s20 = scalar_lea.hbm %s4136_s7, %s2409_s9 }
  0x3b   : > { %v2387_v5 = vld [vmem:[#allocation5 + $0x10] sm:$0xff]  ;;  %v2386_v6 = vld [vmem:[#allocation5 + $0x8] sm:$0xff]  ;;  %v2385_v7 = vld [vmem:[#allocation5] sm:$0xff]  ;;  %s2091_s1 = sshll.u32 %s4077_s29, 4  ;;  %s2079_s30 = scalar_lea.sflag [#allocation4], %s2946_s15  ;;  %s2092_s1 = int_to_ptr.vmem [resolvable:$true] %s2091_s1 }
  0x3c   : > { %v2377_v8 = vld [vmem:[%s2950_s23] sm:$0xff]  ;;  %v2383_v9 = vld [vmem:[%s2950_s23 + $0x30] sm:$0xff]  ;;  %v2378_v10 = vld [vmem:[%s2950_s23 + $0x8] sm:$0xff]  ;;  %s2722_s14 = scalar_lea.hbm %s4136_s7, 256 }
  0x3d   : > { %v2384_v11 = vld [vmem:[%s2950_s23 + $0x38] sm:$0xff]  ;;  %v2379_v12 = vld [vmem:[%s2950_s23 + $0x10] sm:$0xff]  ;;  %v2381_v14 = vld [vmem:[%s2950_s23 + $0x20] sm:$0xff] }
  0x3e   : > { %484 = vmatpush.bf16.msra.mxu0 %v2391_v1  ;;  %2411 = vmatpush.bf16.msra.mxu3 %v2391_v1  ;;  %v2380_v13 = vld [vmem:[%s2950_s23 + $0x18] sm:$0xff]  ;;  %v2382_v15 = vld [vmem:[%s2950_s23 + $0x28] sm:$0xff]  ;;  %v2975_v18 = vld [vmem:[%s4131_s2] ss:$0 sm:$0xff]  ;;  %s2093_s23 = sshll.u32 %s2090_s20, 4  ;;  %s2094_s23 = int_to_ptr.hbm [resolvable:$true] %s2093_s23 }
  0x3f   : > { %v2400_v17 = vld [vmem:[#allocation7 + $0x38] sm:$0xff]  ;;  %v2399_v19 = vld [vmem:[#allocation7 + $0x30] sm:$0xff]  ;;  %v2398_v27 = vld [vmem:[#allocation7 + $0x28] sm:$0xff]  ;;  %s2716_s12 = sshra.s32 %s2094_s23, 4  ;;  %s2717_s12 = int_to_ptr.hbm [resolvable:$true] %s2716_s12 }
  0x40   : > { %1248 = vmatpush.bf16.msra.mxu1 %v2400_v17  ;;  %v2397_v35 = vld [vmem:[#allocation7 + $0x20] sm:$0xff]  ;;  %v2396_v46 = vld [vmem:[#allocation7 + $0x18] sm:$0xff]  ;;  %v2395_v57 = vld [vmem:[#allocation7 + $0x10] sm:$0xff]  ;;  %s2718_s19 = scalar_lea.hbm %s2717_s12, 128  ;;  %p2723_p11 = scmp.lt.s32.totalorder %s2717_s12, %s4136_s7 }
  0x41   : > { %p2719_p1 = scmp.ne.s32.totalorder %s2717_s12, %s2718_s19  ;;  %p2724_p9 = scmp.lt.s32.totalorder %s2722_s14, %s2718_s19 }
  0x42   : > { %485 = vmatpush.bf16.msra.mxu0 %v2390_v2  ;;  %2412 = vmatpush.bf16.msra.mxu3 %v2390_v2 }
  0x43   : > { %p2720_p4 = pnand %p2719_p1, %p2916_p3  ;;  %p2725_p2 = por %p2724_p9, %p2723_p11 }
  0x44   : > { %1249 = vmatpush.bf16.msra.mxu1 %v2399_v19 }
  0x45   : > { %p2721_p8 = pneg %p2720_p4 }
  0x46   : > { %486 = vmatpush.bf16.msra.mxu0 %v2389_v3  ;;  %2413 = vmatpush.bf16.msra.mxu3 %v2389_v3 }
  0x47   : > { %p2726_p10 = pnand %p2725_p2, %p2721_p8 }
  0x48   : > { %1250 = vmatpush.bf16.msra.mxu1 %v2398_v27 }
  0x4a   : > { %487 = vmatpush.bf16.msra.mxu0 %v2388_v4  ;;  %2414 = vmatpush.bf16.msra.mxu3 %v2388_v4 }
  0x4c   : > { %1251 = vmatpush.bf16.msra.mxu1 %v2397_v35 }
  0x4e   : > { %488 = vmatpush.bf16.msra.mxu0 %v2387_v5  ;;  %2415 = vmatpush.bf16.msra.mxu3 %v2387_v5 }
  0x50   : > { %1252 = vmatpush.bf16.msra.mxu1 %v2396_v46 }
  0x52   : > { %489 = vmatpush.bf16.msra.mxu0 %v2386_v6  ;;  %2416 = vmatpush.bf16.msra.mxu3 %v2386_v6 }
  0x54   : > { %1253 = vmatpush.bf16.msra.mxu1 %v2395_v57 }
  0x56   : > { %490 = vmatpush.bf16.msra.mxu0 %v2385_v7  ;;  %2417 = vmatpush.bf16.msra.mxu3 %v2385_v7 }
  0x59   : > { %491 = vmatmul.bf16.vlgmr.msra.gmra.mxu0 %v2377_v8  ;;  %521 = vmatmul.bf16.vlgmr.msra.gmra.mxu3 %v2383_v9  ;;  %v2394_v8 = vld [vmem:[#allocation7 + $0x8] sm:$0xff] }
  0x5a   : > { %2418 = vmatpush.bf16.msrb.mxu3 %v2400_v17  ;;  %1254 = vmatpush.bf16.msra.mxu1 %v2394_v8 }
  0x5e   : > { %2419 = vmatpush.bf16.msrb.mxu3 %v2399_v19 }
  0x62   : > { %2420 = vmatpush.bf16.msrb.mxu3 %v2398_v27 }
  0x66   : > { %2421 = vmatpush.bf16.msrb.mxu3 %v2397_v35 }
  0x69   : > { %496 = vmatmul.bf16.gmra.mxu0 %v2378_v10  ;;  %526 = vmatmul.bf16.gmra.mxu3 %v2384_v11 }
  0x6a   : > { %2422 = vmatpush.bf16.msrb.mxu3 %v2396_v46 }
  0x6e   : > { %2423 = vmatpush.bf16.msrb.mxu3 %v2395_v57 }
  0x72   : > { %2424 = vmatpush.bf16.msrb.mxu3 %v2394_v8 }
  0x79   : > { %501 = vmatmul.bf16.gmra.mxu0 %v2379_v12 }
  0x89   : > { %506 = vmatmul.bf16.gmra.mxu0 %v2380_v13 }
  0x99   : > { %511 = vmatmul.bf16.gmra.mxu0 %v2381_v14 }
  0xa9   : > { %516 = vmatmul.bf16.gmra.mxu0 %v2382_v15 }
  0xd6   : > { %v492_v16 = vpop.f32.mrf.mxu0 }
  0xd7   : > { %v2978_v20 = vadd.f32 %v2975_v18, %v492_v16 }
  0xd9   : > { %v532_v24 = vmul.f32 %v2978_v20, %v2978_v20 }
  0xdb   : > { %v2994_v30 = vmin.f32 %v532_v24, 16.0 }
  0xdc   : > { %v522_v21 = vpop.f32.mrf.mxu3 }
  0xdd   : > { %v2981_v22 = vadd.f32 %v2975_v18, %v522_v21  ;;  %v534_v40 = vmul.f32 2.1237322e-06, %v2994_v30  ;;  %v545_v50 = vmul.f32 3.8918573e-05, %v2994_v30 }
  0xde   : > { %v494_v23 = vpop.f32.mrf.mxu0 }
  0xdf   : > { %v1012_v25 = vmul.f32 %v2981_v22, %v2981_v22  ;;  %v2988_v26 = vadd.f32 %v2975_v18, %v494_v23  ;;  %v535_v51 = vadd.f32 0.00028619796, %v534_v40  ;;  %v546_v4 = vadd.f32 0.001143296, %v545_v50 }
  0xe1   : > { %v2990_v28 = vmin.f32 %v1012_v25, 16.0  ;;  %v572_v29 = vmul.f32 %v2988_v26, %v2988_v26  ;;  %v536_v1 = vmul.f32 %v535_v51, %v2994_v30  ;;  %v547_v17 = vmul.f32 %v546_v4, %v2994_v30 }
  0xe3   : > { %v1014_v31 = vmul.f32 2.1237322e-06, %v2990_v28  ;;  %v1025_v32 = vmul.f32 3.8918573e-05, %v2990_v28  ;;  %v2998_v33 = vmin.f32 %v572_v29, 16.0 }
  0xe4   : > { %v524_v34 = vpop.f32.mrf.mxu3  ;;  %v537_v14 = vadd.f32 0.0036580483, %v536_v1 }
  0xe5   : > { %v1015_v36 = vadd.f32 0.00028619796, %v1014_v31  ;;  %v1026_v37 = vadd.f32 0.001143296, %v1025_v32  ;;  %v3001_v38 = vadd.f32 %v2975_v18, %v524_v34  ;;  %v574_v42 = vmul.f32 2.1237322e-06, %v2998_v33 }
  0xe6   : > { %v497_v39 = vpop.f32.mrf.mxu0  ;;  %v2393_v31 = vld [vmem:[#allocation7] sm:$0xff] }
  0xe7   : > { %v1027_v41 = vmul.f32 %v1026_v37, %v2990_v28  ;;  %v1052_v43 = vmul.f32 %v3001_v38, %v3001_v38  ;;  %v1016_v44 = vmul.f32 %v1015_v36, %v2990_v28  ;;  %v3010_v45 = vadd.f32 %v2975_v18, %v497_v39  ;;  %1255 = vmatpush.bf16.msra.mxu1 %v2393_v31 }
  0xe8   : > { %v575_v53 = vadd.f32 0.00028619796, %v574_v42  ;;  %v538_v36 = vmul.f32 %v537_v14, %v2994_v30  ;;  %v548_v39 = vadd.f32 0.014752088, %v547_v17  ;;  %2425 = vmatpush.bf16.msrb.mxu3 %v2393_v31 }
  0xe9   : > { %v1028_v47 = vadd.f32 0.014752088, %v1027_v41  ;;  %v3012_v48 = vmin.f32 %v1052_v43, 16.0  ;;  %v612_v49 = vmul.f32 %v3010_v45, %v3010_v45  ;;  %v1017_v55 = vadd.f32 0.0036580483, %v1016_v44 }
  0xea   : > { %v576_v6 = vmul.f32 %v575_v53, %v2998_v33  ;;  %v539_v50 = vadd.f32 0.05243302, %v538_v36  ;;  %v549_v53 = vmul.f32 %v548_v39, %v2994_v30 }
  0xeb   : > { %v1029_v52 = vmul.f32 %v1028_v47, %v2990_v28  ;;  %v1054_v54 = vmul.f32 2.1237322e-06, %v3012_v48  ;;  %v1065_v56 = vmul.f32 3.8918573e-05, %v3012_v48  ;;  %v3020_v60 = vmin.f32 %v612_v49, 16.0 }
  0xec   : > { %v527_v61 = vpop.f32.mrf.mxu3  ;;  %v1018_v5 = vmul.f32 %v1017_v55, %v2990_v28  ;;  %v577_v21 = vadd.f32 0.0036580483, %v576_v6  ;;  %v540_v4 = vmul.f32 %v539_v50, %v2994_v30  ;;  %v550_v6 = vadd.f32 0.112945676, %v549_v53 }
  0xed   : > { %v1030_v58 = vadd.f32 0.112945676, %v1029_v52  ;;  %v1055_v59 = vadd.f32 0.00028619796, %v1054_v54  ;;  %v1066_v62 = vadd.f32 0.001143296, %v1065_v56  ;;  %v3023_v63 = vadd.f32 %v2975_v18, %v527_v61 }
  0xee   : > { %v499_v0 = vpop.f32.mrf.mxu0  ;;  %v614_v11 = vmul.f32 2.1237322e-06, %v3020_v60  ;;  %v1019_v19 = vadd.f32 0.05243302, %v1018_v5  ;;  %v578_v41 = vmul.f32 %v577_v21, %v2998_v33  ;;  %v541_v17 = vadd.f32 0.18741608, %v540_v4 }
  0xef   : > { %v1031_v2 = vmul.f32 %v1030_v58, %v2990_v28  ;;  %v1056_v3 = vmul.f32 %v1055_v59, %v3012_v48  ;;  %v1067_v7 = vmul.f32 %v1066_v62, %v3012_v48  ;;  %v1092_v12 = vmul.f32 %v3023_v63, %v3023_v63 }
  0xf0   : > { %v3036_v16 = vadd.f32 %v2975_v18, %v499_v0  ;;  %v615_v27 = vadd.f32 0.00028619796, %v614_v11  ;;  %v1020_v40 = vmul.f32 %v1019_v19, %v2990_v28  ;;  %v579_v55 = vadd.f32 0.05243302, %v578_v41 }
  0xf1   : > { %v1032_v9 = vadd.f32 0.4994258, %v1031_v2  ;;  %v1057_v10 = vadd.f32 0.0036580483, %v1056_v3  ;;  %v1068_v13 = vadd.f32 0.014752088, %v1067_v7  ;;  %v551_v21 = vmul.f32 %v550_v6, %v2994_v30 }
  0xf2   : > { %v3043_v29 = vmin.f32 %v1092_v12, 16.0  ;;  %v652_v34 = vmul.f32 %v3036_v16, %v3036_v16  ;;  %v616_v46 = vmul.f32 %v615_v27, %v3020_v60  ;;  %v1021_v54 = vadd.f32 0.18741608, %v1020_v40 }
  0xf3   : > { %v1033_v15 = vmul.f32 %v1032_v9, %v2990_v28  ;;  %v1069_v23 = vmul.f32 %v1068_v13, %v3012_v48  ;;  %v1058_v25 = vmul.f32 %v1057_v10, %v3012_v48  ;;  %v580_v8 = vmul.f32 %v579_v55, %v2998_v33 }
  0xf4   : > { %v1094_v37 = vmul.f32 2.1237322e-06, %v3043_v29  ;;  %v529_v43 = vpop.f32.mrf.mxu3  ;;  %v3054_v49 = vmin.f32 %v652_v34, 16.0  ;;  %v617_v59 = vadd.f32 0.0036580483, %v616_v46  ;;  %v1022_v7 = vmul.f32 %v1021_v54, %v2990_v28 }
  0xf5   : > { %v3040_v24 = vadd.f32 1.0, %v1033_v15  ;;  %v1070_v32 = vadd.f32 0.112945676, %v1069_v23  ;;  %v1059_v44 = vadd.f32 0.05243302, %v1058_v25  ;;  %v3057_v52 = vadd.f32 %v2975_v18, %v529_v43 }
  0xf6   : > { %v502_v35 = vpop.f32.mrf.mxu0  ;;  %v1095_v51 = vadd.f32 0.00028619796, %v1094_v37  ;;  %v654_v1 = vmul.f32 2.1237322e-06, %v3054_v49  ;;  %v618_v9 = vmul.f32 %v617_v59, %v3020_v60  ;;  %v585_v11 = vmul.f32 3.8918573e-05, %v2998_v33 }
  0xf7   : > { %2518 = vrcp.f32 %v3040_v24  ;;  %v1071_v42 = vmul.f32 %v1070_v32, %v3012_v48  ;;  %v1060_v58 = vmul.f32 %v1059_v44, %v3012_v48  ;;  %v1132_v61 = vmul.f32 %v3057_v52, %v3057_v52 }
  0xf8   : > { %v3072_v2 = vadd.f32 %v2975_v18, %v502_v35  ;;  %v1096_v5 = vmul.f32 %v1095_v51, %v3043_v29  ;;  %v655_v14 = vadd.f32 0.00028619796, %v654_v1  ;;  %v1023_v23 = vadd.f32 1.1283791, %v1022_v7 }
  0xf9   : > { %v1072_v47 = vadd.f32 0.4994258, %v1071_v42  ;;  %v3080_v10 = vmin.f32 %v1132_v61, 16.0  ;;  %v1061_v13 = vadd.f32 0.18741608, %v1060_v58  ;;  %vm1040_vm0 = vweird.f32 %v3040_v24 }
  0xfa   : > { %v692_v15 = vmul.f32 %v3072_v2, %v3072_v2  ;;  %v1097_v19 = vadd.f32 0.0036580483, %v1096_v5  ;;  %v581_v25 = vadd.f32 0.18741608, %v580_v8  ;;  %v1044_v31 = vand.u32 2147483647, %v3040_v24 }
  0xfb   : > { %v1073_v56 = vmul.f32 %v1072_v47, %v3012_v48  ;;  %v1134_v28 = vmul.f32 2.1237322e-06, %v3080_v10  ;;  %v1046_v32 = vand.u32 2147483648, %v3040_v24  ;;  %v1062_v37 = vmul.f32 %v1061_v13, %v3012_v48 }
  0xfc   : > { %v3087_v27 = vmin.f32 %v692_v15, 16.0  ;;  %v619_v39 = vadd.f32 0.05243302, %v618_v9  ;;  %v656_v40 = vmul.f32 %v655_v14, %v3054_v49  ;;  %v1098_v43 = vmul.f32 %v1097_v19, %v3043_v29 }
  0xfd   : > { %v3061_v57 = vpop.eup %2518  ;;  %v3068_v0 = vadd.f32 1.0, %v1073_v56  ;;  %v1135_v44 = vadd.f32 0.00028619796, %v1134_v28  ;;  %v552_v46 = vadd.f32 0.4994258, %v551_v21  ;;  %vm3110_vm4 = vcmp.eq.f32.partialorder %v1044_v31, 8.507059e+37 }
  0xfe   : > { %v1036_v62 = vmul.f32 %v3061_v57, %v3040_v24  ;;  %v504_v3 = vpop.f32.mrf.mxu0  ;;  %vm1041_vm1 = vweird.f32 %v3061_v57  ;;  %v694_v50 = vmul.f32 2.1237322e-06, %v3087_v27  ;;  %v657_v58 = vadd.f32 0.0036580483, %v656_v40 }
  0xff   : > { %2520 = vrcp.f32 %v3068_v0  ;;  %v3093_v34 = vadd.f32 %v2975_v18, %v504_v3  ;;  %vm1080_vm2 = vweird.f32 %v3068_v0  ;;  %v1084_v47 = vand.u32 2147483647, %v3068_v0  ;;  %vm3117_vm5 = vmor %vm1040_vm0, %vm1041_vm1 }
 0x100   : > { %v1037_v12 = vsub.f32 1.0, %v1036_v62  ;;  %v1086_v56 = vand.u32 2147483648, %v3068_v0  ;;  %v1136_v62 = vmul.f32 %v1135_v44, %v3080_v10  ;;  %v553_v3 = vmul.f32 %v552_v46, %v2994_v30 }
 0x101   : > { %v732_v48 = vmul.f32 %v3093_v34, %v3093_v34  ;;  %v1047_v4 = vor.u32 1.1754944e-38, %v1046_v32  ;;  %v1063_v5 = vadd.f32 1.1283791, %v1062_v37  ;;  %v620_v24 = vmul.f32 %v619_v39, %v3020_v60 }
 0x102   : > { %v1038_v36 = vmul.f32 %v3061_v57, %v1037_v12  ;;  %v695_v7 = vadd.f32 0.00028619796, %v694_v50  ;;  %vm3132_vm7 = vcmp.eq.f32.partialorder %v1084_v47, 8.507059e+37  ;;  %v1099_v12 = vadd.f32 0.05243302, %v1098_v43 }
 0x103   : > { %v3122_v1 = vmin.f32 %v732_v48, 16.0  ;;  %v1087_v14 = vor.u32 1.1754944e-38, %v1086_v56  ;;  %v658_v15 = vmul.f32 %v657_v58, %v3054_v49  ;;  %v1137_v21 = vadd.f32 0.0036580483, %v1136_v62 }
 0x104   : > { %v1039_v54 = vadd.f32 %v3061_v57, %v1038_v36  ;;  %v3145_v31 = vadd.f32 1.0, %v553_v3  ;;  %v586_v32 = vadd.f32 0.001143296, %v585_v11  ;;  %v542_v36 = vmul.f32 %v541_v17, %v2994_v30 }
 0x105   : > { %v2521_v35 = vpop.eup %2520  ;;  %v734_v19 = vmul.f32 2.1237322e-06, %v3122_v1  ;;  %v1024_v37 = vmul.f32 %v1023_v23, %v2981_v22  ;;  %v696_v39 = vmul.f32 %v695_v7, %v3087_v27  ;;  %v582_v40 = vmul.f32 %v581_v25, %v2998_v33 }
 0x106   : > { %v507_v41 = vpop.f32.mrf.mxu0  ;;  %v1076_v42 = vmul.f32 %v2521_v35, %v3068_v0  ;;  %vm1081_vm3 = vweird.f32 %v2521_v35  ;;  %v1043_v0 = vsel %vm3117_vm5, %v3061_v57, %v1039_v54  ;;  %v621_v43 = vadd.f32 0.18741608, %v620_v24 }
 0x107   : > { %v3107_v53 = vadd.f32 %v2975_v18, %v507_v41  ;;  %vm3127_vm6 = vmor %vm1080_vm2, %vm1081_vm3  ;;  %v1048_v57 = vsel %vm3110_vm4, %v1047_v4, %v1043_v0  ;;  %v1064_v41 = vmul.f32 %v1063_v5, %v3001_v38  ;;  %v1100_v11 = vmul.f32 %v1099_v12, %v3043_v29 }
 0x108   : > { %v1077_v51 = vsub.f32 1.0, %v1076_v42  ;;  %v735_v30 = vadd.f32 0.00028619796, %v734_v19  ;;  %v659_v22 = vadd.f32 0.05243302, %v658_v15  ;;  %v1138_v23 = vmul.f32 %v1137_v21, %v3080_v10 }
 0x109   : > { %v772_v13 = vmul.f32 %v3107_v53, %v3107_v53  ;;  %2522 = vrcp.f32 %v3145_v31  ;;  %v587_v44 = vmul.f32 %v586_v32, %v2998_v33  ;;  %v1049_v25 = vmul.f32 %v1048_v57, %v1024_v37 }
 0x10a   : > { %v1078_v61 = vmul.f32 %v2521_v35, %v1077_v51  ;;  %v697_v46 = vadd.f32 0.0036580483, %v696_v39  ;;  %v543_v51 = vadd.f32 1.1283791, %v542_v36  ;;  %v583_v48 = vadd.f32 1.1283791, %v582_v40 }
 0x10b   : > { %v3154_v42 = vmin.f32 %v772_v13, 16.0  ;;  %v622_v54 = vmul.f32 %v621_v43, %v3020_v60  ;;  %v736_v55 = vmul.f32 %v735_v30, %v3122_v1  ;;  %v1101_v56 = vadd.f32 0.18741608, %v1100_v11 }
 0x10c   : > { %v1079_v8 = vadd.f32 %v2521_v35, %v1078_v61  ;;  %v660_v58 = vmul.f32 %v659_v22, %v3054_v49  ;;  %v1139_v59 = vadd.f32 0.05243302, %v1138_v23  ;;  %v588_v61 = vadd.f32 0.014752088, %v587_v44 }
 0x10d   : > { %v774_v47 = vmul.f32 2.1237322e-06, %v3154_v42  ;;  %v2287_v62 = vclamps-f32 %v1049_v25, 1.0  ;;  %v698_v3 = vmul.f32 %v697_v46, %v3087_v27  ;;  %v625_v4 = vmul.f32 3.8918573e-05, %v3020_v60 }
 0x10e   : > { %v1083_v28 = vsel %vm3127_vm6, %v2521_v35, %v1079_v8  ;;  %v509_v17 = vpop.f32.mrf.mxu0  ;;  %v665_v5 = vmul.f32 3.8918573e-05, %v3054_v49  ;;  %v589_v9 = vmul.f32 %v588_v61, %v2998_v33  ;;  %v3178_v12 = vmul.f32 %v543_v51, %v2978_v20 }
 0x10f   : > { %v1088_v35 = vsel %vm3132_vm7, %v1087_v14, %v1083_v28  ;;  %v3164_v50 = vadd.f32 %v2975_v18, %v509_v17  ;;  %v3172_v6 = vpop.eup %2522  ;;  %v775_v7 = vadd.f32 0.00028619796, %v774_v47  ;;  %v737_v13 = vadd.f32 0.0036580483, %v736_v55 }
 0x110   : > { %v1089_v38 = vmul.f32 %v1088_v35, %v1064_v41  ;;  %v626_v0 = vadd.f32 0.001143296, %v625_v4  ;;  %v666_v14 = vadd.f32 0.001143296, %v665_v5  ;;  %v1102_v15 = vmul.f32 %v1101_v56, %v3043_v29 }
 0x111   : > { %v812_v8 = vmul.f32 %v3164_v50, %v3164_v50  ;;  %v661_v19 = vadd.f32 0.18741608, %v660_v58  ;;  %v1140_v28 = vmul.f32 %v1139_v59, %v3080_v10  ;;  %v590_v21 = vadd.f32 0.112945676, %v589_v9 }
 0x112   : > { %v2288_v24 = vclamps-f32 %v1089_v38, 1.0  ;;  %v623_v32 = vadd.f32 1.1283791, %v622_v54  ;;  %v556_v36 = vmul.f32 %v3172_v6, %v3145_v31  ;;  %v627_v37 = vmul.f32 %v626_v0, %v3020_v60 }
 0x113   : > { %v667_v39 = vmul.f32 %v666_v14, %v3054_v49  ;;  %v3187_v20 = vmul.f32 %v583_v48, %v2988_v26  ;;  %v699_v57 = vadd.f32 0.05243302, %v698_v3  ;;  %v776_v40 = vmul.f32 %v775_v7, %v3154_v42 }
 0x114   : > { %v3190_v41 = vmin.f32 %v812_v8, 16.0  ;;  %v738_v35 = vmul.f32 %v737_v13, %v3122_v1  ;;  %v591_v43 = vmul.f32 %v590_v21, %v2998_v33  ;;  %v1195_v11 = vpack.c.bf16 %v2288_v24, %v2287_v62 }
 0x115   : > { %v1105_v30 = vmul.f32 3.8918573e-05, %v3043_v29  ;;  %v1103_v17 = vadd.f32 1.1283791, %v1102_v15  ;;  %v662_v22 = vmul.f32 %v661_v19, %v3054_v49  ;;  %v1141_v23 = vadd.f32 0.18741608, %v1140_v28 }
 0x116   : > { %v628_v44 = vadd.f32 0.014752088, %v627_v37  ;;  %v3197_v26 = vmul.f32 %v623_v32, %v3010_v45  ;;  %v557_v25 = vsub.f32 1.0, %v556_v36  ;;  %v592_v46 = vadd.f32 0.4994258, %v591_v43  ;;  %1286 = vmatmul.bf16.vlgmr.msrb.gmra.mxu3 %v1195_v11  ;;  %v512_v58 = vpop.f32.mrf.mxu0 }
 0x117   : > { %v668_v38 = vadd.f32 0.014752088, %v667_v39  ;;  %v700_v47 = vmul.f32 %v699_v57, %v3087_v27  ;;  %v777_v51 = vadd.f32 0.0036580483, %v776_v40  ;;  %v814_v48 = vmul.f32 2.1237322e-06, %v3190_v41 }
 0x118   : > { %v629_v54 = vmul.f32 %v628_v44, %v3020_v60  ;;  %v739_v55 = vadd.f32 0.05243302, %v738_v35  ;;  %v593_v56 = vmul.f32 %v592_v46, %v2998_v33  ;;  %v1106_v61 = vadd.f32 0.001143296, %v1105_v30 }
 0x119   : > { %v669_v59 = vmul.f32 %v668_v38, %v3054_v49  ;;  %v3205_v45 = vmul.f32 %v1103_v17, %v3023_v63  ;;  %v663_v62 = vadd.f32 1.1283791, %v662_v22  ;;  %vm560_vm8 = vweird.f32 %v3145_v31 }
 0x11a   : > { %v630_v3 = vadd.f32 0.112945676, %v629_v54  ;;  %v558_v4 = vmul.f32 %v3172_v6, %v557_v25  ;;  %v3209_v5 = vadd.f32 1.0, %v593_v56  ;;  %v1107_v7 = vmul.f32 %v1106_v61, %v3043_v29 }
 0x11b   : > { %v670_v24 = vadd.f32 0.112945676, %v669_v59  ;;  %v701_v8 = vadd.f32 0.18741608, %v700_v47  ;;  %v778_v33 = vmul.f32 %v777_v51, %v3154_v42  ;;  %v815_v9 = vadd.f32 0.00028619796, %v814_v48 }
 0x11c   : > { %v631_v13 = vmul.f32 %v630_v3, %v3020_v60  ;;  %v1142_v63 = vmul.f32 %v1141_v23, %v3080_v10  ;;  %v740_v0 = vmul.f32 %v739_v55, %v3122_v1  ;;  %2524 = vrcp.f32 %v3209_v5 }
 0x11d   : > { %v3218_v14 = vadd.f32 %v2975_v18, %v512_v58  ;;  %vm561_vm9 = vweird.f32 %v3172_v6  ;;  %v564_v15 = vand.u32 2147483647, %v3145_v31  ;;  %v566_v19 = vand.u32 2147483648, %v3145_v31 }
 0x11e   : > { %v632_v28 = vadd.f32 0.4994258, %v631_v13  ;;  %v559_v21 = vadd.f32 %v3172_v6, %v558_v4  ;;  %v671_v32 = vmul.f32 %v670_v24, %v3054_v49  ;;  %v1108_v36 = vadd.f32 0.014752088, %v1107_v7  ;;  %vm3239_vm10 = vmor %vm560_vm8, %vm561_vm9  ;;  %v514_v38 = vpop.f32.mrf.mxu0 }
 0x11f   : > { %v1145_v37 = vmul.f32 3.8918573e-05, %v3080_v10  ;;  %v702_v39 = vmul.f32 %v701_v8, %v3087_v27  ;;  %v779_v57 = vadd.f32 0.05243302, %v778_v33  ;;  %v816_v40 = vmul.f32 %v815_v9, %v3190_v41 }
 0x120   : > { %v633_v35 = vmul.f32 %v632_v28, %v3020_v60  ;;  %v741_v43 = vadd.f32 0.18741608, %v740_v0  ;;  %v852_v11 = vmul.f32 %v3218_v14, %v3218_v14  ;;  %v672_v30 = vadd.f32 0.4994258, %v671_v32 }
 0x121   : > { %v1109_v17 = vmul.f32 %v1108_v36, %v3043_v29  ;;  %v3233_v22 = vmul.f32 %v663_v62, %v3036_v16  ;;  %v1143_v23 = vadd.f32 1.1283791, %v1142_v63  ;;  %vm3243_vm11 = vcmp.eq.f32.partialorder %v564_v15, 8.507059e+37 }
 0x122   : > { %v3247_v25 = vadd.f32 1.0, %v633_v35  ;;  %v2525_v46 = vpop.eup %2524  ;;  %v563_v16 = vsel %vm3239_vm10, %v3172_v6, %v559_v21  ;;  %v673_v47 = vmul.f32 %v672_v30, %v3054_v49  ;;  %v1146_v31 = vadd.f32 0.001143296, %v1145_v37 }
 0x123   : > { %v1110_v51 = vadd.f32 0.112945676, %v1109_v17  ;;  %v3253_v48 = vadd.f32 1.1283791, %v702_v39  ;;  %v780_v54 = vmul.f32 %v779_v57, %v3154_v42  ;;  %v567_v55 = vor.u32 1.1754944e-38, %v566_v19 }
 0x124   : > { %v596_v56 = vmul.f32 %v2525_v46, %v3209_v5  ;;  %v742_v58 = vmul.f32 %v741_v43, %v3122_v1  ;;  %v817_v59 = vadd.f32 0.0036580483, %v816_v40  ;;  %v3258_v61 = vmin.f32 %v852_v11, 16.0 }
 0x125   : > { %2526 = vrcp.f32 %v3247_v25  ;;  %v568_v6 = vsel %vm3243_vm11, %v567_v55, %v563_v16  ;;  %v3264_v62 = vadd.f32 %v2975_v18, %v514_v38  ;;  %v3266_v3 = vadd.f32 1.0, %v673_v47 }
 0x126   : > { %v597_v49 = vsub.f32 1.0, %v596_v56  ;;  %v606_v4 = vand.u32 2147483648, %v3209_v5  ;;  %v1111_v24 = vmul.f32 %v1110_v51, %v3043_v29  ;;  %v1147_v7 = vmul.f32 %v1146_v31, %v3080_v10 }
 0x127   : > { %v705_v8 = vmul.f32 3.8918573e-05, %v3087_v27  ;;  %vm601_vm12 = vweird.f32 %v2525_v46  ;;  %v604_v9 = vand.u32 2147483647, %v3209_v5  ;;  %2528 = vrcp.f32 %v3266_v3 }
 0x128   : > { %v598_v33 = vmul.f32 %v2525_v46, %v597_v49  ;;  %v3274_v13 = vadd.f32 0.18741608, %v780_v54  ;;  %v818_v63 = vmul.f32 %v817_v59, %v3190_v41  ;;  %v569_v0 = vmul.f32 %v568_v6, %v3178_v12 }
 0x129   : > { %v854_v15 = vmul.f32 2.1237322e-06, %v3258_v61  ;;  %vm600_vm13 = vweird.f32 %v3209_v5  ;;  %v892_v28 = vmul.f32 %v3264_v62, %v3264_v62  ;;  %v1112_v21 = vadd.f32 0.4994258, %v1111_v24 }
 0x12a   : > { %v599_v19 = vadd.f32 %v2525_v46, %v598_v33  ;;  %v3283_v36 = vmul.f32 %v1143_v23, %v3057_v52  ;;  %v3285_v37 = vadd.f32 1.1283791, %v742_v58  ;;  %vm602_vm14 = vmor %vm600_vm13, %vm601_vm12  ;;  %v607_v39 = vor.u32 1.1754944e-38, %v606_v4 }
 0x12b   : > { %v2527_v32 = vpop.eup %2526  ;;  %v1148_v57 = vadd.f32 0.014752088, %v1147_v7  ;;  %vm605_vm15 = vcmp.eq.f32.partialorder %v604_v9, 8.507059e+37  ;;  %v706_v35 = vadd.f32 0.001143296, %v705_v8  ;;  %v2275_v5 = vclamps-f32 %v569_v0, 1.0 }
 0x12c   : > { %v603_v40 = vsel %vm602_vm14, %v2525_v46, %v599_v19  ;;  %v636_v12 = vmul.f32 %v2527_v32, %v3247_v25  ;;  %v819_v43 = vadd.f32 0.05243302, %v818_v63  ;;  %v1113_v30 = vmul.f32 %v1112_v21, %v3043_v29 }
 0x12d   : > { %v608_v11 = vsel %vm605_vm15, %v607_v39, %v603_v40  ;;  %v2529_v17 = vpop.eup %2528  ;;  %v855_v52 = vadd.f32 0.00028619796, %v854_v15  ;;  %v3290_v23 = vmin.f32 %v892_v28, 16.0  ;;  %v1149_v46 = vmul.f32 %v1148_v57, %v3080_v10 }
 0x12e   : > { %v609_v44 = vmul.f32 %v608_v11, %v3187_v20  ;;  %v637_v60 = vsub.f32 1.0, %v636_v12  ;;  %v676_v16 = vmul.f32 %v2529_v17, %v3266_v3  ;;  %v3293_v38 = vadd.f32 1.0, %v1113_v30 }
 0x12f   : > { %v745_v47 = vmul.f32 3.8918573e-05, %v3122_v1  ;;  %vm641_vm0 = vweird.f32 %v2527_v32  ;;  %v707_v29 = vmul.f32 %v706_v35, %v3087_v27  ;;  %vm640_vm1 = vweird.f32 %v3247_v25 }
 0x130   : > { %v2276_v51 = vclamps-f32 %v609_v44, 1.0  ;;  %v638_v31 = vmul.f32 %v2527_v32, %v637_v60  ;;  %v646_v20 = vand.u32 2147483648, %v3247_v25  ;;  %v677_v54 = vsub.f32 1.0, %v676_v16  ;;  %vm3303_vm2 = vmor %vm640_vm1, %vm641_vm0 }
 0x131   : > { %2530 = vrcp.f32 %v3293_v38  ;;  %v644_v58 = vand.u32 2147483647, %v3247_v25  ;;  %v686_v59 = vand.u32 2147483648, %v3266_v3  ;;  %vm681_vm3 = vweird.f32 %v2529_v17  ;;  %v517_v25 = vpop.f32.mrf.mxu0 }
 0x132   : > { %v1189_v55 = vpack.c.bf16 %v2276_v51, %v2275_v5  ;;  %v639_v56 = vadd.f32 %v2527_v32, %v638_v31  ;;  %v678_v49 = vmul.f32 %v2529_v17, %v677_v54  ;;  %v684_v4 = vand.u32 2147483647, %v3266_v3 }
 0x133   : > { %v1150_v24 = vadd.f32 0.112945676, %v1149_v46  ;;  %v820_v7 = vmul.f32 %v819_v43, %v3190_v41  ;;  %v856_v8 = vmul.f32 %v855_v52, %v3258_v61  ;;  %v708_v9 = vadd.f32 0.014752088, %v707_v29 }
 0x134   : > { %1256 = vmatmul.bf16.vlgmr.msra.gmra.mxu1 %v1189_v55  ;;  %v643_v33 = vsel %vm3303_vm2, %v2527_v32, %v639_v56  ;;  %v894_v63 = vmul.f32 2.1237322e-06, %v3290_v23  ;;  %v647_v0 = vor.u32 1.1754944e-38, %v646_v20  ;;  %v679_v15 = vadd.f32 %v2529_v17, %v678_v49 }
 0x135   : > { %vm680_vm4 = vweird.f32 %v3266_v3  ;;  %vm645_vm5 = vcmp.eq.f32.partialorder %v644_v58, 8.507059e+37  ;;  %v687_v19 = vor.u32 1.1754944e-38, %v686_v59  ;;  %v1151_v28 = vmul.f32 %v1150_v24, %v3080_v10 }
 0x136   : > { %vm682_vm6 = vmor %vm680_vm4, %vm681_vm3  ;;  %v709_v21 = vmul.f32 %v708_v9, %v3087_v27  ;;  %v648_v57 = vsel %vm645_vm5, %v647_v0, %v643_v33  ;;  %vm685_vm7 = vcmp.eq.f32.partialorder %v684_v4, 8.507059e+37  ;;  %v746_v32 = vadd.f32 0.001143296, %v745_v47 }
 0x137   : > { %v2531_v39 = vpop.eup %2530  ;;  %v683_v40 = vsel %vm682_vm6, %v2529_v17, %v679_v15  ;;  %v821_v12 = vadd.f32 0.18741608, %v820_v7  ;;  %v857_v35 = vadd.f32 0.0036580483, %v856_v8  ;;  %v895_v11 = vadd.f32 0.00028619796, %v894_v63 }
 0x138   : > { %v688_v43 = vsel %vm685_vm7, %v687_v19, %v683_v40  ;;  %v1116_v5 = vmul.f32 %v2531_v39, %v3293_v38  ;;  %vm1120_vm8 = vweird.f32 %v3293_v38  ;;  %v1152_v30 = vadd.f32 0.4994258, %v1151_v28 }
 0x139   : > { %v689_v3 = vmul.f32 %v688_v43, %v3233_v22  ;;  %v649_v44 = vmul.f32 %v648_v57, %v3197_v26  ;;  %v710_v60 = vadd.f32 0.112945676, %v709_v21  ;;  %v747_v16 = vmul.f32 %v746_v32, %v3122_v1  ;;  %v519_v59 = vpop.f32.mrf.mxu0 }
 0x13a   : > { %v1117_v52 = vsub.f32 1.0, %v1116_v5  ;;  %vm1121_vm9 = vweird.f32 %v2531_v39  ;;  %v1126_v17 = vand.u32 2147483648, %v3293_v38  ;;  %v1153_v46 = vmul.f32 %v1152_v30, %v3080_v10 }
 0x13b   : > { %v785_v47 = vmul.f32 3.8918573e-05, %v3154_v42  ;;  %v2278_v51 = vclamps-f32 %v689_v3, 1.0  ;;  %v711_v22 = vmul.f32 %v710_v60, %v3087_v27  ;;  %v748_v29 = vadd.f32 0.014752088, %v747_v16  ;;  %vm3333_vm10 = vmor %vm1120_vm8, %vm1121_vm9 }
 0x13c   : > { %v1118_v31 = vmul.f32 %v2531_v39, %v1117_v52  ;;  %v782_v20 = vmul.f32 %v3274_v13, %v3154_v42  ;;  %v822_v26 = vmul.f32 %v821_v12, %v3190_v41  ;;  %v1124_v54 = vand.u32 2147483647, %v3293_v38 }
 0x13d   : > { %v3329_v55 = vadd.f32 1.0, %v1153_v46  ;;  %v2277_v56 = vclamps-f32 %v649_v44, 1.0  ;;  %v712_v6 = vadd.f32 0.4994258, %v711_v22  ;;  %v749_v49 = vmul.f32 %v748_v29, %v3122_v1 }
 0x13e   : > { %v1119_v58 = vadd.f32 %v2531_v39, %v1118_v31  ;;  %v858_v13 = vmul.f32 %v857_v35, %v3258_v61  ;;  %v3340_v4 = vadd.f32 %v2975_v18, %v517_v25  ;;  %v786_v24 = vadd.f32 0.001143296, %v785_v47 }
 0x13f   : > { %2532 = vrcp.f32 %v3329_v55  ;;  %v896_v7 = vmul.f32 %v895_v11, %v3290_v23  ;;  %v1190_v8 = vpack.c.bf16 %v2278_v51, %v2277_v56  ;;  %v1127_v38 = vor.u32 1.1754944e-38, %v1126_v17 }
 0x140   : > { %v713_v33 = vmul.f32 %v712_v6, %v3087_v27  ;;  %v1123_v9 = vsel %vm3333_vm10, %v2531_v39, %v1119_v58  ;;  %vm1125_vm11 = vcmp.eq.f32.partialorder %v1124_v54, 8.507059e+37  ;;  %v3348_v63 = vadd.f32 %v2975_v18, %v519_v59 }
 0x141   : > { %v750_v0 = vadd.f32 0.112945676, %v749_v49  ;;  %v3352_v25 = vmul.f32 %v3253_v48, %v3072_v2  ;;  %v3356_v15 = vmul.f32 %v3285_v37, %v3093_v34  ;;  %v3358_v19 = vadd.f32 1.1283791, %v782_v20 }
 0x142   : > { %v3360_v28 = vadd.f32 1.0, %v713_v33  ;;  %v3362_v27 = vadd.f32 1.1283791, %v822_v26  ;;  %v787_v18 = vmul.f32 %v786_v24, %v3154_v42  ;;  %v825_v39 = vmul.f32 3.8918573e-05, %v3190_v41 }
 0x143   : > { %v751_v21 = vmul.f32 %v750_v0, %v3122_v1  ;;  %v859_v57 = vadd.f32 0.05243302, %v858_v13  ;;  %v1128_v2 = vsel %vm1125_vm11, %v1127_v38, %v1123_v9  ;;  %v865_v34 = vmul.f32 3.8918573e-05, %v3258_v61 }
 0x144   : > { %1261 = vmatmul.bf16.gmra.mxu1 %v1190_v8  ;;  %2534 = vrcp.f32 %v3360_v28  ;;  %v897_v37 = vadd.f32 0.0036580483, %v896_v7  ;;  %v932_v40 = vmul.f32 %v3340_v4, %v3340_v4  ;;  %v972_v32 = vmul.f32 %v3348_v63, %v3348_v63 }
 0x145   : > { %v2533_v48 = vpop.eup %2532  ;;  %v752_v12 = vadd.f32 0.4994258, %v751_v21  ;;  %vm1160_vm12 = vweird.f32 %v3329_v55  ;;  %v1164_v43 = vand.u32 2147483647, %v3329_v55  ;;  %v788_v5 = vadd.f32 0.014752088, %v787_v18 }
 0x146   : > { %v1156_v35 = vmul.f32 %v2533_v48, %v3329_v55  ;;  %v1129_v11 = vmul.f32 %v1128_v2, %v3205_v45  ;;  %v1166_v3 = vand.u32 2147483648, %v3329_v55  ;;  %v826_v44 = vadd.f32 0.001143296, %v825_v39 }
 0x147   : > { %v753_v30 = vmul.f32 %v752_v12, %v3122_v1  ;;  %vm1161_vm13 = vweird.f32 %v2533_v48  ;;  %v789_v60 = vmul.f32 %v788_v5, %v3154_v42  ;;  %v866_v16 = vadd.f32 0.001143296, %v865_v34 }
 0x148   : > { %v1157_v52 = vsub.f32 1.0, %v1156_v35  ;;  %v3381_v17 = vmul.f32 %v859_v57, %v3258_v61  ;;  %v3383_v46 = vmin.f32 %v932_v40, 16.0  ;;  %v827_v51 = vmul.f32 %v826_v44, %v3190_v41  ;;  %vm3394_vm14 = vmor %vm1160_vm12, %vm1161_vm13 }
 0x149   : > { %v3385_v47 = vadd.f32 1.0, %v753_v30  ;;  %v3389_v31 = vmul.f32 %v897_v37, %v3290_v23  ;;  %v790_v22 = vadd.f32 0.112945676, %v789_v60  ;;  %v867_v29 = vmul.f32 %v866_v16, %v3258_v61 }
 0x14a   : > { %v2535_v45 = vpop.eup %2534  ;;  %v1158_v1 = vmul.f32 %v2533_v48, %v1157_v52  ;;  %v1167_v26 = vor.u32 1.1754944e-38, %v1166_v3  ;;  %v3398_v54 = vmin.f32 %v972_v32, 16.0  ;;  %v2289_v58 = vclamps-f32 %v1129_v11, 1.0 }
 0x14b   : > { %v716_v56 = vmul.f32 %v2535_v45, %v3360_v28  ;;  %2536 = vrcp.f32 %v3385_v47  ;;  %vm1165_vm15 = vcmp.eq.f32.partialorder %v1164_v43, 8.507059e+37  ;;  %v905_v59 = vmul.f32 3.8918573e-05, %v3290_v23 }
 0x14c   : > { %v1159_v10 = vadd.f32 %v2533_v48, %v1158_v1  ;;  %v791_v49 = vmul.f32 %v790_v22, %v3154_v42  ;;  %v828_v55 = vadd.f32 0.014752088, %v827_v51  ;;  %v868_v13 = vadd.f32 0.014752088, %v867_v29 }
 0x14d   : > { %v717_v6 = vsub.f32 1.0, %v716_v56  ;;  %vm721_vm0 = vweird.f32 %v2535_v45  ;;  %v726_v7 = vand.u32 2147483648, %v3360_v28  ;;  %v945_v8 = vmul.f32 3.8918573e-05, %v3383_v46 }
 0x14e   : > { %v1163_v24 = vsel %vm3394_vm14, %v2533_v48, %v1159_v10  ;;  %v792_v9 = vadd.f32 0.4994258, %v791_v49  ;;  %v829_v0 = vmul.f32 %v828_v55, %v3190_v41  ;;  %vm720_vm1 = vweird.f32 %v3360_v28 }
 0x14f   : > { %v1168_v38 = vsel %vm1165_vm15, %v1167_v26, %v1163_v24  ;;  %v718_v33 = vmul.f32 %v2535_v45, %v717_v6  ;;  %v869_v18 = vmul.f32 %v868_v13, %v3258_v61  ;;  %v906_v39 = vadd.f32 0.001143296, %v905_v59  ;;  %vm3415_vm2 = vmor %vm720_vm1, %vm721_vm0 }
 0x150   : > { %v1169_v21 = vmul.f32 %v1168_v38, %v3283_v36  ;;  %v724_v34 = vand.u32 2147483647, %v3360_v28  ;;  %v793_v48 = vmul.f32 %v792_v9, %v3154_v42  ;;  %v830_v37 = vadd.f32 0.112945676, %v829_v0 }
 0x151   : > { %v2537_v57 = vpop.eup %2536  ;;  %v719_v2 = vadd.f32 %v2535_v45, %v718_v33  ;;  %v727_v12 = vor.u32 1.1754944e-38, %v726_v7  ;;  %v946_v35 = vadd.f32 0.001143296, %v945_v8  ;;  %v870_v11 = vadd.f32 0.112945676, %v869_v18 }
 0x152   : > { %v2290_v40 = vclamps-f32 %v1169_v21, 1.0  ;;  %v756_v36 = vmul.f32 %v2537_v57, %v3385_v47  ;;  %v3422_v5 = vadd.f32 1.0, %v793_v48  ;;  %v831_v28 = vmul.f32 %v830_v37, %v3190_v41 }
 0x153   : > { %v723_v43 = vsel %vm3415_vm2, %v2535_v45, %v719_v2  ;;  %v766_v30 = vand.u32 2147483648, %v3385_v47  ;;  %v907_v44 = vmul.f32 %v906_v39, %v3290_v23  ;;  %vm725_vm3 = vcmp.eq.f32.partialorder %v724_v34, 8.507059e+37 }
 0x154   : > { %v1196_v42 = vpack.c.bf16 %v2290_v40, %v2289_v58  ;;  %v757_v3 = vsub.f32 1.0, %v756_v36  ;;  %vm761_vm4 = vweird.f32 %v2537_v57  ;;  %v764_v52 = vand.u32 2147483647, %v3385_v47 }
 0x155   : > { %2538 = vrcp.f32 %v3422_v5  ;;  %v728_v60 = vsel %vm725_vm3, %v727_v12, %v723_v43  ;;  %v832_v51 = vadd.f32 0.4994258, %v831_v28  ;;  %v871_v45 = vmul.f32 %v870_v11, %v3258_v61 }
 0x156   : > { %1291 = vmatmul.bf16.gmra.mxu3 %v1196_v42  ;;  %v758_v16 = vmul.f32 %v2537_v57, %v757_v3  ;;  %v934_v1 = vmul.f32 2.1237322e-06, %v3383_v46  ;;  %vm760_vm5 = vweird.f32 %v3385_v47  ;;  %v908_v22 = vadd.f32 0.014752088, %v907_v44 }
 0x157   : > { %v947_v29 = vmul.f32 %v946_v35, %v3383_v46  ;;  %v767_v26 = vor.u32 1.1754944e-38, %v766_v30  ;;  %v833_v56 = vmul.f32 %v832_v51, %v3190_v41  ;;  %v872_v58 = vadd.f32 0.4994258, %v871_v45  ;;  %vm762_vm6 = vmor %vm760_vm5, %vm761_vm4 }
 0x158   : > { %v759_v20 = vadd.f32 %v2537_v57, %v758_v16  ;;  %v729_v10 = vmul.f32 %v728_v60, %v3352_v25  ;;  %v909_v59 = vmul.f32 %v908_v22, %v3290_v23  ;;  %v985_v49 = vmul.f32 3.8918573e-05, %v3398_v54 }
 0x159   : > { %v948_v6 = vadd.f32 0.014752088, %v947_v29  ;;  %vm765_vm7 = vcmp.eq.f32.partialorder %v764_v52, 8.507059e+37  ;;  %v3438_v47 = vadd.f32 1.0, %v833_v56  ;;  %v873_v13 = vmul.f32 %v872_v58, %v3258_v61 }
 0x15a   : > { %v763_v55 = vsel %vm762_vm6, %v2537_v57, %v759_v20  ;;  %v899_v7 = vadd.f32 0.05243302, %v3389_v31  ;;  %v910_v8 = vadd.f32 0.112945676, %v909_v59  ;;  %v974_v38 = vmul.f32 2.1237322e-06, %v3398_v54 }
 0x15b   : > { %v2539_v24 = vpop.eup %2538  ;;  %v768_v41 = vsel %vm765_vm7, %v767_v26, %v763_v55  ;;  %v949_v25 = vmul.f32 %v948_v6, %v3383_v46  ;;  %2540 = vrcp.f32 %v3438_v47  ;;  %v935_v0 = vadd.f32 0.00028619796, %v934_v1 }
 0x15c   : > { %v769_v33 = vmul.f32 %v768_v41, %v3356_v15  ;;  %v796_v9 = vmul.f32 %v2539_v24, %v3422_v5  ;;  %v2279_v21 = vclamps-f32 %v729_v10, 1.0  ;;  %v3447_v18 = vadd.f32 1.0, %v873_v13 }
 0x15d   : > { %v986_v39 = vadd.f32 0.001143296, %v985_v49  ;;  %v911_v31 = vmul.f32 %v910_v8, %v3290_v23  ;;  %v950_v34 = vadd.f32 0.112945676, %v949_v25  ;;  %v784_v48 = vmul.f32 %v3358_v19, %v3107_v53 }
 0x15e   : > { %v2280_v57 = vclamps-f32 %v769_v33, 1.0  ;;  %v797_v2 = vsub.f32 1.0, %v796_v9  ;;  %v824_v15 = vmul.f32 %v3362_v27, %v3164_v50  ;;  %v900_v37 = vmul.f32 %v899_v7, %v3290_v23 }
 0x15f   : > { %2542 = vrcp.f32 %v3447_v18  ;;  %v975_v40 = vadd.f32 0.00028619796, %v974_v38  ;;  %v806_v36 = vand.u32 2147483648, %v3422_v5  ;;  %vm801_vm8 = vweird.f32 %v2539_v24 }
 0x160   : > { %v1191_v32 = vpack.c.bf16 %v2280_v57, %v2279_v21  ;;  %v798_v12 = vmul.f32 %v2539_v24, %v797_v2  ;;  %v912_v35 = vadd.f32 0.4994258, %v911_v31  ;;  %v951_v43 = vmul.f32 %v950_v34, %v3383_v46 }
 0x161   : > { %v987_v28 = vmul.f32 %v986_v39, %v3398_v54  ;;  %v2541_v11 = vpop.eup %2540  ;;  %v861_v53 = vadd.f32 0.18741608, %v3381_v17  ;;  %v936_v50 = vmul.f32 %v935_v0, %v3383_v46  ;;  %vm800_vm9 = vweird.f32 %v3422_v5 }
 0x162   : > { %1266 = vmatmul.bf16.gmra.mxu1 %v1191_v32  ;;  %v799_v19 = vadd.f32 %v2539_v24, %v798_v12  ;;  %v804_v27 = vand.u32 2147483647, %v3422_v5  ;;  %v836_v42 = vmul.f32 %v2541_v11, %v3438_v47  ;;  %v913_v3 = vmul.f32 %v912_v35, %v3290_v23  ;;  %vm3467_vm10 = vmor %vm800_vm9, %vm801_vm8 }
 0x163   : > { %v952_v30 = vadd.f32 0.4994258, %v951_v43  ;;  %v901_v44 = vadd.f32 0.18741608, %v900_v37  ;;  %v976_v52 = vmul.f32 %v975_v40, %v3398_v54  ;;  %v807_v17 = vor.u32 1.1754944e-38, %v806_v36 }
 0x164   : > { %v988_v16 = vadd.f32 0.014752088, %v987_v28  ;;  %v803_v5 = vsel %vm3467_vm10, %v2539_v24, %v799_v19  ;;  %v837_v45 = vsub.f32 1.0, %v836_v42  ;;  %v3475_v1 = vadd.f32 1.0, %v913_v3 }
 0x165   : > { %v3471_v51 = vpop.eup %2542  ;;  %v953_v22 = vmul.f32 %v952_v30, %v3383_v46  ;;  %v844_v29 = vand.u32 2147483647, %v3438_v47  ;;  %v846_v20 = vand.u32 2147483648, %v3438_v47  ;;  %vm805_vm11 = vcmp.eq.f32.partialorder %v804_v27, 8.507059e+37 }
 0x166   : > { %v876_v26 = vmul.f32 %v3471_v51, %v3447_v18  ;;  %v989_v56 = vmul.f32 %v988_v16, %v3398_v54  ;;  %v838_v58 = vmul.f32 %v2541_v11, %v837_v45  ;;  %vm841_vm12 = vweird.f32 %v2541_v11 }
 0x167   : > { %2544 = vrcp.f32 %v3475_v1  ;;  %v977_v10 = vadd.f32 0.0036580483, %v976_v52  ;;  %v808_v59 = vsel %vm805_vm11, %v807_v17, %v803_v5  ;;  %v3484_v49 = vadd.f32 1.0, %v953_v22 }
 0x168   : > { %v877_v6 = vsub.f32 1.0, %v876_v26  ;;  %v937_v55 = vadd.f32 0.0036580483, %v936_v50  ;;  %v839_v13 = vadd.f32 %v2541_v11, %v838_v58  ;;  %vm840_vm13 = vweird.f32 %v3438_v47 }
 0x169   : > { %v990_v24 = vadd.f32 0.112945676, %v989_v56  ;;  %v902_v7 = vmul.f32 %v901_v44, %v3290_v23  ;;  %vm842_vm14 = vmor %vm840_vm13, %vm841_vm12  ;;  %vm845_vm15 = vcmp.eq.f32.partialorder %v844_v29, 8.507059e+37  ;;  %v847_v41 = vor.u32 1.1754944e-38, %v846_v20 }
 0x16a   : > { %2546 = vrcp.f32 %v3484_v49  ;;  %v809_v8 = vmul.f32 %v808_v59, %v784_v48  ;;  %v843_v25 = vsel %vm842_vm14, %v2541_v11, %v839_v13  ;;  %v878_v38 = vmul.f32 %v3471_v51, %v877_v6 }
 0x16b   : > { %v991_v33 = vmul.f32 %v990_v24, %v3398_v54  ;;  %v978_v9 = vmul.f32 %v977_v10, %v3398_v54  ;;  %v848_v0 = vsel %vm845_vm15, %v847_v41, %v843_v25  ;;  %v862_v47 = vmul.f32 %v861_v53, %v3258_v61 }
 0x16c   : > { %v849_v39 = vmul.f32 %v848_v0, %v824_v15  ;;  %v903_v23 = vadd.f32 1.1283791, %v902_v7  ;;  %v938_v2 = vmul.f32 %v937_v55, %v3383_v46  ;;  %vm881_vm0 = vweird.f32 %v3471_v51 }
 0x16d   : > { %v2545_v21 = vpop.eup %2544  ;;  %v992_v57 = vadd.f32 0.4994258, %v991_v33  ;;  %v2281_v34 = vclamps-f32 %v809_v8, 1.0  ;;  %v879_v37 = vadd.f32 %v3471_v51, %v878_v38  ;;  %v979_v12 = vadd.f32 0.05243302, %v978_v9 }
 0x16e   : > { %v916_v31 = vmul.f32 %v2545_v21, %v3475_v1  ;;  %v2282_v48 = vclamps-f32 %v849_v39, 1.0  ;;  %vm880_vm1 = vweird.f32 %v3447_v18  ;;  %v886_v61 = vand.u32 2147483648, %v3447_v18 }
 0x16f   : > { %v993_v40 = vmul.f32 %v992_v57, %v3398_v54  ;;  %v884_v35 = vand.u32 2147483647, %v3447_v18  ;;  %v926_v43 = vand.u32 2147483648, %v3475_v1  ;;  %v939_v11 = vadd.f32 0.05243302, %v938_v2  ;;  %vm3506_vm2 = vmor %vm880_vm1, %vm881_vm0 }
 0x170   : > { %v3498_v32 = vpop.eup %2546  ;;  %v917_v15 = vsub.f32 1.0, %v916_v31  ;;  %v1192_v36 = vpack.c.bf16 %v2282_v48, %v2281_v34  ;;  %vm921_vm3 = vweird.f32 %v2545_v21  ;;  %v924_v19 = vand.u32 2147483647, %v3475_v1 }
 0x171   : > { %v994_v28 = vadd.f32 1.0, %v993_v40  ;;  %v863_v27 = vadd.f32 1.1283791, %v862_v47  ;;  %v883_v18 = vsel %vm3506_vm2, %v3471_v51, %v879_v37  ;;  %v956_v42 = vmul.f32 %v3498_v32, %v3484_v49  ;;  %v3535_v40 = vld [vmem:[%s4133_s4] ss:$0 sm:$0xff] }
 0x172   : > { %v918_v50 = vmul.f32 %v2545_v21, %v917_v15  ;;  %1271 = vmatmul.bf16.gmra.mxu1 %v1192_v36  ;;  %v887_v3 = vor.u32 1.1754944e-38, %v886_v61  ;;  %vm920_vm4 = vweird.f32 %v3475_v1  ;;  %v904_v44 = vmul.f32 %v903_v23, %v3264_v62 }
 0x173   : > { %2548 = vrcp.f32 %v994_v28  ;;  %v980_v52 = vmul.f32 %v979_v12, %v3398_v54  ;;  %vm885_vm5 = vcmp.eq.f32.partialorder %v884_v35, 8.507059e+37  ;;  %vm922_vm6 = vmor %vm920_vm4, %vm921_vm3  ;;  %v927_v60 = vor.u32 1.1754944e-38, %v926_v43 }
 0x174   : > { %v919_v30 = vadd.f32 %v2545_v21, %v918_v50  ;;  %v940_v17 = vmul.f32 %v939_v11, %v3383_v46  ;;  %v888_v16 = vsel %vm885_vm5, %v887_v3, %v883_v18  ;;  %vm925_vm7 = vcmp.eq.f32.partialorder %v924_v19, 8.507059e+37 }
 0x175   : > { %v864_v51 = vmul.f32 %v863_v27, %v3218_v14  ;;  %v957_v22 = vsub.f32 1.0, %v956_v42  ;;  %v981_v26 = vadd.f32 0.18741608, %v980_v52  ;;  %v1006_v14 = vand.u32 2147483648, %v994_v28 }
 0x176   : > { %v923_v5 = vsel %vm922_vm6, %v2545_v21, %v919_v30  ;;  %v941_v56 = vadd.f32 0.18741608, %v940_v17  ;;  %vm961_vm9 = vweird.f32 %v3498_v32  ;;  %v1004_v8 = vand.u32 2147483647, %v994_v28 }
 0x177   : > { %v928_v45 = vsel %vm925_vm7, %v927_v60, %v923_v5  ;;  %v889_v1 = vmul.f32 %v888_v16, %v864_v51  ;;  %v958_v10 = vmul.f32 %v3498_v32, %v957_v22  ;;  %v982_v6 = vmul.f32 %v981_v26, %v3398_v54  ;;  %v2408_v51 = vld [vmem:[#allocation8 + $0x38] sm:$0xff] }
 0x178   : > { %v929_v29 = vmul.f32 %v928_v45, %v904_v44  ;;  %v942_v13 = vmul.f32 %v941_v56, %v3383_v46  ;;  %v966_v25 = vand.u32 2147483648, %v3484_v49  ;;  %vm1000_vm10 = vweird.f32 %v994_v28  ;;  %2013 = vmatpush.bf16.msra.mxu2 %v2408_v51  ;;  %2426 = vmatpush.bf16.msra.mxu3 %v2408_v51 }
 0x179   : > { %v2549_v20 = vpop.eup %2548  ;;  %v2283_v55 = vclamps-f32 %v889_v1, 1.0  ;;  %v959_v41 = vadd.f32 %v3498_v32, %v958_v10  ;;  %v983_v33 = vadd.f32 1.1283791, %v982_v6  ;;  %vm960_vm11 = vweird.f32 %v3484_v49 }
 0x17a   : > { %v996_v62 = vmul.f32 %v2549_v20, %v994_v28  ;;  %v2284_v58 = vclamps-f32 %v929_v29, 1.0  ;;  %vm1001_vm8 = vweird.f32 %v2549_v20  ;;  %v964_v54 = vand.u32 2147483647, %v3484_v49  ;;  %vm962_vm13 = vmor %vm960_vm11, %vm961_vm9 }
 0x17b   : > { %vm1002_vm12 = vmor %vm1000_vm10, %vm1001_vm8  ;;  %v1007_v9 = vor.u32 1.1754944e-38, %v1006_v14  ;;  %v943_v0 = vadd.f32 1.1283791, %v942_v13  ;;  %v963_v21 = vsel %vm962_vm13, %v3498_v32, %v959_v41  ;;  %vm1005_vm14 = vcmp.eq.f32.partialorder %v1004_v8, 8.507059e+37  ;;  %v2407_v13 = vld [vmem:[#allocation8 + $0x30] sm:$0xff] }
 0x17c   : > { %v997_v59 = vsub.f32 1.0, %v996_v62  ;;  %v1193_v7 = vpack.c.bf16 %v2284_v58, %v2283_v55  ;;  %v967_v47 = vor.u32 1.1754944e-38, %v966_v25  ;;  %v984_v57 = vmul.f32 %v983_v33, %v3348_v63  ;;  %2014 = vmatpush.bf16.msra.mxu2 %v2407_v13  ;;  %2427 = vmatpush.bf16.msra.mxu3 %v2407_v13 }
 0x17d   : > { %vm965_vm15 = vcmp.eq.f32.partialorder %v964_v54, 8.507059e+37  ;;  %v944_v2 = vmul.f32 %v943_v0, %v3340_v4 }
 0x17e   : > { %v998_v24 = vmul.f32 %v2549_v20, %v997_v59  ;;  %v968_v23 = vsel %vm965_vm15, %v967_v47, %v963_v21  ;;  %v2406_v21 = vld [vmem:[#allocation8 + $0x28] sm:$0xff] }
 0x17f   : > { %v969_v34 = vmul.f32 %v968_v23, %v944_v2 }
 0x180   : > { %v999_v38 = vadd.f32 %v2549_v20, %v998_v24  ;;  %2015 = vmatpush.bf16.msra.mxu2 %v2406_v21  ;;  %2428 = vmatpush.bf16.msra.mxu3 %v2406_v21  ;;  %v2401_v21 = vld [vmem:[#allocation8] sm:$0xff] }
 0x181   : > { %v2285_v48 = vclamps-f32 %v969_v34, 1.0 }
 0x182   : > { %v1003_v46 = vsel %vm1002_vm12, %v2549_v20, %v999_v38  ;;  %1276 = vmatmul.bf16.gmra.mxu1 %v1193_v7 }
 0x183   : > { %v1008_v39 = vsel %vm1005_vm14, %v1007_v9, %v1003_v46 }
 0x184   : > { %v1009_v31 = vmul.f32 %v1008_v39, %v984_v57 }
 0x186   : > { %v2286_v49 = vclamps-f32 %v1009_v31, 1.0 }
 0x188   : > { %v1194_v37 = vpack.c.bf16 %v2286_v49, %v2285_v48  ;;  %v2405_v49 = vld [vmem:[#allocation8 + $0x20] sm:$0xff] }
 0x189   : > { %2016 = vmatpush.bf16.msra.mxu2 %v2405_v49  ;;  %2429 = vmatpush.bf16.msra.mxu3 %v2405_v49 }
 0x192   : > { %1281 = vmatmul.bf16.gmra.mxu1 %v1194_v37 }
 0x199   : > { %v1287_v32 = vpop.f32.mrf.mxu3 }
 0x19a   : > { %v3538_v12 = vadd.f32 %v3535_v40, %v1287_v32 }
 0x19c   : > { %v1777_v61 = vmul.f32 %v3538_v12, %v3538_v12 }
 0x19e   : > { %v3545_v15 = vmin.f32 %v1777_v61, 16.0 }
 0x1a0   : > { %v1779_v35 = vmul.f32 2.1237322e-06, %v3545_v15  ;;  %v1790_v43 = vmul.f32 3.8918573e-05, %v3545_v15 }
 0x1a1   : > { %v1289_v11 = vpop.f32.mrf.mxu3 }
 0x1a2   : > { %v1780_v53 = vadd.f32 0.00028619796, %v1779_v35  ;;  %v1791_v50 = vadd.f32 0.001143296, %v1790_v43  ;;  %v3554_v19 = vadd.f32 %v3535_v40, %v1289_v11  ;;  %v2404_v11 = vld [vmem:[#allocation8 + $0x18] sm:$0xff] }
 0x1a3   : > { %2017 = vmatpush.bf16.msra.mxu2 %v2404_v11  ;;  %2430 = vmatpush.bf16.msra.mxu3 %v2404_v11 }
 0x1a4   : > { %v1781_v3 = vmul.f32 %v1780_v53, %v3545_v15  ;;  %v1792_v30 = vmul.f32 %v1791_v50, %v3545_v15  ;;  %v1817_v44 = vmul.f32 %v3554_v19, %v3554_v19 }
 0x1a6   : > { %v1793_v16 = vadd.f32 0.014752088, %v1792_v30  ;;  %v3565_v5 = vmin.f32 %v1817_v44, 16.0  ;;  %v1782_v29 = vadd.f32 0.0036580483, %v1781_v3 }
 0x1a8   : > { %v1794_v20 = vmul.f32 %v1793_v16, %v3545_v15  ;;  %v1819_v26 = vmul.f32 2.1237322e-06, %v3565_v5  ;;  %v1830_v1 = vmul.f32 3.8918573e-05, %v3565_v5  ;;  %v1783_v24 = vmul.f32 %v1782_v29, %v3545_v15 }
 0x1aa   : > { %v1795_v10 = vadd.f32 0.112945676, %v1794_v20  ;;  %v1820_v59 = vadd.f32 0.00028619796, %v1819_v26  ;;  %v1831_v55 = vadd.f32 0.001143296, %v1830_v1 }
 0x1ab   : > { %v1784_v47 = vadd.f32 0.05243302, %v1783_v24  ;;  %v2402_v24 = vld [vmem:[#allocation8 + $0x8] sm:$0xff] }
 0x1ac   : > { %v1796_v14 = vmul.f32 %v1795_v10, %v3545_v15  ;;  %v1821_v41 = vmul.f32 %v1820_v59, %v3565_v5  ;;  %v1832_v33 = vmul.f32 %v1831_v55, %v3565_v5 }
 0x1ae   : > { %v1797_v46 = vadd.f32 0.4994258, %v1796_v14  ;;  %v1822_v9 = vadd.f32 0.0036580483, %v1821_v41  ;;  %v1833_v0 = vadd.f32 0.014752088, %v1832_v33 }
 0x1b0   : > { %v1798_v39 = vmul.f32 %v1797_v46, %v3545_v15  ;;  %v1834_v31 = vmul.f32 %v1833_v0, %v3565_v5  ;;  %v1823_v37 = vmul.f32 %v1822_v9, %v3565_v5 }
 0x1b1   : > { %v1257_v63 = vpop.f32.mrf.mxu1 }
 0x1b2   : > { %v3543_v4 = vadd.f32 %v3535_v40, %v1257_v63  ;;  %v3590_v34 = vadd.f32 1.0, %v1798_v39  ;;  %v1835_v32 = vadd.f32 0.112945676, %v1834_v31  ;;  %v1785_v63 = vmul.f32 %v1784_v47, %v3545_v15 }
 0x1b4   : > { %v1297_v36 = vmul.f32 %v3543_v4, %v3543_v4  ;;  %2550 = vrcp.f32 %v3590_v34  ;;  %v1836_v43 = vmul.f32 %v1835_v32, %v3565_v5  ;;  %v1809_v33 = vand.u32 2147483647, %v3590_v34 }
 0x1b5   : > { %v1811_v39 = vand.u32 2147483648, %v3590_v34  ;;  %vm1805_vm1 = vweird.f32 %v3590_v34 }
 0x1b6   : > { %v3551_v28 = vmin.f32 %v1297_v36, 16.0  ;;  %v1837_v3 = vadd.f32 0.4994258, %v1836_v43  ;;  %vm3643_vm3 = vcmp.eq.f32.partialorder %v1809_v33, 8.507059e+37 }
 0x1b7   : > { %v1812_v11 = vor.u32 1.1754944e-38, %v1811_v39 }
 0x1b8   : > { %v1299_v27 = vmul.f32 2.1237322e-06, %v3551_v28  ;;  %v1310_v18 = vmul.f32 3.8918573e-05, %v3551_v28  ;;  %v1838_v16 = vmul.f32 %v1837_v3, %v3565_v5 }
 0x1b9   : > { %v1259_v42 = vpop.f32.mrf.mxu1 }
 0x1ba   : > { %v3563_v52 = vadd.f32 %v3535_v40, %v1259_v42  ;;  %v1311_v60 = vadd.f32 0.001143296, %v1310_v18  ;;  %v1300_v17 = vadd.f32 0.00028619796, %v1299_v27  ;;  %v1824_v27 = vadd.f32 0.05243302, %v1823_v37 }
 0x1bb   : > { %v1786_v42 = vadd.f32 0.18741608, %v1785_v63 }
 0x1bc   : > { %v1337_v45 = vmul.f32 %v3563_v52, %v3563_v52  ;;  %v1312_v22 = vmul.f32 %v1311_v60, %v3551_v28  ;;  %v1301_v58 = vmul.f32 %v1300_v17, %v3551_v28  ;;  %v3603_v17 = vpop.eup %2550  ;;  %v1825_v26 = vmul.f32 %v1824_v27, %v3565_v5 }
 0x1bd   : > { %v1801_v20 = vmul.f32 %v3603_v17, %v3590_v34  ;;  %vm1806_vm0 = vweird.f32 %v3603_v17 }
 0x1be   : > { %v3573_v56 = vmin.f32 %v1337_v45, 16.0  ;;  %v1313_v62 = vadd.f32 0.014752088, %v1312_v22  ;;  %v1302_v54 = vadd.f32 0.0036580483, %v1301_v58  ;;  %v2403_v45 = vld [vmem:[#allocation8 + $0x10] sm:$0xff]  ;;  %vm3639_vm2 = vmor %vm1805_vm1, %vm1806_vm0 }
 0x1bf   : > { %v3615_v58 = vadd.f32 1.0, %v1838_v16  ;;  %2018 = vmatpush.bf16.msra.mxu2 %v2403_v45  ;;  %2431 = vmatpush.bf16.msra.mxu3 %v2403_v45 }
 0x1c0   : > { %v1339_v6 = vmul.f32 2.1237322e-06, %v3573_v56  ;;  %v1314_v8 = vmul.f32 %v1313_v62, %v3551_v28  ;;  %v1303_v48 = vmul.f32 %v1302_v54, %v3551_v28  ;;  %v1350_v53 = vmul.f32 3.8918573e-05, %v3573_v56 }
 0x1c1   : > { %v1262_v7 = vpop.f32.mrf.mxu1  ;;  %v1787_v62 = vmul.f32 %v1786_v42, %v3545_v15  ;;  %2552 = vrcp.f32 %v3615_v58  ;;  %v1826_v15 = vadd.f32 0.18741608, %v1825_v26  ;;  %v1851_v27 = vand.u32 2147483648, %v3615_v58 }
 0x1c2   : > { %v1340_v25 = vadd.f32 0.00028619796, %v1339_v6  ;;  %v3582_v38 = vadd.f32 %v3535_v40, %v1262_v7  ;;  %v1315_v57 = vadd.f32 0.112945676, %v1314_v8  ;;  %v1304_v50 = vadd.f32 0.05243302, %v1303_v48 }
 0x1c3   : > { %v1351_v29 = vadd.f32 0.001143296, %v1350_v53  ;;  %v1802_v6 = vsub.f32 1.0, %v1801_v20  ;;  %v1788_v8 = vadd.f32 1.1283791, %v1787_v62  ;;  %2019 = vmatpush.bf16.msra.mxu2 %v2402_v24  ;;  %2432 = vmatpush.bf16.msra.mxu3 %v2402_v24  ;;  %vm1845_vm5 = vweird.f32 %v3615_v58 }
 0x1c4   : > { %v1341_v23 = vmul.f32 %v1340_v25, %v3573_v56  ;;  %v1377_v2 = vmul.f32 %v3582_v38, %v3582_v38  ;;  %v1316_v61 = vmul.f32 %v1315_v57, %v3551_v28  ;;  %v1305_v1 = vmul.f32 %v1304_v50, %v3551_v28 }
 0x1c5   : > { %v1352_v14 = vmul.f32 %v1351_v29, %v3573_v56  ;;  %v1803_v7 = vmul.f32 %v3603_v17, %v1802_v6  ;;  %v1827_v57 = vmul.f32 %v1826_v15, %v3565_v5  ;;  %v1789_v31 = vmul.f32 %v1788_v8, %v3538_v12 }
 0x1c6   : > { %v1342_v36 = vadd.f32 0.0036580483, %v1341_v23  ;;  %v3597_v35 = vmin.f32 %v1377_v2, 16.0  ;;  %v1317_v30 = vadd.f32 0.4994258, %v1316_v61  ;;  %v1852_v62 = vor.u32 1.1754944e-38, %v1851_v27 }
 0x1c7   : > { %v1306_v41 = vadd.f32 0.18741608, %v1305_v1  ;;  %v1804_v9 = vadd.f32 %v3603_v17, %v1803_v7  ;;  %v1353_v47 = vadd.f32 0.014752088, %v1352_v14  ;;  %v2553_v23 = vpop.eup %2552  ;;  %2020 = vmatpush.bf16.msra.mxu2 %v2401_v21  ;;  %2433 = vmatpush.bf16.msra.mxu3 %v2401_v21  ;;  %v1828_v53 = vadd.f32 1.1283791, %v1827_v57 }
 0x1c8   : > { %v1343_v44 = vmul.f32 %v1342_v36, %v3573_v56  ;;  %v1379_v60 = vmul.f32 2.1237322e-06, %v3597_v35  ;;  %v1318_v22 = vmul.f32 %v1317_v30, %v3551_v28  ;;  %v1390_v46 = vmul.f32 3.8918573e-05, %v3597_v35 }
 0x1c9   : > { %v1264_v18 = vpop.f32.mrf.mxu1  ;;  %v1307_v2 = vmul.f32 %v1306_v41, %v3551_v28  ;;  %v1354_v48 = vmul.f32 %v1353_v47, %v3573_v56  ;;  %v1841_v5 = vmul.f32 %v2553_v23, %v3615_v58  ;;  %v1808_v34 = vsel %vm3639_vm2, %v3603_v17, %v1804_v9 }
 0x1ca   : > { %v3607_v51 = vadd.f32 %v3535_v40, %v1264_v18  ;;  %v3617_v10 = vadd.f32 1.0, %v1318_v22  ;;  %v1344_v59 = vadd.f32 0.05243302, %v1343_v44  ;;  %v1380_v55 = vadd.f32 0.00028619796, %v1379_v60 }
 0x1cb   : > { %v1391_v28 = vadd.f32 0.001143296, %v1390_v46  ;;  %v1355_v43 = vadd.f32 0.112945676, %v1354_v48  ;;  %v1842_v50 = vsub.f32 1.0, %v1841_v5  ;;  %v1813_v44 = vsel %vm3643_vm3, %v1812_v11, %v1808_v34 }
 0x1cc   : > { %v1417_v13 = vmul.f32 %v3607_v51, %v3607_v51  ;;  %2554 = vrcp.f32 %v3617_v10  ;;  %v1345_v25 = vmul.f32 %v1344_v59, %v3573_v56  ;;  %v1381_v54 = vmul.f32 %v1380_v55, %v3597_v35 }
 0x1cd   : > { %v1849_v18 = vand.u32 2147483647, %v3615_v58  ;;  %v1356_v30 = vmul.f32 %v1355_v43, %v3573_v56  ;;  %v1843_v60 = vmul.f32 %v2553_v23, %v1842_v50  ;;  %vm1846_vm4 = vweird.f32 %v2553_v23 }
 0x1ce   : > { %v3631_v0 = vmin.f32 %v1417_v13, 16.0  ;;  %v1346_v37 = vadd.f32 0.18741608, %v1345_v25  ;;  %v1382_v61 = vadd.f32 0.0036580483, %v1381_v54  ;;  %v1392_v17 = vmul.f32 %v1391_v28, %v3597_v35  ;;  %vm1847_vm6 = vmor %vm1845_vm5, %vm1846_vm4 }
 0x1cf   : > { %v1357_v20 = vadd.f32 0.4994258, %v1356_v30  ;;  %v1829_v26 = vmul.f32 %v1828_v53, %v3554_v19  ;;  %v1844_v1 = vadd.f32 %v2553_v23, %v1843_v60  ;;  %v1814_v59 = vmul.f32 %v1813_v44, %v1789_v31 }
 0x1d0   : > { %v1419_v36 = vmul.f32 2.1237322e-06, %v3631_v0  ;;  %v1347_v16 = vmul.f32 %v1346_v37, %v3573_v56  ;;  %v1383_v45 = vmul.f32 %v1382_v61, %v3597_v35  ;;  %vm1850_vm7 = vcmp.eq.f32.partialorder %v1849_v18, 8.507059e+37 }
 0x1d1   : > { %v1358_v13 = vmul.f32 %v1357_v20, %v3573_v56  ;;  %v1848_v24 = vsel %vm1847_vm6, %v2553_v23, %v1844_v1  ;;  %v1393_v7 = vadd.f32 0.014752088, %v1392_v17  ;;  %v1430_v8 = vmul.f32 3.8918573e-05, %v3631_v0 }
 0x1d2   : > { %v3648_v12 = vpop.eup %2554  ;;  %v1420_v22 = vadd.f32 0.00028619796, %v1419_v36  ;;  %v1853_v15 = vsel %vm1850_vm7, %v1852_v62, %v1848_v24  ;;  %v1308_v25 = vadd.f32 1.1283791, %v1307_v2  ;;  %v1348_v33 = vadd.f32 1.1283791, %v1347_v16 }
 0x1d3   : > { %v1321_v3 = vmul.f32 %v3648_v12, %v3617_v10  ;;  %v3676_v58 = vadd.f32 1.0, %v1358_v13  ;;  %v1384_v54 = vadd.f32 0.05243302, %v1383_v45  ;;  %v1854_v46 = vmul.f32 %v1853_v15, %v1829_v26 }
 0x1d4   : > { %v1421_v19 = vmul.f32 %v1420_v22, %v3631_v0  ;;  %v2335_v9 = vclamps-f32 %v1814_v59, 1.0  ;;  %v1394_v23 = vmul.f32 %v1393_v7, %v3597_v35  ;;  %v1329_v63 = vand.u32 2147483647, %v3617_v10 }
 0x1d5   : > { %v1322_v55 = vsub.f32 1.0, %v1321_v3  ;;  %2556 = vrcp.f32 %v3676_v58  ;;  %v2336_v47 = vclamps-f32 %v1854_v46, 1.0  ;;  %v1385_v48 = vmul.f32 %v1384_v54, %v3597_v35 }
 0x1d6   : > { %v1422_v2 = vadd.f32 0.0036580483, %v1421_v19  ;;  %v1309_v5 = vmul.f32 %v1308_v25, %v3543_v4  ;;  %vm1326_vm8 = vweird.f32 %v3648_v12  ;;  %v1349_v61 = vmul.f32 %v1348_v33, %v3563_v52 }
 0x1d7   : > { %v1323_v21 = vmul.f32 %v3648_v12, %v1322_v55  ;;  %v1960_v37 = vpack.c.bf16 %v2336_v47, %v2335_v9  ;;  %v1395_v11 = vadd.f32 0.112945676, %v1394_v23  ;;  %vm1325_vm9 = vweird.f32 %v3617_v10 }
 0x1d8   : > { %v1423_v50 = vmul.f32 %v1422_v2, %v3631_v0  ;;  %v1331_v4 = vand.u32 2147483648, %v3617_v10  ;;  %v1386_v18 = vadd.f32 0.18741608, %v1385_v48  ;;  %vm3709_vm10 = vmor %vm1325_vm9, %vm1326_vm8  ;;  %vm3713_vm11 = vcmp.eq.f32.partialorder %v1329_v63, 8.507059e+37 }
 0x1d9   : > { %v1292_v49 = vpop.f32.mrf.mxu3  ;;  %v1324_v34 = vadd.f32 %v3648_v12, %v1323_v21  ;;  %2051 = vmatmul.bf16.vlgmr.msra.gmra.mxu3 %v1960_v37  ;;  %v1396_v17 = vmul.f32 %v1395_v11, %v3597_v35  ;;  %v1371_v20 = vand.u32 2147483648, %v3676_v58  ;;  %vm1365_vm13 = vweird.f32 %v3676_v58 }
 0x1da   : > { %v3657_v42 = vadd.f32 %v3535_v40, %v1292_v49  ;;  %v1431_v49 = vadd.f32 0.001143296, %v1430_v8  ;;  %v1424_v26 = vadd.f32 0.05243302, %v1423_v50  ;;  %v1332_v1 = vor.u32 1.1754944e-38, %v1331_v4 }
 0x1db   : > { %v2557_v53 = vpop.eup %2556  ;;  %v1328_v10 = vsel %vm3709_vm10, %v3648_v12, %v1324_v34  ;;  %v1397_v62 = vadd.f32 0.4994258, %v1396_v17  ;;  %v1369_v12 = vand.u32 2147483647, %v3676_v58  ;;  %v1372_v25 = vor.u32 1.1754944e-38, %v1371_v20 }
 0x1dc   : > { %v1857_v6 = vmul.f32 %v3657_v42, %v3657_v42  ;;  %v1432_v27 = vmul.f32 %v1431_v49, %v3631_v0  ;;  %v1361_v44 = vmul.f32 %v2557_v53, %v3676_v58  ;;  %vm1366_vm12 = vweird.f32 %v2557_v53 }
 0x1dd   : > { %v1333_v7 = vsel %vm3713_vm11, %v1332_v1, %v1328_v10  ;;  %v1398_v15 = vmul.f32 %v1397_v62, %v3597_v35  ;;  %vm1367_vm14 = vmor %vm1365_vm13, %vm1366_vm12  ;;  %vm1370_vm15 = vcmp.eq.f32.partialorder %v1369_v12, 8.507059e+37  ;;  %v1425_v2 = vmul.f32 %v1424_v26, %v3631_v0 }
 0x1de   : > { %v3679_v56 = vmin.f32 %v1857_v6, 16.0  ;;  %v1433_v16 = vadd.f32 0.014752088, %v1432_v27  ;;  %v1334_v47 = vmul.f32 %v1333_v7, %v1309_v5  ;;  %v1387_v5 = vmul.f32 %v1386_v18, %v3597_v35 }
 0x1df   : > { %v1267_v29 = vpop.f32.mrf.mxu1  ;;  %v3739_v54 = vadd.f32 1.0, %v1398_v15 }
 0x1e0   : > { %v3673_v14 = vadd.f32 %v3535_v40, %v1267_v29  ;;  %v1859_v28 = vmul.f32 2.1237322e-06, %v3679_v56  ;;  %v1362_v29 = vsub.f32 1.0, %v1361_v44  ;;  %v1434_v59 = vmul.f32 %v1433_v16, %v3631_v0 }
 0x1e1   : > { %v1294_v41 = vpop.f32.mrf.mxu3  ;;  %v1870_v9 = vmul.f32 3.8918573e-05, %v3679_v56  ;;  %2558 = vrcp.f32 %v3739_v54  ;;  %v2323_v11 = vclamps-f32 %v1334_v47, 1.0  ;;  %v1388_v18 = vadd.f32 1.1283791, %v1387_v5 }
 0x1e2   : > { %v1457_v39 = vmul.f32 %v3673_v14, %v3673_v14  ;;  %v3686_v57 = vadd.f32 %v3535_v40, %v1294_v41  ;;  %v1860_v60 = vadd.f32 0.00028619796, %v1859_v28  ;;  %v1363_v13 = vmul.f32 %v2557_v53, %v1362_v29 }
 0x1e3   : > { %v1435_v46 = vadd.f32 0.112945676, %v1434_v59  ;;  %v1871_v28 = vadd.f32 0.001143296, %v1870_v9  ;;  %vm1405_vm1 = vweird.f32 %v3739_v54 }
 0x1e4   : > { %v3699_v36 = vmin.f32 %v1457_v39, 16.0  ;;  %v1897_v43 = vmul.f32 %v3686_v57, %v3686_v57  ;;  %v1861_v24 = vmul.f32 %v1860_v60, %v3679_v56  ;;  %v1364_v8 = vadd.f32 %v2557_v53, %v1363_v13 }
 0x1e5   : > { %v1436_v63 = vmul.f32 %v1435_v46, %v3631_v0  ;;  %v1872_v35 = vmul.f32 %v1871_v28, %v3679_v56 }
 0x1e6   : > { %v1459_v45 = vmul.f32 2.1237322e-06, %v3699_v36  ;;  %v3723_v22 = vmin.f32 %v1897_v43, 16.0  ;;  %v1368_v58 = vsel %vm1367_vm14, %v2557_v53, %v1364_v8  ;;  %v1862_v39 = vadd.f32 0.0036580483, %v1861_v24 }
 0x1e7   : > { %v1269_v31 = vpop.f32.mrf.mxu1  ;;  %v1373_v23 = vsel %vm1370_vm15, %v1372_v25, %v1368_v58  ;;  %v3755_v3 = vpop.eup %2558  ;;  %v1437_v60 = vadd.f32 0.4994258, %v1436_v63  ;;  %v1873_v20 = vadd.f32 0.014752088, %v1872_v35  ;;  %v1470_v24 = vmul.f32 3.8918573e-05, %v3699_v36 }
 0x1e8   : > { %v3691_v32 = vadd.f32 %v3535_v40, %v1269_v31  ;;  %v1460_v19 = vadd.f32 0.00028619796, %v1459_v45  ;;  %v1899_v41 = vmul.f32 2.1237322e-06, %v3723_v22  ;;  %v1374_v49 = vmul.f32 %v1373_v23, %v1349_v61 }
 0x1e9   : > { %v1863_v50 = vmul.f32 %v1862_v39, %v3679_v56  ;;  %v1426_v61 = vadd.f32 0.18741608, %v1425_v2  ;;  %v1401_v17 = vmul.f32 %v3755_v3, %v3739_v54  ;;  %v1438_v29 = vmul.f32 %v1437_v60, %v3631_v0 }
 0x1ea   : > { %v1497_v52 = vmul.f32 %v3691_v32, %v3691_v32  ;;  %v1900_v31 = vadd.f32 0.00028619796, %v1899_v41  ;;  %v1461_v48 = vmul.f32 %v1460_v19, %v3699_v36  ;;  %v2324_v53 = vclamps-f32 %v1374_v49, 1.0 }
 0x1eb   : > { %v1864_v16 = vadd.f32 0.05243302, %v1863_v50  ;;  %v1427_v26 = vmul.f32 %v1426_v61, %v3631_v0  ;;  %v1402_v62 = vsub.f32 1.0, %v1401_v17  ;;  %v1910_v59 = vmul.f32 3.8918573e-05, %v3723_v22 }
 0x1ec   : > { %v3727_v6 = vmin.f32 %v1497_v52, 16.0  ;;  %v1901_v27 = vmul.f32 %v1900_v31, %v3723_v22  ;;  %v1954_v52 = vpack.c.bf16 %v2324_v53, %v2323_v11  ;;  %v1462_v30 = vadd.f32 0.0036580483, %v1461_v48 }
 0x1ed   : > { %v3770_v12 = vadd.f32 1.0, %v1438_v29  ;;  %v1874_v15 = vmul.f32 %v1873_v20, %v3679_v56  ;;  %v1911_v19 = vadd.f32 0.001143296, %v1910_v59  ;;  %v1403_v0 = vmul.f32 %v3755_v3, %v1402_v62 }
 0x1ee   : > { %v1499_v21 = vmul.f32 2.1237322e-06, %v3727_v6  ;;  %2021 = vmatmul.bf16.vlgmr.msra.gmra.mxu2 %v1954_v52  ;;  %v1902_v1 = vadd.f32 0.0036580483, %v1901_v27  ;;  %v1389_v8 = vmul.f32 %v1388_v18, %v3582_v38  ;;  %v1428_v25 = vadd.f32 1.1283791, %v1427_v26 }
 0x1ef   : > { %v1272_v55 = vpop.f32.mrf.mxu1  ;;  %2560 = vrcp.f32 %v3770_v12  ;;  %v1865_v46 = vmul.f32 %v1864_v16, %v3679_v56  ;;  %v1471_v58 = vadd.f32 0.001143296, %v1470_v24  ;;  %v1409_v23 = vand.u32 2147483647, %v3739_v54 }
 0x1f0   : > { %v3737_v33 = vadd.f32 %v3535_v40, %v1272_v55  ;;  %v1500_v34 = vadd.f32 0.00028619796, %v1499_v21  ;;  %v1463_v55 = vmul.f32 %v1462_v30, %v3699_v36  ;;  %v1903_v21 = vmul.f32 %v1902_v1, %v3723_v22 }
 0x1f1   : > { %v1875_v2 = vadd.f32 0.112945676, %v1874_v15  ;;  %v1912_v31 = vmul.f32 %v1911_v19, %v3723_v22  ;;  %v1404_v48 = vadd.f32 %v3755_v3, %v1403_v0  ;;  %vm1406_vm0 = vweird.f32 %v3755_v3 }
 0x1f2   : > { %v1537_v37 = vmul.f32 %v3737_v33, %v3737_v33  ;;  %v1501_v10 = vmul.f32 %v1500_v34, %v3727_v6  ;;  %v1464_v9 = vadd.f32 0.05243302, %v1463_v55  ;;  %v1411_v38 = vand.u32 2147483648, %v3739_v54  ;;  %vm3794_vm2 = vmor %vm1405_vm1, %vm1406_vm0 }
 0x1f3   : > { %v1866_v63 = vadd.f32 0.18741608, %v1865_v46  ;;  %v1876_v28 = vmul.f32 %v1875_v2, %v3679_v56  ;;  %v1913_v5 = vadd.f32 0.014752088, %v1912_v31  ;;  %v1472_v50 = vmul.f32 %v1471_v58, %v3699_v36 }
 0x1f4   : > { %v3757_v44 = vmin.f32 %v1537_v37, 16.0  ;;  %v1502_v7 = vadd.f32 0.0036580483, %v1501_v10  ;;  %v1429_v37 = vmul.f32 %v1428_v25, %v3607_v51  ;;  %v1904_v61 = vadd.f32 0.05243302, %v1903_v21 }
 0x1f5   : > { %v2561_v34 = vpop.eup %2560  ;;  %v1877_v30 = vadd.f32 0.4994258, %v1876_v28  ;;  %v1408_v35 = vsel %vm3794_vm2, %v3755_v3, %v1404_v48  ;;  %vm3802_vm3 = vcmp.eq.f32.partialorder %v1409_v23, 8.507059e+37  ;;  %v1412_v54 = vor.u32 1.1754944e-38, %v1411_v38 }
 0x1f6   : > { %v1539_v13 = vmul.f32 2.1237322e-06, %v3757_v44  ;;  %v1503_v39 = vmul.f32 %v1502_v7, %v3727_v6  ;;  %v1441_v51 = vmul.f32 %v2561_v34, %v3770_v12  ;;  %v1914_v16 = vmul.f32 %v1913_v5, %v3723_v22 }
 0x1f7   : > { %v1274_v43 = vpop.f32.mrf.mxu1  ;;  %v1878_v17 = vmul.f32 %v1877_v30, %v3679_v56  ;;  %vm1446_vm4 = vweird.f32 %v2561_v34  ;;  %v1449_v20 = vand.u32 2147483647, %v3770_v12  ;;  %v1451_v26 = vand.u32 2147483648, %v3770_v12 }
 0x1f8   : > { %v3752_v4 = vadd.f32 %v3535_v40, %v1274_v43  ;;  %v1540_v47 = vadd.f32 0.00028619796, %v1539_v13  ;;  %v1465_v43 = vmul.f32 %v1464_v9, %v3699_v36  ;;  %v1504_v27 = vadd.f32 0.05243302, %v1503_v39 }
 0x1f9   : > { %v1442_v10 = vsub.f32 1.0, %v1441_v51  ;;  %v3810_v62 = vadd.f32 1.0, %v1878_v17  ;;  %v1915_v3 = vadd.f32 0.112945676, %v1914_v16  ;;  %v1905_v55 = vmul.f32 %v1904_v61, %v3723_v22 }
 0x1fa   : > { %v1577_v45 = vmul.f32 %v3752_v4, %v3752_v4  ;;  %v1541_v11 = vmul.f32 %v1540_v47, %v3757_v44  ;;  %v1413_v7 = vsel %vm3802_vm3, %v1412_v54, %v1408_v35  ;;  %v1466_v15 = vadd.f32 0.18741608, %v1465_v43 }
 0x1fb   : > { %v1443_v1 = vmul.f32 %v2561_v34, %v1442_v10  ;;  %vm1445_vm5 = vweird.f32 %v3770_v12  ;;  %2562 = vrcp.f32 %v3810_v62  ;;  %v1505_v0 = vmul.f32 %v1504_v27, %v3727_v6 }
 0x1fc   : > { %v3774_v41 = vmin.f32 %v1577_v45, 16.0  ;;  %v1473_v45 = vadd.f32 0.014752088, %v1472_v50  ;;  %v1542_v29 = vadd.f32 0.0036580483, %v1541_v11  ;;  %vm1447_vm6 = vmor %vm1445_vm5, %vm1446_vm4  ;;  %vm1450_vm7 = vcmp.eq.f32.partialorder %v1449_v20, 8.507059e+37 }
 0x1fd   : > { %v1444_v19 = vadd.f32 %v2561_v34, %v1443_v1  ;;  %v1452_v46 = vor.u32 1.1754944e-38, %v1451_v26  ;;  %v1414_v9 = vmul.f32 %v1413_v7, %v1389_v8  ;;  %v1916_v47 = vmul.f32 %v1915_v3, %v3723_v22 }
 0x1fe   : > { %v1579_v49 = vmul.f32 2.1237322e-06, %v3774_v41  ;;  %v1474_v59 = vmul.f32 %v1473_v45, %v3699_v36  ;;  %v1543_v25 = vmul.f32 %v1542_v29, %v3757_v44  ;;  %v1906_v39 = vadd.f32 0.18741608, %v1905_v55 }
 0x1ff   : > { %v1277_v53 = vpop.f32.mrf.mxu1  ;;  %v1448_v21 = vsel %vm1447_vm6, %v2561_v34, %v1444_v19  ;;  %v1917_v48 = vadd.f32 0.4994258, %v1916_v47  ;;  %v1867_v38 = vmul.f32 %v1866_v63, %v3679_v56  ;;  %v1467_v28 = vmul.f32 %v1466_v15, %v3699_v36 }
 0x200   : > { %v1580_v60 = vadd.f32 0.00028619796, %v1579_v49  ;;  %v3816_v24 = vadd.f32 %v3535_v40, %v1277_v53  ;;  %v1475_v58 = vadd.f32 0.112945676, %v1474_v59  ;;  %v1453_v31 = vsel %vm1450_vm7, %v1452_v46, %v1448_v21 }
 0x201   : > { %v1454_v49 = vmul.f32 %v1453_v31, %v1429_v37  ;;  %v1506_v5 = vadd.f32 0.18741608, %v1505_v0  ;;  %v3831_v34 = vpop.eup %2562  ;;  %v1544_v43 = vadd.f32 0.05243302, %v1543_v25  ;;  %v2325_v11 = vclamps-f32 %v1414_v9, 1.0 }
 0x202   : > { %v1581_v13 = vmul.f32 %v1580_v60, %v3774_v41  ;;  %v1617_v12 = vmul.f32 %v3816_v24, %v3816_v24  ;;  %v1476_v8 = vmul.f32 %v1475_v58, %v3699_v36  ;;  %v1918_v50 = vmul.f32 %v1917_v48, %v3723_v22 }
 0x203   : > { %v2326_v53 = vclamps-f32 %v1454_v49, 1.0  ;;  %v1907_v61 = vmul.f32 %v1906_v39, %v3723_v22  ;;  %v1881_v56 = vmul.f32 %v3831_v34, %v3810_v62  ;;  %v1868_v60 = vadd.f32 1.1283791, %v1867_v38 }
 0x204   : > { %v1582_v23 = vadd.f32 0.0036580483, %v1581_v13  ;;  %v3836_v37 = vmin.f32 %v1617_v12, 16.0  ;;  %v3843_v51 = vadd.f32 1.0, %v1918_v50  ;;  %v1477_v30 = vadd.f32 0.4994258, %v1476_v8 }
 0x205   : > { %v1955_v52 = vpack.c.bf16 %v2326_v53, %v2325_v11  ;;  %v1882_v35 = vsub.f32 1.0, %v1881_v56  ;;  %v1510_v18 = vmul.f32 3.8918573e-05, %v3727_v6  ;;  %v1468_v54 = vadd.f32 1.1283791, %v1467_v28 }
 0x206   : > { %v1583_v27 = vmul.f32 %v1582_v23, %v3774_v41  ;;  %v1507_v22 = vmul.f32 %v1506_v5, %v3727_v6  ;;  %v1545_v10 = vmul.f32 %v1544_v43, %v3757_v44  ;;  %2564 = vrcp.f32 %v3843_v51 }
 0x207   : > { %v1279_v2 = vpop.f32.mrf.mxu1  ;;  %2026 = vmatmul.bf16.gmra.mxu2 %v1955_v52  ;;  %v1619_v16 = vmul.f32 2.1237322e-06, %v3836_v37  ;;  %v1883_v45 = vmul.f32 %v3831_v34, %v1882_v35  ;;  %v1908_v29 = vadd.f32 1.1283791, %v1907_v61  ;;  %v1478_v26 = vmul.f32 %v1477_v30, %v3699_v36 }
 0x208   : > { %v3841_v63 = vadd.f32 %v3535_v40, %v1279_v2  ;;  %v1584_v17 = vadd.f32 0.05243302, %v1583_v27  ;;  %v1869_v1 = vmul.f32 %v1868_v60, %v3657_v42  ;;  %v1511_v59 = vadd.f32 0.001143296, %v1510_v18 }
 0x209   : > { %v3856_v55 = vmul.f32 %v1468_v54, %v3673_v14  ;;  %v1508_v13 = vadd.f32 1.1283791, %v1507_v22  ;;  %v1546_v7 = vadd.f32 0.18741608, %v1545_v10  ;;  %v3858_v15 = vadd.f32 1.0, %v1478_v26 }
 0x20a   : > { %v1657_v20 = vmul.f32 %v3841_v63, %v3841_v63  ;;  %v1585_v19 = vmul.f32 %v1584_v17, %v3774_v41  ;;  %v1620_v0 = vadd.f32 0.00028619796, %v1619_v16  ;;  %v1884_v25 = vadd.f32 %v3831_v34, %v1883_v45 }
 0x20b   : > { %vm1886_vm8 = vweird.f32 %v3831_v34  ;;  %v1909_v36 = vmul.f32 %v1908_v29, %v3686_v57  ;;  %v1891_v9 = vand.u32 2147483648, %v3810_v62  ;;  %2566 = vrcp.f32 %v3858_v15 }
 0x20c   : > { %v2565_v46 = vpop.eup %2564  ;;  %v3864_v42 = vmin.f32 %v1657_v20, 16.0  ;;  %vm1885_vm9 = vweird.f32 %v3810_v62  ;;  %v1889_v14 = vand.u32 2147483647, %v3810_v62  ;;  %v1512_v47 = vmul.f32 %v1511_v59, %v3727_v6 }
 0x20d   : > { %v1921_v21 = vmul.f32 %v2565_v46, %v3843_v51  ;;  %v3873_v58 = vmul.f32 %v1508_v13, %v3691_v32  ;;  %v1547_v39 = vmul.f32 %v1546_v7, %v3757_v44  ;;  %vm3876_vm10 = vmor %vm1885_vm9, %vm1886_vm8  ;;  %v1550_v23 = vmul.f32 3.8918573e-05, %v3757_v44 }
 0x20e   : > { %v1590_v12 = vmul.f32 3.8918573e-05, %v3774_v41  ;;  %v1586_v2 = vadd.f32 0.18741608, %v1585_v19  ;;  %v1621_v62 = vmul.f32 %v1620_v0, %v3836_v37  ;;  %v1888_v31 = vsel %vm3876_vm10, %v3831_v34, %v1884_v25 }
 0x20f   : > { %v1282_v3 = vpop.f32.mrf.mxu1  ;;  %v1922_v49 = vsub.f32 1.0, %v1921_v21  ;;  %v1659_v32 = vmul.f32 2.1237322e-06, %v3864_v42  ;;  %v1892_v48 = vor.u32 1.1754944e-38, %v1891_v9  ;;  %v1929_v38 = vand.u32 2147483647, %v3843_v51 }
 0x210   : > { %v1931_v28 = vand.u32 2147483648, %v3843_v51  ;;  %vm1890_vm11 = vcmp.eq.f32.partialorder %v1889_v14, 8.507059e+37  ;;  %vm1926_vm12 = vweird.f32 %v2565_v46  ;;  %v1513_v8 = vadd.f32 0.014752088, %v1512_v47 }
 0x211   : > { %v1923_v5 = vmul.f32 %v2565_v46, %v1922_v49  ;;  %v3889_v43 = vpop.eup %2566  ;;  %v3892_v11 = vadd.f32 %v3535_v40, %v1282_v3  ;;  %v1893_v53 = vsel %vm1890_vm11, %v1892_v48, %v1888_v31  ;;  %v1551_v50 = vadd.f32 0.001143296, %v1550_v23 }
 0x212   : > { %v1591_v34 = vadd.f32 0.001143296, %v1590_v12  ;;  %vm1925_vm13 = vweird.f32 %v3843_v51  ;;  %v1481_v56 = vmul.f32 %v3889_v43, %v3858_v15  ;;  %v1514_v52 = vmul.f32 %v1513_v8, %v3727_v6 }
 0x213   : > { %v1924_v61 = vadd.f32 %v2565_v46, %v1923_v5  ;;  %vm1927_vm14 = vmor %vm1925_vm13, %vm1926_vm12  ;;  %vm1930_vm15 = vcmp.eq.f32.partialorder %v1929_v38, 8.507059e+37  ;;  %v1932_v30 = vor.u32 1.1754944e-38, %v1931_v28  ;;  %v1552_v60 = vmul.f32 %v1551_v50, %v3757_v44 }
 0x214   : > { %v1592_v35 = vmul.f32 %v1591_v34, %v3774_v41  ;;  %v1894_v18 = vmul.f32 %v1893_v53, %v1869_v1  ;;  %v1515_v22 = vadd.f32 0.112945676, %v1514_v52  ;;  %v1630_v10 = vmul.f32 3.8918573e-05, %v3836_v37 }
 0x215   : > { %v1928_v54 = vsel %vm1927_vm14, %v2565_v46, %v1924_v61  ;;  %v1697_v51 = vmul.f32 %v3892_v11, %v3892_v11  ;;  %v1553_v45 = vadd.f32 0.014752088, %v1552_v60  ;;  %v1482_v20 = vsub.f32 1.0, %v1481_v56 }
 0x216   : > { %v1933_v17 = vsel %vm1930_vm15, %v1932_v30, %v1928_v54  ;;  %v1516_v26 = vmul.f32 %v1515_v22, %v3727_v6  ;;  %v1593_v3 = vadd.f32 0.014752088, %v1592_v35  ;;  %v1622_v59 = vadd.f32 0.0036580483, %v1621_v62 }
 0x217   : > { %v1284_v27 = vpop.f32.mrf.mxu1  ;;  %v1934_v29 = vmul.f32 %v1933_v17, %v1909_v36  ;;  %v1660_v13 = vadd.f32 0.00028619796, %v1659_v32  ;;  %v1554_v1 = vmul.f32 %v1553_v45, %v3757_v44  ;;  %v1631_v7 = vadd.f32 0.001143296, %v1630_v10 }
 0x218   : > { %v3904_v16 = vadd.f32 %v3535_v40, %v1284_v27  ;;  %v2337_v19 = vclamps-f32 %v1894_v18, 1.0  ;;  %v1517_v25 = vadd.f32 0.4994258, %v1516_v26  ;;  %v1594_v46 = vmul.f32 %v1593_v3, %v3774_v41 }
 0x219   : > { %v2338_v0 = vclamps-f32 %v1934_v29, 1.0  ;;  %v3909_v9 = vmin.f32 %v1697_v51, 16.0  ;;  %v1555_v36 = vadd.f32 0.112945676, %v1554_v1  ;;  %v1632_v14 = vmul.f32 %v1631_v7, %v3836_v37 }
 0x21a   : > { %v1737_v40 = vmul.f32 %v3904_v16, %v3904_v16  ;;  %v1483_v47 = vmul.f32 %v3889_v43, %v1482_v20  ;;  %v1518_v57 = vmul.f32 %v1517_v25, %v3727_v6  ;;  %v1595_v23 = vadd.f32 0.112945676, %v1594_v46 }
 0x21b   : > { %v1961_v21 = vpack.c.bf16 %v2338_v0, %v2337_v19  ;;  %v3916_v12 = vadd.f32 1.1283791, %v1547_v39  ;;  %v1587_v62 = vmul.f32 %v1586_v2, %v3774_v41  ;;  %v1556_v31 = vmul.f32 %v1555_v36, %v3757_v44 }
 0x21c   : > { %v1633_v49 = vadd.f32 0.014752088, %v1632_v14  ;;  %v1623_v32 = vmul.f32 %v1622_v59, %v3836_v37  ;;  %v3921_v48 = vadd.f32 1.0, %v1518_v57  ;;  %v1596_v38 = vmul.f32 %v1595_v23, %v3774_v41 }
 0x21d   : > { %2056 = vmatmul.bf16.gmra.mxu3 %v1961_v21  ;;  %v1670_v28 = vmul.f32 3.8918573e-05, %v3864_v42  ;;  %v1661_v5 = vmul.f32 %v1660_v13, %v3864_v42  ;;  %v3926_v6 = vmin.f32 %v1737_v40, 16.0  ;;  %v1557_v39 = vadd.f32 0.4994258, %v1556_v31 }
 0x21e   : > { %v1634_v8 = vmul.f32 %v1633_v49, %v3836_v37  ;;  %v1484_v2 = vadd.f32 %v3889_v43, %v1483_v47  ;;  %vm1486_vm0 = vweird.f32 %v3889_v43  ;;  %2568 = vrcp.f32 %v3921_v48 }
 0x21f   : > { %v1710_v53 = vmul.f32 3.8918573e-05, %v3909_v9  ;;  %v1489_v50 = vand.u32 2147483647, %v3858_v15  ;;  %v1491_v34 = vand.u32 2147483648, %v3858_v15  ;;  %v1558_v61 = vmul.f32 %v1557_v39, %v3757_v44 }
 0x220   : > { %v1597_v27 = vadd.f32 0.4994258, %v1596_v38  ;;  %v3936_v56 = vadd.f32 1.1283791, %v1587_v62  ;;  %vm1485_vm1 = vweird.f32 %v3858_v15  ;;  %v1635_v52 = vadd.f32 0.112945676, %v1634_v8 }
 0x221   : > { %v1671_v30 = vadd.f32 0.001143296, %v1670_v28  ;;  %v1624_v60 = vadd.f32 0.05243302, %v1623_v32  ;;  %v1662_v35 = vadd.f32 0.0036580483, %v1661_v5  ;;  %vm3939_vm2 = vmor %vm1485_vm1, %vm1486_vm0  ;;  %vm1525_vm5 = vweird.f32 %v3921_v48 }
 0x222   : > { %v3943_v54 = vadd.f32 1.0, %v1558_v61  ;;  %v1598_v22 = vmul.f32 %v1597_v27, %v3774_v41  ;;  %v1488_v44 = vsel %vm3939_vm2, %v3889_v43, %v1484_v2  ;;  %v1636_v10 = vmul.f32 %v1635_v52, %v3836_v37 }
 0x223   : > { %v1672_v15 = vmul.f32 %v1671_v30, %v3864_v42  ;;  %v1711_v51 = vadd.f32 0.001143296, %v1710_v53  ;;  %vm1490_vm3 = vcmp.eq.f32.partialorder %v1489_v50, 8.507059e+37  ;;  %v1492_v17 = vor.u32 1.1754944e-38, %v1491_v34 }
 0x224   : > { %2570 = vrcp.f32 %v3943_v54  ;;  %v1750_v45 = vmul.f32 3.8918573e-05, %v3926_v6  ;;  %v2569_v29 = vpop.eup %2568  ;;  %v3953_v20 = vadd.f32 1.0, %v1598_v22  ;;  %v1637_v26 = vadd.f32 0.4994258, %v1636_v10 }
 0x225   : > { %v1673_v41 = vadd.f32 0.014752088, %v1672_v15  ;;  %v1712_v3 = vmul.f32 %v1711_v51, %v3909_v9  ;;  %v3957_v43 = vmul.f32 %v1624_v60, %v3836_v37  ;;  %v1663_v59 = vmul.f32 %v1662_v35, %v3864_v42 }
 0x226   : > { %v1493_v13 = vsel %vm1490_vm3, %v1492_v17, %v1488_v44  ;;  %v1521_v1 = vmul.f32 %v2569_v29, %v3921_v48  ;;  %v1699_v7 = vmul.f32 2.1237322e-06, %v3909_v9  ;;  %v1739_v19 = vmul.f32 2.1237322e-06, %v3926_v6 }
 0x227   : > { %v1531_v0 = vand.u32 2147483648, %v3921_v48  ;;  %2572 = vrcp.f32 %v3953_v20  ;;  %v1638_v46 = vmul.f32 %v1637_v26, %v3836_v37  ;;  %v1674_v40 = vmul.f32 %v1673_v41, %v3864_v42 }
 0x228   : > { %v1522_v25 = vsub.f32 1.0, %v1521_v1  ;;  %v1713_v36 = vadd.f32 0.014752088, %v1712_v3  ;;  %v1494_v14 = vmul.f32 %v1493_v13, %v3856_v55  ;;  %vm1526_vm4 = vweird.f32 %v2569_v29 }
 0x229   : > { %v1529_v21 = vand.u32 2147483647, %v3921_v48  ;;  %v1751_v47 = vadd.f32 0.001143296, %v1750_v45  ;;  %v3971_v62 = vadd.f32 1.0, %v1638_v46  ;;  %v1532_v55 = vor.u32 1.1754944e-38, %v1531_v0  ;;  %vm1527_vm6 = vmor %vm1525_vm5, %vm1526_vm4 }
 0x22a   : > { %v3969_v57 = vpop.eup %2570  ;;  %v1523_v23 = vmul.f32 %v2569_v29, %v1522_v25  ;;  %v1675_v31 = vadd.f32 0.112945676, %v1674_v40  ;;  %v1714_v49 = vmul.f32 %v1713_v36, %v3909_v9  ;;  %v1664_v32 = vadd.f32 0.05243302, %v1663_v59 }
 0x22b   : > { %v1700_v38 = vadd.f32 0.00028619796, %v1699_v7  ;;  %v1740_v28 = vadd.f32 0.00028619796, %v1739_v19  ;;  %v1561_v5 = vmul.f32 %v3969_v57, %v3943_v54  ;;  %v1752_v8 = vmul.f32 %v1751_v47, %v3926_v6 }
 0x22c   : > { %v1524_v39 = vadd.f32 %v2569_v29, %v1523_v23  ;;  %2574 = vrcp.f32 %v3971_v62  ;;  %v1676_v50 = vmul.f32 %v1675_v31, %v3864_v42  ;;  %v1715_v34 = vadd.f32 0.112945676, %v1714_v49 }
 0x22d   : > { %v2573_v2 = vpop.eup %2572  ;;  %v1562_v53 = vsub.f32 1.0, %v1561_v5  ;;  %v2327_v61 = vclamps-f32 %v1494_v14, 1.0  ;;  %vm1530_vm7 = vcmp.eq.f32.partialorder %v1529_v21, 8.507059e+37  ;;  %v1609_v60 = vand.u32 2147483647, %v3953_v20 }
 0x22e   : > { %v1528_v27 = vsel %vm1527_vm6, %v2569_v29, %v1524_v39  ;;  %v1601_v52 = vmul.f32 %v2573_v2, %v3953_v20  ;;  %v1677_v35 = vadd.f32 0.4994258, %v1676_v50  ;;  %v1716_v44 = vmul.f32 %v1715_v34, %v3909_v9 }
 0x22f   : > { %v1533_v30 = vsel %vm1530_vm7, %v1532_v55, %v1528_v27  ;;  %v1563_v48 = vmul.f32 %v3969_v57, %v1562_v53  ;;  %v1753_v10 = vadd.f32 0.014752088, %v1752_v8  ;;  %vm1566_vm8 = vweird.f32 %v3969_v57 }
 0x230   : > { %v1534_v18 = vmul.f32 %v1533_v30, %v3873_v58  ;;  %v1602_v22 = vsub.f32 1.0, %v1601_v52  ;;  %vm1606_vm9 = vweird.f32 %v2573_v2  ;;  %v1611_v15 = vand.u32 2147483648, %v3953_v20 }
 0x231   : > { %v1678_v51 = vmul.f32 %v1677_v35, %v3864_v42  ;;  %v1564_v45 = vadd.f32 %v3969_v57, %v1563_v48  ;;  %v1717_v26 = vadd.f32 0.4994258, %v1716_v44  ;;  %vm1565_vm10 = vweird.f32 %v3943_v54 }
 0x232   : > { %v2328_v17 = vclamps-f32 %v1534_v18, 1.0  ;;  %v1603_v29 = vmul.f32 %v2573_v2, %v1602_v22  ;;  %v3990_v41 = vpop.eup %2574  ;;  %v1571_v58 = vand.u32 2147483648, %v3943_v54  ;;  %v1754_v59 = vmul.f32 %v1753_v10, %v3926_v6  ;;  %vm3997_vm11 = vmor %vm1565_vm10, %vm1566_vm8 }
 0x233   : > { %v3994_v3 = vadd.f32 1.0, %v1678_v51  ;;  %v1569_v7 = vand.u32 2147483647, %v3943_v54  ;;  %vm1605_vm12 = vweird.f32 %v3953_v20  ;;  %v1665_v0 = vmul.f32 %v1664_v32, %v3864_v42 }
 0x234   : > { %v1956_v13 = vpack.c.bf16 %v2328_v17, %v2327_v61  ;;  %v1604_v19 = vadd.f32 %v2573_v2, %v1603_v29  ;;  %vm1607_vm13 = vmor %vm1605_vm12, %vm1606_vm9  ;;  %v1612_v25 = vor.u32 1.1754944e-38, %v1611_v15  ;;  %v1718_v46 = vmul.f32 %v1717_v26, %v3909_v9 }
 0x235   : > { %2576 = vrcp.f32 %v3994_v3  ;;  %v1568_v40 = vsel %vm3997_vm11, %v3969_v57, %v1564_v45  ;;  %vm1610_vm14 = vcmp.eq.f32.partialorder %v1609_v60, 8.507059e+37  ;;  %v1641_v54 = vmul.f32 %v3990_v41, %v3971_v62 }
 0x236   : > { %2031 = vmatmul.bf16.gmra.mxu2 %v1956_v13  ;;  %v1608_v36 = vsel %vm1607_vm13, %v2573_v2, %v1604_v19  ;;  %v1701_v20 = vmul.f32 %v1700_v38, %v3909_v9  ;;  %v1572_v14 = vor.u32 1.1754944e-38, %v1571_v58  ;;  %v1755_v47 = vadd.f32 0.112945676, %v1754_v59 }
 0x237   : > { %v1613_v21 = vsel %vm1610_vm14, %v1612_v25, %v1608_v36  ;;  %v1589_v23 = vmul.f32 %v3936_v56, %v3752_v4  ;;  %v1741_v31 = vmul.f32 %v1740_v28, %v3926_v6  ;;  %vm1570_vm15 = vcmp.eq.f32.partialorder %v1569_v7, 8.507059e+37 }
 0x238   : > { %v1573_v49 = vsel %vm1570_vm15, %v1572_v14, %v1568_v40  ;;  %v4016_v32 = vadd.f32 1.0, %v1718_v46  ;;  %v1549_v57 = vmul.f32 %v3916_v12, %v3737_v33  ;;  %v1642_v39 = vsub.f32 1.0, %v1641_v54 }
 0x239   : > { %v1614_v5 = vmul.f32 %v1613_v21, %v1589_v23  ;;  %v1756_v55 = vmul.f32 %v1755_v47, %v3926_v6  ;;  %v1626_v8 = vadd.f32 0.18741608, %v3957_v43  ;;  %v1666_v2 = vadd.f32 0.18741608, %v1665_v0 }
 0x23a   : > { %v1702_v53 = vadd.f32 0.0036580483, %v1701_v20  ;;  %v1742_v50 = vadd.f32 0.0036580483, %v1741_v31  ;;  %v1574_v4 = vmul.f32 %v1573_v49, %v1549_v57  ;;  %2578 = vrcp.f32 %v4016_v32 }
 0x23b   : > { %v2577_v38 = vpop.eup %2576  ;;  %v1757_v28 = vadd.f32 0.4994258, %v1756_v55  ;;  %v2330_v34 = vclamps-f32 %v1614_v5, 1.0  ;;  %v1643_v61 = vmul.f32 %v3990_v41, %v1642_v39  ;;  %v1627_v12 = vmul.f32 %v1626_v8, %v3836_v37 }
 0x23c   : > { %v1681_v56 = vmul.f32 %v2577_v38, %v3994_v3  ;;  %v1667_v27 = vmul.f32 %v1666_v2, %v3864_v42  ;;  %v1703_v52 = vmul.f32 %v1702_v53, %v3909_v9  ;;  %v1743_v30 = vmul.f32 %v1742_v50, %v3926_v6 }
 0x23d   : > { %v1758_v43 = vmul.f32 %v1757_v28, %v3926_v6  ;;  %v2329_v48 = vclamps-f32 %v1574_v4, 1.0  ;;  %vm1686_vm0 = vweird.f32 %v2577_v38  ;;  %vm1646_vm1 = vweird.f32 %v3990_v41 }
 0x23e   : > { %v1682_v33 = vsub.f32 1.0, %v1681_v56  ;;  %vm1685_vm2 = vweird.f32 %v3994_v3  ;;  %v1691_v35 = vand.u32 2147483648, %v3994_v3  ;;  %v1644_v42 = vadd.f32 %v3990_v41, %v1643_v61 }
 0x23f   : > { %v4033_v18 = vadd.f32 1.0, %v1758_v43  ;;  %v1957_v37 = vpack.c.bf16 %v2330_v34, %v2329_v48  ;;  %v1689_v44 = vand.u32 2147483647, %v3994_v3  ;;  %v1668_v15 = vadd.f32 1.1283791, %v1667_v27  ;;  %vm4040_vm3 = vmor %vm1685_vm2, %vm1686_vm0 }
 0x240   : > { %v1683_v60 = vmul.f32 %v2577_v38, %v1682_v33  ;;  %v4037_v10 = vpop.eup %2578  ;;  %v1651_v51 = vand.u32 2147483648, %v3971_v62  ;;  %v1744_v45 = vadd.f32 0.05243302, %v1743_v30  ;;  %vm1645_vm4 = vweird.f32 %v3971_v62 }
 0x241   : > { %2580 = vrcp.f32 %v4033_v18  ;;  %v1649_v29 = vand.u32 2147483647, %v3971_v62  ;;  %v1704_v58 = vadd.f32 0.05243302, %v1703_v52  ;;  %vm1647_vm5 = vmor %vm1645_vm4, %vm1646_vm1  ;;  %v1692_v3 = vor.u32 1.1754944e-38, %v1691_v35 }
 0x242   : > { %v1684_v22 = vadd.f32 %v2577_v38, %v1683_v60  ;;  %v1628_v59 = vadd.f32 1.1283791, %v1627_v12  ;;  %v1648_v13 = vsel %vm1647_vm5, %v3990_v41, %v1644_v42  ;;  %vm1690_vm6 = vcmp.eq.f32.partialorder %v1689_v44, 8.507059e+37 }
 0x243   : > { %v1721_v1 = vmul.f32 %v4037_v10, %v4016_v32  ;;  %v1652_v7 = vor.u32 1.1754944e-38, %v1651_v51  ;;  %v1669_v62 = vmul.f32 %v1668_v15, %v3841_v63  ;;  %v1745_v0 = vmul.f32 %v1744_v45, %v3926_v6 }
 0x244   : > { %v1688_v26 = vsel %vm4040_vm3, %v2577_v38, %v1684_v22  ;;  %vm1650_vm7 = vcmp.eq.f32.partialorder %v1649_v29, 8.507059e+37  ;;  %v1705_v46 = vmul.f32 %v1704_v58, %v3909_v9  ;;  %v1629_v36 = vmul.f32 %v1628_v59, %v3816_v24 }
 0x245   : > { %v1693_v19 = vsel %vm1690_vm6, %v1692_v3, %v1688_v26  ;;  %v1653_v40 = vsel %vm1650_vm7, %v1652_v7, %v1648_v13  ;;  %v1722_v20 = vsub.f32 1.0, %v1721_v1  ;;  %v1746_v14 = vadd.f32 0.18741608, %v1745_v0 }
 0x246   : > { %2036 = vmatmul.bf16.gmra.mxu2 %v1957_v37  ;;  %v1694_v54 = vmul.f32 %v1693_v19, %v1669_v62  ;;  %v1654_v21 = vmul.f32 %v1653_v40, %v1629_v36  ;;  %v1706_v23 = vadd.f32 0.18741608, %v1705_v46  ;;  %vm1726_vm9 = vweird.f32 %v4037_v10 }
 0x247   : > { %v2581_v25 = vpop.eup %2580  ;;  %v1723_v63 = vmul.f32 %v4037_v10, %v1722_v20  ;;  %v1747_v57 = vmul.f32 %v1746_v14, %v3926_v6  ;;  %v1771_v24 = vand.u32 2147483648, %v4033_v18  ;;  %vm1765_vm10 = vweird.f32 %v4033_v18 }
 0x248   : > { %v1761_v41 = vmul.f32 %v2581_v25, %v4033_v18  ;;  %v2332_v31 = vclamps-f32 %v1694_v54, 1.0  ;;  %v2331_v5 = vclamps-f32 %v1654_v21, 1.0  ;;  %vm1766_vm8 = vweird.f32 %v2581_v25 }
 0x249   : > { %v1707_v55 = vmul.f32 %v1706_v23, %v3909_v9  ;;  %v1724_v8 = vadd.f32 %v4037_v10, %v1723_v63  ;;  %v1769_v2 = vand.u32 2147483647, %v4033_v18  ;;  %v1731_v53 = vand.u32 2147483648, %v4016_v32  ;;  %vm1767_vm11 = vmor %vm1765_vm10, %vm1766_vm8 }
 0x24a   : > { %v1762_v47 = vsub.f32 1.0, %v1761_v41  ;;  %v1958_v38 = vpack.c.bf16 %v2332_v31, %v2331_v5  ;;  %v1748_v6 = vadd.f32 1.1283791, %v1747_v57  ;;  %vm1725_vm12 = vweird.f32 %v4016_v32 }
 0x24b   : > { %v1729_v9 = vand.u32 2147483647, %v4016_v32  ;;  %vm1727_vm13 = vmor %vm1725_vm12, %vm1726_vm9  ;;  %v1772_v4 = vor.u32 1.1754944e-38, %v1771_v24  ;;  %v1708_v56 = vadd.f32 1.1283791, %v1707_v55  ;;  %vm1770_vm14 = vcmp.eq.f32.partialorder %v1769_v2, 8.507059e+37 }
 0x24c   : > { %v1763_v49 = vmul.f32 %v2581_v25, %v1762_v47  ;;  %v1728_v28 = vsel %vm1727_vm13, %v4037_v10, %v1724_v8  ;;  %v1732_v34 = vor.u32 1.1754944e-38, %v1731_v53  ;;  %v1749_v33 = vmul.f32 %v1748_v6, %v3904_v16  ;;  %v2517_v32 = vld [vmem:[%s4135_s6] ss:$0 sm:$0xff] }
 0x24d   : > { %vm1730_vm15 = vcmp.eq.f32.partialorder %v1729_v9, 8.507059e+37  ;;  %v1709_v27 = vmul.f32 %v1708_v56, %v3892_v11 }
 0x24e   : > { %v1764_v39 = vadd.f32 %v2581_v25, %v1763_v49  ;;  %v1733_v12 = vsel %vm1730_vm15, %v1732_v34, %v1728_v28 }
 0x24f   : > { %v1734_v30 = vmul.f32 %v1733_v12, %v1709_v27 }
 0x250   : > { %v1768_v50 = vsel %vm1767_vm11, %v2581_v25, %v1764_v39 }
 0x251   : > { %v1773_v61 = vsel %vm1770_vm14, %v1772_v4, %v1768_v50  ;;  %v2333_v16 = vclamps-f32 %v1734_v30, 1.0 }
 0x252   : > { %v1774_v52 = vmul.f32 %v1773_v61, %v1749_v33 }
 0x254   : > { %v2334_v60 = vclamps-f32 %v1774_v52, 1.0 }
 0x256   : > { %2041 = vmatmul.bf16.gmra.mxu2 %v1958_v38  ;;  %v1959_v11 = vpack.c.bf16 %v2334_v60, %v2333_v16 }
 0x25c   : > { %v2052_v43 = vpop.f32.mrf.mxu3 }
 0x25d   : > { %v2053_v48 = vadd.f32 %v2517_v32, %v2052_v43 }
 0x25f   : > { %2074 = vst [vmem:[%s4077_s29 + $0x60] sm:$0xff] %v2053_v48 }
 0x264   : > { %v2054_v35 = vpop.f32.mrf.mxu3 }
 0x265   : > { %v2055_v37 = vadd.f32 %v2517_v32, %v2054_v35 }
 0x266   : > { %2046 = vmatmul.bf16.gmra.mxu2 %v1959_v11 }
 0x267   : > { %2075 = vst [vmem:[%s4077_s29 + $0x68] sm:$0xff] %v2055_v37 }
 0x271   : > { %v2022_v18 = vpop.f32.mrf.mxu2 }
 0x272   : > { %v2023_v42 = vadd.f32 %v2517_v32, %v2022_v18 }
 0x274   : > { %2062 = vst [vmem:[%s4077_s29] sm:$0xff] %v2023_v42 }
 0x279   : > { %v2024_v22 = vpop.f32.mrf.mxu2 }
 0x27a   : > { %v2025_v44 = vadd.f32 %v2517_v32, %v2024_v22 }
 0x27c   : > { %2063 = vst [vmem:[%s4077_s29 + $0x8] sm:$0xff] %v2025_v44 }
 0x28a   : > { %v2027_v10 = vpop.f32.mrf.mxu2 }
 0x28b   : > { %v2028_v15 = vadd.f32 %v2517_v32, %v2027_v10 }
 0x28d   : > { %2064 = vst [vmem:[%s4077_s29 + $0x10] sm:$0xff] %v2028_v15 }
 0x292   : > { %v2029_v51 = vpop.f32.mrf.mxu2 }
 0x293   : > { %v2030_v17 = vadd.f32 %v2517_v32, %v2029_v51 }
 0x295   : > { %2065 = vst [vmem:[%s4077_s29 + $0x18] sm:$0xff] %v2030_v17 }
 0x2a0   : > { %v2057_v45 = vpop.f32.mrf.mxu3 }
 0x2a1   : > { %v2058_v29 = vadd.f32 %v2517_v32, %v2057_v45 }
 0x2a3   : > { %2076 = vst [vmem:[%s4077_s29 + $0x70] sm:$0xff] %v2058_v29 }
 0x2a8   : > { %v2059_v26 = vpop.f32.mrf.mxu3 }
 0x2a9   : > { %v2060_v58 = vadd.f32 %v2517_v32, %v2059_v26 }
 0x2ab   : > { %2077 = vst [vmem:[%s4077_s29 + $0x78] sm:$0xff] %v2060_v58 }
 0x2b9   : > { %v2032_v3 = vpop.f32.mrf.mxu2 }
 0x2ba   : > { %v2033_v59 = vadd.f32 %v2517_v32, %v2032_v3 }
 0x2bc   : > { %2066 = vst [vmem:[%s4077_s29 + $0x20] sm:$0xff] %v2033_v59 }
 0x2c1   : > { %v2034_v13 = vpop.f32.mrf.mxu2 }
 0x2c2   : > { %v2035_v1 = vadd.f32 %v2517_v32, %v2034_v13 }
 0x2c4   : > { %2067 = vst [vmem:[%s4077_s29 + $0x28] sm:$0xff] %v2035_v1 }
 0x2c9   : > { %v2037_v7 = vpop.f32.mrf.mxu2 }
 0x2ca   : > { %v2038_v19 = vadd.f32 %v2517_v32, %v2037_v7 }
 0x2cc   : > { %2068 = vst [vmem:[%s4077_s29 + $0x30] sm:$0xff] %v2038_v19 }
 0x2d1   : > { %v2039_v62 = vpop.f32.mrf.mxu2 }
 0x2d2   : > { %v2040_v0 = vadd.f32 %v2517_v32, %v2039_v62 }
 0x2d4   : > { %2069 = vst [vmem:[%s4077_s29 + $0x38] sm:$0xff] %v2040_v0 }
 0x2d9   : > { %v2042_v25 = vpop.f32.mrf.mxu2 }
 0x2da   : > { %v2043_v46 = vadd.f32 %v2517_v32, %v2042_v25 }
 0x2dc   : > { %2070 = vst [vmem:[%s4077_s29 + $0x40] sm:$0xff] %v2043_v46 }
 0x2e1   : > { %v2044_v40 = vpop.f32.mrf.mxu2 }
 0x2e2   : > { %v2045_v36 = vadd.f32 %v2517_v32, %v2044_v40 }
 0x2e4   : > { %2071 = vst [vmem:[%s4077_s29 + $0x48] sm:$0xff] %v2045_v36 }
 0x2e9   : > { %v2047_v54 = vpop.f32.mrf.mxu2 }
 0x2ea   : > { %v2048_v20 = vadd.f32 %v2517_v32, %v2047_v54 }
 0x2ec   : > { %2072 = vst [vmem:[%s4077_s29 + $0x50] sm:$0xff] %v2048_v20 }
 0x2f1   : > { %v2049_v41 = vpop.f32.mrf.mxu2 }
 0x2f2   : > { %v2050_v14 = vadd.f32 %v2517_v32, %v2049_v41 }
 0x2f4   : > { %2073 = vst [vmem:[%s4077_s29 + $0x58] sm:$0xff] %v2050_v14 }
 0x2f5   : > { %2729 = shalt.err (!%p2726_p10)
}
 0x2f6   : > { %s2783_s15 = smov 128   ;;  %s2784_s29 = smov 8  }
 0x2f7   : > { %2448 = dma.vmem_to_hbm [thread:$0]  (%p2916_p3), %s2092_s1, 2048, %s2094_s23, %s2079_s30, %s2783_s15, %s2783_s15, %s2784_s29  }
 0x2f8 PF: > { %s2108_s9 = sand.u32 1, %s2764_s24   ;;  %p4193_p12 = scmp.ge.s32.totalorder %s2776_s27, 2 }
 0x2f9   : > { %s2109_s21 = scalar_lea.sflag [#allocation4], %s2108_s9 }
 0x2fa   : > { %p2465_p13 = pnand %p4193_p12, %p2860_p6 }
 0x2fc   : > { %p2466_p0 = pneg %p2465_p13 }
 0x2fe   : > { %2759 = dma.done.wait (%p2466_p0), %s2109_s21, 2048  }
 0x2ff   : > { %2761 = vsyncadd (%p2466_p0), %s2109_s21, 4294965248  ;;  %p22_p5 = scmp.ge.s32.totalorder %s2898_s13, 4   ;;  %s4194_s24 = smov %s2768_s25 }
 0x300   : > { %s4195_s25 = smov %s2772_s26  ;;  %s4196_s26 = smov %s2912_s17 }
 0x301   : > { %s4197_s27 = smov %s2898_s13  ;;  %24 = sbr.rel (!%p22_p5) target bundleno = 9 (0x9), region = 105 }
 0x306   :  { %2115 = vsyncpa [#allocation3], 1 }
 0x307   :  { %2117 = vsyncpa [#allocation3 + $0x1], 1 }
 0x308   :  { %2118 = vsyncpa [#allocation6], 1 }
 0x309   :  { %2119 = vsyncpa [#allocation9], 1 }
 0x30a   :  { %2120 = vsyncpa [#allocation4], 1 }
 0x30b   :  { %2122 = vsyncpa [#allocation4 + $0x1], 1 }

</bundles_post_ra>
